<compile_context>
chip_gen: v5e
topology: v5e:2x2
jax: 0.10.0
libtpu: 0.0.40
codegen_flags: <defaults>
</compile_context>

<pallas_src>
import functools

import jax
import jax.numpy as jnp
from jax.experimental import pallas as pl
from jax.experimental.pallas import tpu as pltpu


# ----------------------------------------------------------------------------
# helpers
# ----------------------------------------------------------------------------
def _round_up(x, m):
    return (x + m - 1) // m * m


def _divisor_tile(dim, cap, align=8):
    """Largest divisor of `dim` that is <= cap, preferring multiples of `align`."""
    if dim <= cap:
        return dim
    start = cap - (cap % align)
    for t in range(start, 0, -align):
        if t > 0 and dim % t == 0:
            return t
    for t in range(cap, 0, -1):
        if dim % t == 0:
            return t
    return dim


def _apply_act(y, activation):
    if activation == "relu":
        return jnp.maximum(y, 0.0)
    if activation == "gelu":
        return jax.nn.gelu(y)
    return y


def _layer_norm(x, gamma, beta, eps=1e-12):
    mu = jnp.mean(x, axis=-1, keepdims=True)
    var = jnp.mean((x - mu) ** 2, axis=-1, keepdims=True)
    return (x - mu) * jax.lax.rsqrt(var + eps) * gamma + beta


# ----------------------------------------------------------------------------
# Tiled linear kernels
# ----------------------------------------------------------------------------
def _linear_kernel(x_ref, w_ref, b_ref, o_ref, acc_ref, *, activation):
    @pl.when(pl.program_id(2) == 0)
    def _init():
        acc_ref[...] = jnp.zeros_like(acc_ref)

    acc_ref[...] += jnp.dot(x_ref[...], w_ref[...],
                            preferred_element_type=jnp.float32)

    @pl.when(pl.program_id(2) == pl.num_programs(2) - 1)
    def _fin():
        y = _apply_act(acc_ref[...] + b_ref[...], activation)
        o_ref[...] = y.astype(o_ref.dtype)


def _linear_res_ln_kernel(x_ref, w_ref, b_ref, r_ref, g_ref, bb_ref, o_ref,
                          acc_ref, *, eps):
    """y = LayerNorm(x @ w + b + residual); residual arrives as bf16, math in f32."""
    @pl.when(pl.program_id(2) == 0)
    def _init():
        acc_ref[...] = jnp.zeros_like(acc_ref)

    acc_ref[...] += jnp.dot(x_ref[...], w_ref[...],
                            preferred_element_type=jnp.float32)

    @pl.when(pl.program_id(2) == pl.num_programs(2) - 1)
    def _fin():
        y = acc_ref[...] + b_ref[...] + r_ref[...].astype(jnp.float32)
        mu = jnp.mean(y, axis=-1, keepdims=True)
        var = jnp.mean((y - mu) ** 2, axis=-1, keepdims=True)
        y = (y - mu) * jax.lax.rsqrt(var + eps) * g_ref[...] + bb_ref[...]
        o_ref[...] = y.astype(o_ref.dtype)


def pallas_linear(x, w, b, *, activation=None, residual=None, ln=None,
                  out_dtype=jnp.bfloat16, tm=1024, tn=512, tk=512, eps=1e-12):
    """bf16 MXU matmul, f32 accumulation, fused bias/act or bias+residual+LN epilogue.

    Ragged M/N edges are handled by the cdiv grid (no jnp.pad HBM copies); only K is
    zero-padded because K-tail garbage would be accumulated into the result.
    """
    M, K = x.shape
    Kw, N = w.shape
    assert K == Kw
    if residual is not None and ln is None:
        raise NotImplementedError("residual is only used together with a fused LN here")
    if ln is not None and activation is not None:
        raise NotImplementedError("activation + fused LN is not needed by this model")

    # --- tile selection -------------------------------------------------------
    tm = M if M <= tm else tm
    if ln is not None:
        tn = N                                   # full feature row resident for LN
        # keep the f32 accumulator a few MiB so the fused epilogue also fits v7x VMEM
        cap_rows = max(8, ((4 * 1024 * 1024) // (4 * N)) // 8 * 8)
        if M > cap_rows:
            tm = min(tm, cap_rows)
    else:
        tn = N if N <= tn else tn
    tk = K if K <= tk else tk

    xb = x.astype(jnp.bfloat16)
    wb = w.astype(jnp.bfloat16)
    bf = b.astype(jnp.float32).reshape(1, N)
    Kp = _round_up(K, tk)
    if Kp != K:                                  # pad K only
        xb = jnp.pad(xb, ((0, 0), (0, Kp - K)))
        wb = jnp.pad(wb, ((0, Kp - K), (0, 0)))

    grid = (pl.cdiv(M, tm), pl.cdiv(N, tn), Kp // tk)
    x_spec = pl.BlockSpec((tm, tk), lambda i, j, k: (i, k))
    w_spec = pl.BlockSpec((tk, tn), lambda i, j, k: (k, j))
    b_spec = pl.BlockSpec((1, tn), lambda i, j, k: (0, j))
    o_spec = pl.BlockSpec((tm, tn), lambda i, j, k: (i, j))

    if ln is None:
        kernel = functools.partial(_linear_kernel, activation=activation)
        in_specs = [x_spec, w_spec, b_spec]
        operands = (xb, wb, bf)
    else:
        gamma, beta = ln
        kernel = functools.partial(_linear_res_ln_kernel, eps=eps)
        in_specs = [x_spec, w_spec, b_spec,
                    pl.BlockSpec((tm, tn), lambda i, j, k: (i, j)),   # bf16 residual
                    pl.BlockSpec((1, tn), lambda i, j, k: (0, j)),    # gamma
                    pl.BlockSpec((1, tn), lambda i, j, k: (0, j))]    # beta
        operands = (xb, wb, bf, residual.astype(jnp.bfloat16),
                    gamma.astype(jnp.float32).reshape(1, N),
                    beta.astype(jnp.float32).reshape(1, N))

    return pl.pallas_call(
        kernel,
        out_shape=jax.ShapeDtypeStruct((M, N), out_dtype),
        grid_spec=pltpu.PrefetchScalarGridSpec(
            num_scalar_prefetch=0,
            grid=grid,
            in_specs=in_specs,
            out_specs=o_spec,
            scratch_shapes=[pltpu.VMEM((tm, tn), jnp.float32)]),
        compiler_params=pltpu.CompilerParams(
            dimension_semantics=("parallel", "parallel", "arbitrary"),
            vmem_limit_bytes=64 * 1024 * 1024),
    )(*operands)


# ----------------------------------------------------------------------------
# Flash-style attention: reads q/k/v column blocks straight out of the fused
# (B*S, 3H) qkv slab, online softmax over k tiles, writes ctx into (B*S, H).
# ----------------------------------------------------------------------------
def _flash_attn_kernel(q_ref, k_ref, v_ref, bias_ref, o_ref,
                       m_sc, l_sc, acc_sc, *, scale):
    ki = pl.program_id(3)

    @pl.when(ki == 0)
    def _init():
        m_sc[...] = jnp.full_like(m_sc, -1e30)
        l_sc[...] = jnp.zeros_like(l_sc)
        acc_sc[...] = jnp.zeros_like(acc_sc)

    q = q_ref[...]                                   # (tq, hd) bf16
    k = k_ref[...]                                   # (tk, hd) bf16
    v = v_ref[...]                                   # (tk, hd) bf16
    s = jax.lax.dot_general(q, k, (((1,), (1,)), ((), ())),
                            preferred_element_type=jnp.float32) * scale
    s = s + bias_ref[0]                              # (1, tk) additive key mask

    m_prev = m_sc[...]
    m_new = jnp.maximum(m_prev, jnp.max(s, axis=-1, keepdims=True))
    alpha = jnp.exp(m_prev - m_new)
    p = jnp.exp(s - m_new)
    l_sc[...] = alpha * l_sc[...] + jnp.sum(p, axis=-1, keepdims=True)
    acc_sc[...] = alpha * acc_sc[...] + jnp.dot(p.astype(v.dtype), v,
                                                preferred_element_type=jnp.float32)
    m_sc[...] = m_new

    @pl.when(ki == pl.num_programs(3) - 1)
    def _fin():
        inv_l = pl.reciprocal(l_sc[...], approx=True)
        o_ref[...] = (acc_sc[...] * inv_l).astype(o_ref.dtype)


def pallas_flash_attention(qkv, bias, B, S, num_heads, hd, scale, *,
                           q_tile=512, k_tile=512):
    """qkv: (B*S, 3H) bf16 (columns [Q heads | K heads | V heads]); bias: (B, 1, S) f32.
    Returns ctx (B*S, H) bf16 -- same row layout as qkv, no transposes anywhere."""
    BS, threeH = qkv.shape
    H = num_heads * hd
    assert BS == B * S and threeH == 3 * H
    # Column blocks of width hd must be lane-aligned for the sliced layout.
    assert hd % 128 == 0, "head_dim must be a multiple of 128 for the column-sliced layout"

    tq = _divisor_tile(S, q_tile)
    tk = _divisor_tile(S, k_tile)
    nq, nk = S // tq, S // tk
    qkv = qkv.astype(jnp.bfloat16)

    kernel = functools.partial(_flash_attn_kernel, scale=scale)
    return pl.pallas_call(
        kernel,
        out_shape=jax.ShapeDtypeStruct((BS, H), jnp.bfloat16),
        grid_spec=pltpu.PrefetchScalarGridSpec(
            num_scalar_prefetch=0,
            grid=(B, num_heads, nq, nk),
            in_specs=[
                pl.BlockSpec((tq, hd), lambda b, h, qi, ki: (b * nq + qi, h)),
                pl.BlockSpec((tk, hd), lambda b, h, qi, ki: (b * nk + ki, num_heads + h)),
                pl.BlockSpec((tk, hd), lambda b, h, qi, ki: (b * nk + ki, 2 * num_heads + h)),
                pl.BlockSpec((1, 1, tk), lambda b, h, qi, ki: (b, 0, ki)),
            ],
            out_specs=pl.BlockSpec((tq, hd), lambda b, h, qi, ki: (b * nq + qi, h)),
            scratch_shapes=[pltpu.VMEM((tq, 1), jnp.float32),
                            pltpu.VMEM((tq, 1), jnp.float32),
                            pltpu.VMEM((tq, hd), jnp.float32)]),
        compiler_params=pltpu.CompilerParams(
            dimension_semantics=("parallel", "parallel", "parallel", "arbitrary"),
            vmem_limit_bytes=64 * 1024 * 1024),
    )(qkv, qkv, qkv, bias)


# ----------------------------------------------------------------------------
# WCE classifier head: batch+seq tiled masked mean pooling + fused MLP head.
# ----------------------------------------------------------------------------
def _wce_head_kernel(hid_ref, mask_ref, pw_ref,
                     w1t_ref, w1w_ref, b1_ref, w2_ref, b2_ref,
                     out_ref, tok_acc, den_acc):
    si = pl.program_id(1)

    @pl.when(si == 0)
    def _init():
        tok_acc[...] = jnp.zeros_like(tok_acc)
        den_acc[...] = jnp.zeros_like(den_acc)

    mask = mask_ref[...]                                           # (bt, ts, 1) f32
    tok_acc[...] += jnp.sum(hid_ref[...].astype(jnp.float32) * mask, axis=1)
    den_acc[...] += jnp.sum(mask, axis=1)

    @pl.when(si == pl.num_programs(1) - 1)
    def _fin():
        denom = jnp.maximum(den_acc[...], 1.0)        # guard all-zero mask rows
        pt = (tok_acc[...] / denom).astype(jnp.bfloat16)           # (bt, H)
        pw = pw_ref[...].astype(jnp.bfloat16)                      # (bt, Cp) pre-pooled WCE
        # concat(pt, pw) @ W1 expressed as a split matmul (no lane concat needed)
        h = (jnp.dot(pt, w1t_ref[...], preferred_element_type=jnp.float32)
             + jnp.dot(pw, w1w_ref[...], preferred_element_type=jnp.float32)
             + b1_ref[...])
        h = jnp.maximum(h, 0.0).astype(jnp.bfloat16)
        out_ref[...] = (jnp.dot(h, w2_ref[...], preferred_element_type=jnp.float32)
                        + b2_ref[...])


def wce_classifier_head(hidden, pooled_wce_pad, attention_mask, p, *,
                        seq_tile=512, batch_tile=8):
    B, S, H = hidden.shape
    Cp = pooled_wce_pad.shape[-1]
    n_hidden = p["cls_w1_tok"].shape[1]
    ts = _divisor_tile(S, seq_tile)
    bt = B if B <= batch_tile else (batch_tile if B % batch_tile == 0 else B)

    hid = hidden.astype(jnp.bfloat16)
    mask = attention_mask.astype(jnp.float32).reshape(B, S, 1)
    pw = pooled_wce_pad.astype(jnp.float32)

    const_w = lambda bi, si: (0, 0)
    return pl.pallas_call(
        _wce_head_kernel,
        out_shape=jax.ShapeDtypeStruct((B, Cp), jnp.float32),
        grid_spec=pltpu.PrefetchScalarGridSpec(
            num_scalar_prefetch=0,
            grid=(B // bt, S // ts),
            in_specs=[
                pl.BlockSpec((bt, ts, H), lambda bi, si: (bi, si, 0)),
                pl.BlockSpec((bt, ts, 1), lambda bi, si: (bi, si, 0)),
                pl.BlockSpec((bt, Cp), lambda bi, si: (bi, 0)),
                pl.BlockSpec((H, n_hidden), const_w),
                pl.BlockSpec((Cp, n_hidden), const_w),
                pl.BlockSpec((1, n_hidden), const_w),
                pl.BlockSpec((n_hidden, Cp), const_w),
                pl.BlockSpec((1, Cp), const_w),
            ],
            out_specs=pl.BlockSpec((bt, Cp), lambda bi, si: (bi, 0)),
            scratch_shapes=[pltpu.VMEM((bt, H), jnp.float32),
                            pltpu.VMEM((bt, 1), jnp.float32)]),
        compiler_params=pltpu.CompilerParams(
            dimension_semantics=("parallel", "arbitrary")),
    )(hid, mask, pw,
      p["cls_w1_tok"].astype(jnp.bfloat16),
      p["cls_w1_wce"].astype(jnp.bfloat16),
      p["cls_b1"].astype(jnp.float32).reshape(1, n_hidden),
      p["cls_w2_pad"].astype(jnp.bfloat16),
      p["cls_b2_pad"].astype(jnp.float32).reshape(1, Cp))


# ----------------------------------------------------------------------------
# Stand-in for the external pre-trained transformer (embeddings + 1 encoder layer).
# Dense projections / attention run through the Pallas kernels; gathers and the
# embedding layernorm stay as JAX glue.
# ----------------------------------------------------------------------------
def mini_transformer(input_ids, attention_mask, p, num_heads, linear_fn, attn_fn):
    B, S = input_ids.shape
    H = p["word_emb"].shape[1]
    hd = H // num_heads
    scale = float(hd) ** -0.5

    x = p["word_emb"][input_ids] + p["pos_emb"][None, :S, :]
    x = _layer_norm(x, p["ln_emb_g"], p["ln_emb_b"])              # f32 (B, S, H)
    x2 = x.reshape(B * S, H)
    resid0 = x2.astype(jnp.bfloat16)                              # bf16 residual DMA

    # Fused QKV: one kernel launch, x read from HBM once, output stays in row layout.
    qkv = linear_fn(x2, p["w_qkv"], p["b_qkv"], out_dtype=jnp.bfloat16)   # (B*S, 3H)

    bias = (1.0 - attention_mask.astype(jnp.float32))[:, None, :] * -1e9  # (B, 1, S)
    ctx = attn_fn(qkv, bias, B, S, num_heads, hd, scale)          # (B*S, H) bf16

    # attention output projection with fused bias + residual + LayerNorm
    x2 = linear_fn(ctx, p["wo"], p["bo"], residual=resid0,
                   ln=(p["ln1_g"], p["ln1_b"]), out_dtype=jnp.bfloat16)

    # FFN with fused bias+GELU and fused bias+residual+LayerNorm
    h1 = linear_fn(x2, p["w_ff1"], p["b_ff1"], activation="gelu",
                   out_dtype=jnp.bfloat16)
    x2 = linear_fn(h1, p["w_ff2"], p["b_ff2"], residual=x2,
                   ln=(p["ln2_g"], p["ln2_b"]), out_dtype=jnp.bfloat16)
    return x2.reshape(B, S, H)                                    # last_hidden_state


# ----------------------------------------------------------------------------
# Full module forward (use_supervised=True, combination='concat')
# ----------------------------------------------------------------------------
def transformer_wce_classifier_forward(prep, input_ids, attention_mask, token_ids,
                                       num_heads=2, num_classes=4):
    hidden = mini_transformer(input_ids, attention_mask, prep, num_heads,
                              linear_fn=pallas_linear, attn_fn=pallas_flash_attention)

    # WCE branch pooled in JAX on the UN-padded class dim (tiny: B*S*C work),
    # so no (B, S, 128) padded gather ever hits HBM.
    mask = attention_mask.astype(jnp.float32)                     # (B, S)
    denom = jnp.maximum(jnp.sum(mask, axis=1, keepdims=True), 1.0)
    wce = prep["wce_matrix"][token_ids]                           # (B, S, C) gather
    pooled_wce = jnp.einsum("bs,bsc->bc", mask, wce) / denom      # (B, C) f32
    Cp = prep["cls_w1_wce"].shape[0]
    pooled_wce_pad = jnp.pad(pooled_wce, ((0, 0), (0, Cp - pooled_wce.shape[1])))

    logits_pad = wce_classifier_head(hidden, pooled_wce_pad, attention_mask, prep)
    return logits_pad[:, :num_classes]


# ----------------------------------------------------------------------------
# Pure-JAX reference with the SAME bf16/f32 numerics, for validation.
# ----------------------------------------------------------------------------
def _ref_linear(x, w, b, *, activation=None, residual=None, ln=None,
                out_dtype=jnp.bfloat16, eps=1e-12):
    y = jnp.dot(x.astype(jnp.bfloat16), w.astype(jnp.bfloat16),
                preferred_element_type=jnp.float32) + b.astype(jnp.float32)[None, :]
    y = _apply_act(y, activation)
    if residual is not None:
        y = y + residual.astype(jnp.bfloat16).astype(jnp.float32)
    if ln is not None:
        gamma, beta = ln
        mu = jnp.mean(y, axis=-1, keepdims=True)
        var = jnp.mean((y - mu) ** 2, axis=-1, keepdims=True)
        y = (y - mu) * jax.lax.rsqrt(var + eps) * gamma + beta
    return y.astype(out_dtype)


def _ref_attention(qkv, bias, B, S, num_heads, hd, scale, **_):
    H = num_heads * hd
    qkv5 = qkv.astype(jnp.bfloat16).reshape(B, S, 3, num_heads, hd)
    q = qkv5[:, :, 0].transpose(0, 2, 1, 3)                       # (B, nh, S, hd)
    k = qkv5[:, :, 1].transpose(0, 2, 1, 3)
    v = qkv5[:, :, 2].transpose(0, 2, 1, 3)
    s = jnp.einsum("bhqd,bhkd->bhqk", q, k,
                   preferred_element_type=jnp.float32) * scale
    s = s + bias[:, :, None, :]                                   # (B,1,1,S)
    m = jnp.max(s, axis=-1, keepdims=True)
    p = jnp.exp(s - m)
    p = p / jnp.sum(p, axis=-1, keepdims=True)
    ctx = jnp.einsum("bhqk,bhkd->bhqd", p.astype(jnp.bfloat16), v,
                     preferred_element_type=jnp.float32)
    return ctx.transpose(0, 2, 1, 3).reshape(B * S, H).astype(jnp.bfloat16)


def reference_forward(p, input_ids, attention_mask, token_ids, num_heads=2):
    hidden = mini_transformer(input_ids, attention_mask, p, num_heads,
                              linear_fn=_ref_linear, attn_fn=_ref_attention)
    H = hidden.shape[-1]
    mask3 = attention_mask.astype(jnp.float32)[:, :, None]
    denom = jnp.maximum(jnp.sum(mask3, axis=1), 1.0)
    pooled_tok = jnp.sum(hidden.astype(jnp.float32) * mask3, axis=1) / denom
    wce = p["wce_matrix"][token_ids]
    pooled_wce = jnp.sum(wce * mask3, axis=1) / denom
    w1 = p["cls_w1"].astype(jnp.bfloat16)
    h = (jnp.dot(pooled_tok.astype(jnp.bfloat16), w1[:H],
                 preferred_element_type=jnp.float32)
         + jnp.dot(pooled_wce.astype(jnp.bfloat16), w1[H:],
                   preferred_element_type=jnp.float32)
         + p["cls_b1"].astype(jnp.float32))
    h = jnp.maximum(h, 0.0).astype(jnp.bfloat16)
    return (jnp.dot(h, p["cls_w2"].astype(jnp.bfloat16),
                    preferred_element_type=jnp.float32)
            + p["cls_b2"].astype(jnp.float32))


# ----------------------------------------------------------------------------
# Parameter init (raw, torch-like layout) + one-time prep (fused / padded views)
# ----------------------------------------------------------------------------
def init_params(key, vocab, max_len, hidden, ffn, num_classes, cls_hidden=256):
    ks = iter(jax.random.split(key, 24))
    d = lambda i, o: jax.random.normal(next(ks), (i, o), jnp.float32) * 0.02
    z = lambda n: jnp.zeros((n,), jnp.float32)
    o = lambda n: jnp.ones((n,), jnp.float32)
    return {
        "word_emb": d(vocab, hidden),
        "pos_emb": d(max_len, hidden),
        "ln_emb_g": o(hidden), "ln_emb_b": z(hidden),
        "wq": d(hidden, hidden), "bq": z(hidden),
        "wk": d(hidden, hidden), "bk": z(hidden),
        "wv": d(hidden, hidden), "bv": z(hidden),
        "wo": d(hidden, hidden), "bo": z(hidden),
        "ln1_g": o(hidden), "ln1_b": z(hidden),
        "w_ff1": d(hidden, ffn), "b_ff1": z(ffn),
        "w_ff2": d(ffn, hidden), "b_ff2": z(hidden),
        "ln2_g": o(hidden), "ln2_b": z(hidden),
        "wce_matrix": d(vocab, num_classes),            # [vocab_size, num_classes]
        "cls_w1": d(hidden + num_classes, cls_hidden), "cls_b1": z(cls_hidden),
        "cls_w2": d(cls_hidden, num_classes), "cls_b2": z(num_classes),
    }


def prepare_params(p, lane_pad=128):
    """Hoisted, one-time param transforms: QKV weight fusion and lane padding of the
    classifier-head class dimension (only the tiny pooled vectors get padded now)."""
    H = p["word_emb"].shape[1]
    C = p["wce_matrix"].shape[1]
    Cp = _round_up(max(C, lane_pad), lane_pad)
    prep = dict(p)
    prep["w_qkv"] = jnp.concatenate([p["wq"], p["wk"], p["wv"]], axis=1)
    prep["b_qkv"] = jnp.concatenate([p["bq"], p["bk"], p["bv"]], axis=0)
    prep["cls_w1_tok"] = p["cls_w1"][:H]
    prep["cls_w1_wce"] = jnp.pad(p["cls_w1"][H:], ((0, Cp - C), (0, 0)))
    prep["cls_w2_pad"] = jnp.pad(p["cls_w2"], ((0, 0), (0, Cp - C)))
    prep["cls_b2_pad"] = jnp.pad(p["cls_b2"], ((0, Cp - C),))
    return prep


if __name__ == "__main__":
    # Small but lane-aligned: head_dim = 128 keeps every attention column block
    # a full (8,128)-aligned tile, and 3H = 768 keeps all output stores lane-dense.
    B, S, H, FFN, VOCAB, NUM_CLASSES, NUM_HEADS, MAX_LEN = 2, 8, 256, 512, 64, 4, 2, 16

    key = jax.random.PRNGKey(0)
    k_param, k_ids, k_x, k_w, k_b, k_qkv = jax.random.split(key, 6)
    params = init_params(k_param, VOCAB, MAX_LEN, H, FFN, NUM_CLASSES)
    prep = prepare_params(params)

    input_ids = jax.random.randint(k_ids, (B, S), 0, VOCAB, dtype=jnp.int32)
    lengths = jnp.array([S, 5], dtype=jnp.int32)
    attention_mask = (jnp.arange(S)[None, :] < lengths[:, None]).astype(jnp.float32)
    token_ids = input_ids  # WCE lookup uses the same token ids

    fwd = jax.jit(functools.partial(transformer_wce_classifier_forward,
                                    num_heads=NUM_HEADS, num_classes=NUM_CLASSES))
    logits = jax.block_until_ready(fwd(prep, input_ids, attention_mask, token_ids))
    assert logits.shape == (B, NUM_CLASSES)

    ref = reference_forward(prep, input_ids, attention_mask, token_ids,
                            num_heads=NUM_HEADS)
    assert jnp.allclose(logits, ref, atol=1e-2, rtol=1e-2), "mismatch vs reference"

    # --- extra probes for paths the tiny end-to-end config cannot reach ----------
    # multi-k accumulation + K zero-padding + ragged M/N edges in pallas_linear
    xt = jax.random.normal(k_x, (24, 320), jnp.float32)
    wt = jax.random.normal(k_w, (320, 160), jnp.float32) * 0.05
    bt_ = jax.random.normal(k_b, (160,), jnp.float32)
    yt = pallas_linear(xt, wt, bt_, activation="relu", tm=16, tn=128, tk=128)
    yr = _ref_linear(xt, wt, bt_, activation="relu")
    assert jnp.allclose(yt.astype(jnp.float32), yr.astype(jnp.float32),
                        atol=1e-2, rtol=1e-2), "linear tiling mismatch"

    # multi-k-tile online softmax path of the flash attention kernel
    S2, hd = 256, H // NUM_HEADS
    qkv_t = (jax.random.normal(k_qkv, (B * S2, 3 * H), jnp.float32) * 0.5
             ).astype(jnp.bfloat16)
    mask2 = (jnp.arange(S2)[None, :] < jnp.array([S2, 100])[:, None]).astype(jnp.float32)
    bias2 = (1.0 - mask2)[:, None, :] * -1e9
    ctx_p = pallas_flash_attention(qkv_t, bias2, B, S2, NUM_HEADS, hd,
                                   float(hd) ** -0.5, q_tile=128, k_tile=128)
    ctx_r = _ref_attention(qkv_t, bias2, B, S2, NUM_HEADS, hd, float(hd) ** -0.5)
    assert jnp.allclose(ctx_p.astype(jnp.float32), ctx_r.astype(jnp.float32),
                        atol=2e-2, rtol=2e-2), "attention tiling mismatch"

    print("KERNEL_OK")
</pallas_src>

<mosaic_0001>
module attributes {stable_mosaic.version = 11 : i64} {
  func.func @_linear_kernel(%arg0: i32, %arg1: i32, %arg2: i32, %arg3: memref<16x256xbf16, #tpu.memory_space<vmem>>, %arg4: memref<256x512xbf16, #tpu.memory_space<vmem>>, %arg5: memref<1x512xf32, #tpu.memory_space<vmem>>, %arg6: memref<16x512xbf16, #tpu.memory_space<vmem>>, %arg7: memref<16x512xf32, #tpu.memory_space<vmem>>) attributes {dimension_semantics = [#tpu.dimension_semantics<parallel>, #tpu.dimension_semantics<parallel>, #tpu.dimension_semantics<arbitrary>], iteration_bounds = array<i64: 1, 2, 1>, scalar_prefetch = 0 : i64, scratch_operands = 1 : i64, tpu.core_type = #tpu.core_type<tc>, window_params = [{transform_indices = @transform_0, window_bounds = array<i64: 16, 256>}, {transform_indices = @transform_1, window_bounds = array<i64: 256, 512>}, {transform_indices = @transform_2, window_bounds = array<i64: 1, 512>}, {transform_indices = @transform_3, window_bounds = array<i64: 16, 512>}]} {
    %c0_i32 = arith.constant 0 : i32
    %0 = arith.cmpi eq, %arg2, %c0_i32 : i32
    %1 = arith.extui %0 : i1 to i32
    %c0_i32_0 = arith.constant 0 : i32
    %2 = arith.cmpi ne, %1, %c0_i32_0 : i32
    scf.if %2 {
      %cst_10 = arith.constant 0.000000e+00 : f32
      %12 = vector.broadcast %cst_10 : f32 to vector<16x512xf32>
      %c0_11 = arith.constant 0 : index
      %c0_12 = arith.constant 0 : index
      %13 = vector.load %arg7[%c0_11, %c0_12] : memref<16x512xf32, #tpu.memory_space<vmem>>, vector<16x512xf32>
      tpu.vector_store %arg7[%c0_11, %c0_12], %12 {strides = array<i32>} : memref<16x512xf32, #tpu.memory_space<vmem>>, vector<16x512xf32>,
    } else {
    }
    %c0 = arith.constant 0 : index
    %c0_1 = arith.constant 0 : index
    %3 = vector.load %arg7[%c0, %c0_1] : memref<16x512xf32, #tpu.memory_space<vmem>>, vector<16x512xf32>
    %c0_2 = arith.constant 0 : index
    %c0_3 = arith.constant 0 : index
    %4 = vector.load %arg3[%c0_2, %c0_3] : memref<16x256xbf16, #tpu.memory_space<vmem>>, vector<16x256xbf16>
    %c0_4 = arith.constant 0 : index
    %c0_5 = arith.constant 0 : index
    %5 = vector.load %arg4[%c0_4, %c0_5] : memref<256x512xbf16, #tpu.memory_space<vmem>>, vector<256x512xbf16>
    %cst = arith.constant dense<0.000000e+00> : vector<16x512xf32>
    %6 = tpu.matmul %4, %5, %cst {dimension_numbers = #tpu.dot_dimension_numbers<[1], [0], [0], [1], [0, 0, 1, 1], [], []>} : vector<16x256xbf16>, vector<256x512xbf16>, vector<16x512xf32> -> vector<16x512xf32>
    %7 = arith.addf %3, %6 : vector<16x512xf32>
    %c0_6 = arith.constant 0 : index
    %c0_7 = arith.constant 0 : index
    %8 = vector.load %arg7[%c0_6, %c0_7] : memref<16x512xf32, #tpu.memory_space<vmem>>, vector<16x512xf32>
    tpu.vector_store %arg7[%c0_6, %c0_7], %7 {strides = array<i32>} : memref<16x512xf32, #tpu.memory_space<vmem>>, vector<16x512xf32>,
    %c0_i32_8 = arith.constant 0 : i32
    %9 = arith.cmpi eq, %arg2, %c0_i32_8 : i32
    %10 = arith.extui %9 : i1 to i32
    %c0_i32_9 = arith.constant 0 : i32
    %11 = arith.cmpi ne, %10, %c0_i32_9 : i32
    scf.if %11 {
      %c0_10 = arith.constant 0 : index
      %c0_11 = arith.constant 0 : index
      %12 = vector.load %arg7[%c0_10, %c0_11] : memref<16x512xf32, #tpu.memory_space<vmem>>, vector<16x512xf32>
      %c0_12 = arith.constant 0 : index
      %c0_13 = arith.constant 0 : index
      %13 = vector.load %arg5[%c0_12, %c0_13] : memref<1x512xf32, #tpu.memory_space<vmem>>, vector<1x512xf32>
      %14 = vector.broadcast %13 : vector<1x512xf32> to vector<16x512xf32>
      %15 = arith.addf %12, %14 : vector<16x512xf32>
      %16 = arith.truncf %15 : vector<16x512xf32> to vector<16x512xbf16>
      %c0_14 = arith.constant 0 : index
      %c0_15 = arith.constant 0 : index
      %17 = vector.load %arg6[%c0_14, %c0_15] : memref<16x512xbf16, #tpu.memory_space<vmem>>, vector<16x512xbf16>
      tpu.vector_store %arg6[%c0_14, %c0_15], %16 {strides = array<i32>} : memref<16x512xbf16, #tpu.memory_space<vmem>>, vector<16x512xbf16>,
    } else {
    }
    return
  }
  func.func @transform_0(%arg0: i32, %arg1: i32, %arg2: i32) -> (i32, i32) {
    %c0_i32 = arith.constant 0 : i32
    return %arg0, %arg2 : i32, i32
  }
  func.func @transform_1(%arg0: i32, %arg1: i32, %arg2: i32) -> (i32, i32) {
    %c0_i32 = arith.constant 0 : i32
    return %arg2, %arg1 : i32, i32
  }
  func.func @transform_2(%arg0: i32, %arg1: i32, %arg2: i32) -> (i32, i32) {
    %c0_i32 = arith.constant 0 : i32
    %c0_i32_0 = arith.constant 0 : i32
    return %c0_i32, %arg1 : i32, i32
  }
  func.func @transform_3(%arg0: i32, %arg1: i32, %arg2: i32) -> (i32, i32) {
    %c0_i32 = arith.constant 0 : i32
    return %arg0, %arg1 : i32, i32
  }
}

module attributes {stable_mosaic.version = 11 : i64} {
  func.func @_flash_attn_kernel(%arg0: i32, %arg1: i32, %arg2: i32, %arg3: i32, %arg4: memref<8x128xbf16, #tpu.memory_space<vmem>>, %arg5: memref<8x128xbf16, #tpu.memory_space<vmem>>, %arg6: memref<8x128xbf16, #tpu.memory_space<vmem>>, %arg7: memref<1x1x8xf32, #tpu.memory_space<vmem>>, %arg8: memref<8x128xbf16, #tpu.memory_space<vmem>>, %arg9: memref<8x1xf32, #tpu.memory_space<vmem>>, %arg10: memref<8x1xf32, #tpu.memory_space<vmem>>, %arg11: memref<8x128xf32, #tpu.memory_space<vmem>>) attributes {dimension_semantics = [#tpu.dimension_semantics<parallel>, #tpu.dimension_semantics<parallel>, #tpu.dimension_semantics<parallel>, #tpu.dimension_semantics<arbitrary>], iteration_bounds = array<i64: 2, 2, 1, 1>, scalar_prefetch = 0 : i64, scratch_operands = 3 : i64, tpu.core_type = #tpu.core_type<tc>, window_params = [{transform_indices = @transform_0, window_bounds = array<i64: 8, 128>}, {transform_indices = @transform_1, window_bounds = array<i64: 8, 128>}, {transform_indices = @transform_2, window_bounds = array<i64: 8, 128>}, {transform_indices = @transform_3, window_bounds = array<i64: 1, 1, 8>}, {transform_indices = @transform_4, window_bounds = array<i64: 8, 128>}]} {
    %c0_i32 = arith.constant 0 : i32
    %0 = arith.cmpi eq, %arg3, %c0_i32 : i32
    %1 = arith.extui %0 : i1 to i32
    %c0_i32_0 = arith.constant 0 : i32
    %2 = arith.cmpi ne, %1, %c0_i32_0 : i32
    scf.if %2 {
      %cst_27 = arith.constant -1.000000e+30 : f32
      %39 = vector.broadcast %cst_27 : f32 to vector<8x1xf32>
      %c0_28 = arith.constant 0 : index
      %c0_29 = arith.constant 0 : index
      %40 = vector.load %arg9[%c0_28, %c0_29] : memref<8x1xf32, #tpu.memory_space<vmem>>, vector<8x1xf32>
      tpu.vector_store %arg9[%c0_28, %c0_29], %39 {strides = array<i32>} : memref<8x1xf32, #tpu.memory_space<vmem>>, vector<8x1xf32>,
      %cst_30 = arith.constant 0.000000e+00 : f32
      %41 = vector.broadcast %cst_30 : f32 to vector<8x1xf32>
      %c0_31 = arith.constant 0 : index
      %c0_32 = arith.constant 0 : index
      %42 = vector.load %arg10[%c0_31, %c0_32] : memref<8x1xf32, #tpu.memory_space<vmem>>, vector<8x1xf32>
      tpu.vector_store %arg10[%c0_31, %c0_32], %41 {strides = array<i32>} : memref<8x1xf32, #tpu.memory_space<vmem>>, vector<8x1xf32>,
      %cst_33 = arith.constant 0.000000e+00 : f32
      %43 = vector.broadcast %cst_33 : f32 to vector<8x128xf32>
      %c0_34 = arith.constant 0 : index
      %c0_35 = arith.constant 0 : index
      %44 = vector.load %arg11[%c0_34, %c0_35] : memref<8x128xf32, #tpu.memory_space<vmem>>, vector<8x128xf32>
      tpu.vector_store %arg11[%c0_34, %c0_35], %43 {strides = array<i32>} : memref<8x128xf32, #tpu.memory_space<vmem>>, vector<8x128xf32>,
    } else {
    }
    %c0 = arith.constant 0 : index
    %c0_1 = arith.constant 0 : index
    %3 = vector.load %arg4[%c0, %c0_1] : memref<8x128xbf16, #tpu.memory_space<vmem>>, vector<8x128xbf16>
    %c0_2 = arith.constant 0 : index
    %c0_3 = arith.constant 0 : index
    %4 = vector.load %arg5[%c0_2, %c0_3] : memref<8x128xbf16, #tpu.memory_space<vmem>>, vector<8x128xbf16>
    %c0_4 = arith.constant 0 : index
    %c0_5 = arith.constant 0 : index
    %5 = vector.load %arg6[%c0_4, %c0_5] : memref<8x128xbf16, #tpu.memory_space<vmem>>, vector<8x128xbf16>
    %cst = arith.constant dense<0.000000e+00> : vector<8x8xf32>
    %6 = tpu.matmul %3, %4, %cst {dimension_numbers = #tpu.dot_dimension_numbers<[1], [1], [0], [0], [0, 0, 1, 0], [], []>} : vector<8x128xbf16>, vector<8x128xbf16>, vector<8x8xf32> -> vector<8x8xf32>
    %cst_6 = arith.constant 0.0883883461 : f32
    %7 = vector.broadcast %cst_6 : f32 to vector<8x8xf32>
    %8 = arith.mulf %6, %7 : vector<8x8xf32>
    %c0_7 = arith.constant 0 : index
    %c0_8 = arith.constant 0 : index
    %c0_9 = arith.constant 0 : index
    %9 = vector.load %arg7[%c0_7, %c0_8, %c0_9] : memref<1x1x8xf32, #tpu.memory_space<vmem>>, vector<1x1x8xf32>
    %10 = vector.shape_cast %9 : vector<1x1x8xf32> to vector<1x8xf32>
    %11 = vector.broadcast %10 : vector<1x8xf32> to vector<8x8xf32>
    %12 = arith.addf %8, %11 : vector<8x8xf32>
    %c0_10 = arith.constant 0 : index
    %c0_11 = arith.constant 0 : index
    %13 = vector.load %arg9[%c0_10, %c0_11] : memref<8x1xf32, #tpu.memory_space<vmem>>, vector<8x1xf32>
    %cst_12 = arith.constant dense<0xFF800000> : vector<8xf32>
    %14 = vector.multi_reduction <maximumf>, %12, %cst_12 [1] : vector<8x8xf32> to vector<8xf32>
    %15 = vector.shape_cast %14 : vector<8xf32> to vector<8x1xf32>
    %16 = arith.maximumf %13, %15 : vector<8x1xf32>
    %17 = arith.subf %13, %16 : vector<8x1xf32>
    %18 = math.exp %17 : vector<8x1xf32>
    %19 = vector.broadcast %16 : vector<8x1xf32> to vector<8x8xf32>
    %20 = arith.subf %12, %19 : vector<8x8xf32>
    %21 = math.exp %20 : vector<8x8xf32>
    %c0_13 = arith.constant 0 : index
    %c0_14 = arith.constant 0 : index
    %22 = vector.load %arg10[%c0_13, %c0_14] : memref<8x1xf32, #tpu.memory_space<vmem>>, vector<8x1xf32>
    %23 = arith.mulf %18, %22 : vector<8x1xf32>
    %cst_15 = arith.constant dense<0.000000e+00> : vector<8xf32>
    %24 = vector.multi_reduction <add>, %21, %cst_15 [1] : vector<8x8xf32> to vector<8xf32>
    %25 = vector.shape_cast %24 : vector<8xf32> to vector<8x1xf32>
    %26 = arith.addf %23, %25 : vector<8x1xf32>
    %c0_16 = arith.constant 0 : index
    %c0_17 = arith.constant 0 : index
    %27 = vector.load %arg10[%c0_16, %c0_17] : memref<8x1xf32, #tpu.memory_space<vmem>>, vector<8x1xf32>
    tpu.vector_store %arg10[%c0_16, %c0_17], %26 {strides = array<i32>} : memref<8x1xf32, #tpu.memory_space<vmem>>, vector<8x1xf32>,
    %c0_18 = arith.constant 0 : index
    %c0_19 = arith.constant 0 : index
    %28 = vector.load %arg11[%c0_18, %c0_19] : memref<8x128xf32, #tpu.memory_space<vmem>>, vector<8x128xf32>
    %29 = vector.broadcast %18 : vector<8x1xf32> to vector<8x128xf32>
    %30 = arith.mulf %29, %28 : vector<8x128xf32>
    %31 = arith.truncf %21 : vector<8x8xf32> to vector<8x8xbf16>
    %cst_20 = arith.constant dense<0.000000e+00> : vector<8x128xf32>
    %32 = tpu.matmul %31, %5, %cst_20 {dimension_numbers = #tpu.dot_dimension_numbers<[1], [0], [0], [1], [0, 0, 1, 1], [], []>} : vector<8x8xbf16>, vector<8x128xbf16>, vector<8x128xf32> -> vector<8x128xf32>
    %33 = arith.addf %30, %32 : vector<8x128xf32>
    %c0_21 = arith.constant 0 : index
    %c0_22 = arith.constant 0 : index
    %34 = vector.load %arg11[%c0_21, %c0_22] : memref<8x128xf32, #tpu.memory_space<vmem>>, vector<8x128xf32>
    tpu.vector_store %arg11[%c0_21, %c0_22], %33 {strides = array<i32>} : memref<8x128xf32, #tpu.memory_space<vmem>>, vector<8x128xf32>,
    %c0_23 = arith.constant 0 : index
    %c0_24 = arith.constant 0 : index
    %35 = vector.load %arg9[%c0_23, %c0_24] : memref<8x1xf32, #tpu.memory_space<vmem>>, vector<8x1xf32>
    tpu.vector_store %arg9[%c0_23, %c0_24], %16 {strides = array<i32>} : memref<8x1xf32, #tpu.memory_space<vmem>>, vector<8x1xf32>,
    %c0_i32_25 = arith.constant 0 : i32
    %36 = arith.cmpi eq, %arg3, %c0_i32_25 : i32
    %37 = arith.extui %36 : i1 to i32
    %c0_i32_26 = arith.constant 0 : i32
    %38 = arith.cmpi ne, %37, %c0_i32_26 : i32
    scf.if %38 {
      %c0_27 = arith.constant 0 : index
      %c0_28 = arith.constant 0 : index
      %39 = vector.load %arg10[%c0_27, %c0_28] : memref<8x1xf32, #tpu.memory_space<vmem>>, vector<8x1xf32>
      %40 = tpu.reciprocal %39 {approx = true} : vector<8x1xf32> -> vector<8x1xf32>
      %c0_29 = arith.constant 0 : index
      %c0_30 = arith.constant 0 : index
      %41 = vector.load %arg11[%c0_29, %c0_30] : memref<8x128xf32, #tpu.memory_space<vmem>>, vector<8x128xf32>
      %42 = vector.broadcast %40 : vector<8x1xf32> to vector<8x128xf32>
      %43 = arith.mulf %41, %42 : vector<8x128xf32>
      %44 = arith.truncf %43 : vector<8x128xf32> to vector<8x128xbf16>
      %c0_31 = arith.constant 0 : index
      %c0_32 = arith.constant 0 : index
      %45 = vector.load %arg8[%c0_31, %c0_32] : memref<8x128xbf16, #tpu.memory_space<vmem>>, vector<8x128xbf16>
      tpu.vector_store %arg8[%c0_31, %c0_32], %44 {strides = array<i32>} : memref<8x128xbf16, #tpu.memory_space<vmem>>, vector<8x128xbf16>,
    } else {
    }
    return
  }
  func.func @transform_0(%arg0: i32, %arg1: i32, %arg2: i32, %arg3: i32) -> (i32, i32) {
    %c1_i32 = arith.constant 1 : i32
    %0 = arith.muli %arg0, %c1_i32 : i32
    %1 = arith.addi %0, %arg2 : i32
    %c0_i32 = arith.constant 0 : i32
    return %1, %arg1 : i32, i32
  }
  func.func @transform_1(%arg0: i32, %arg1: i32, %arg2: i32, %arg3: i32) -> (i32, i32) {
    %c1_i32 = arith.constant 1 : i32
    %0 = arith.muli %arg0, %c1_i32 : i32
    %1 = arith.addi %0, %arg3 : i32
    %c2_i32 = arith.constant 2 : i32
    %2 = arith.addi %c2_i32, %arg1 : i32
    %c0_i32 = arith.constant 0 : i32
    return %1, %2 : i32, i32
  }
  func.func @transform_2(%arg0: i32, %arg1: i32, %arg2: i32, %arg3: i32) -> (i32, i32) {
    %c1_i32 = arith.constant 1 : i32
    %0 = arith.muli %arg0, %c1_i32 : i32
    %1 = arith.addi %0, %arg3 : i32
    %c4_i32 = arith.constant 4 : i32
    %2 = arith.addi %c4_i32, %arg1 : i32
    %c0_i32 = arith.constant 0 : i32
    return %1, %2 : i32, i32
  }
  func.func @transform_3(%arg0: i32, %arg1: i32, %arg2: i32, %arg3: i32) -> (i32, i32, i32) {
    %c0_i32 = arith.constant 0 : i32
    %c0_i32_0 = arith.constant 0 : i32
    return %arg0, %c0_i32, %arg3 : i32, i32, i32
  }
  func.func @transform_4(%arg0: i32, %arg1: i32, %arg2: i32, %arg3: i32) -> (i32, i32) {
    %c1_i32 = arith.constant 1 : i32
    %0 = arith.muli %arg0, %c1_i32 : i32
    %1 = arith.addi %0, %arg2 : i32
    %c0_i32 = arith.constant 0 : i32
    return %1, %arg1 : i32, i32
  }
}

module attributes {stable_mosaic.version = 11 : i64} {
  func.func @_linear_res_ln_kernel(%arg0: i32, %arg1: i32, %arg2: i32, %arg3: memref<16x256xbf16, #tpu.memory_space<vmem>>, %arg4: memref<256x256xbf16, #tpu.memory_space<vmem>>, %arg5: memref<1x256xf32, #tpu.memory_space<vmem>>, %arg6: memref<16x256xbf16, #tpu.memory_space<vmem>>, %arg7: memref<1x256xf32, #tpu.memory_space<vmem>>, %arg8: memref<1x256xf32, #tpu.memory_space<vmem>>, %arg9: memref<16x256xbf16, #tpu.memory_space<vmem>>, %arg10: memref<16x256xf32, #tpu.memory_space<vmem>>) attributes {dimension_semantics = [#tpu.dimension_semantics<parallel>, #tpu.dimension_semantics<parallel>, #tpu.dimension_semantics<arbitrary>], iteration_bounds = array<i64: 1, 1, 1>, scalar_prefetch = 0 : i64, scratch_operands = 1 : i64, tpu.core_type = #tpu.core_type<tc>, window_params = [{transform_indices = @transform_0, window_bounds = array<i64: 16, 256>}, {transform_indices = @transform_1, window_bounds = array<i64: 256, 256>}, {transform_indices = @transform_2, window_bounds = array<i64: 1, 256>}, {transform_indices = @transform_3, window_bounds = array<i64: 16, 256>}, {transform_indices = @transform_4, window_bounds = array<i64: 1, 256>}, {transform_indices = @transform_5, window_bounds = array<i64: 1, 256>}, {transform_indices = @transform_6, window_bounds = array<i64: 16, 256>}]} {
    %c0_i32 = arith.constant 0 : i32
    %0 = arith.cmpi eq, %arg2, %c0_i32 : i32
    %1 = arith.extui %0 : i1 to i32
    %c0_i32_0 = arith.constant 0 : i32
    %2 = arith.cmpi ne, %1, %c0_i32_0 : i32
    scf.if %2 {
      %cst_10 = arith.constant 0.000000e+00 : f32
      %12 = vector.broadcast %cst_10 : f32 to vector<16x256xf32>
      %c0_11 = arith.constant 0 : index
      %c0_12 = arith.constant 0 : index
      %13 = vector.load %arg10[%c0_11, %c0_12] : memref<16x256xf32, #tpu.memory_space<vmem>>, vector<16x256xf32>
      tpu.vector_store %arg10[%c0_11, %c0_12], %12 {strides = array<i32>} : memref<16x256xf32, #tpu.memory_space<vmem>>, vector<16x256xf32>,
    } else {
    }
    %c0 = arith.constant 0 : index
    %c0_1 = arith.constant 0 : index
    %3 = vector.load %arg10[%c0, %c0_1] : memref<16x256xf32, #tpu.memory_space<vmem>>, vector<16x256xf32>
    %c0_2 = arith.constant 0 : index
    %c0_3 = arith.constant 0 : index
    %4 = vector.load %arg3[%c0_2, %c0_3] : memref<16x256xbf16, #tpu.memory_space<vmem>>, vector<16x256xbf16>
    %c0_4 = arith.constant 0 : index
    %c0_5 = arith.constant 0 : index
    %5 = vector.load %arg4[%c0_4, %c0_5] : memref<256x256xbf16, #tpu.memory_space<vmem>>, vector<256x256xbf16>
    %cst = arith.constant dense<0.000000e+00> : vector<16x256xf32>
    %6 = tpu.matmul %4, %5, %cst {dimension_numbers = #tpu.dot_dimension_numbers<[1], [0], [0], [1], [0, 0, 1, 1], [], []>} : vector<16x256xbf16>, vector<256x256xbf16>, vector<16x256xf32> -> vector<16x256xf32>
    %7 = arith.addf %3, %6 : vector<16x256xf32>
    %c0_6 = arith.constant 0 : index
    %c0_7 = arith.constant 0 : index
    %8 = vector.load %arg10[%c0_6, %c0_7] : memref<16x256xf32, #tpu.memory_space<vmem>>, vector<16x256xf32>
    tpu.vector_store %arg10[%c0_6, %c0_7], %7 {strides = array<i32>} : memref<16x256xf32, #tpu.memory_space<vmem>>, vector<16x256xf32>,
    %c0_i32_8 = arith.constant 0 : i32
    %9 = arith.cmpi eq, %arg2, %c0_i32_8 : i32
    %10 = arith.extui %9 : i1 to i32
    %c0_i32_9 = arith.constant 0 : i32
    %11 = arith.cmpi ne, %10, %c0_i32_9 : i32
    scf.if %11 {
      %c0_10 = arith.constant 0 : index
      %c0_11 = arith.constant 0 : index
      %12 = vector.load %arg10[%c0_10, %c0_11] : memref<16x256xf32, #tpu.memory_space<vmem>>, vector<16x256xf32>
      %c0_12 = arith.constant 0 : index
      %c0_13 = arith.constant 0 : index
      %13 = vector.load %arg5[%c0_12, %c0_13] : memref<1x256xf32, #tpu.memory_space<vmem>>, vector<1x256xf32>
      %14 = vector.broadcast %13 : vector<1x256xf32> to vector<16x256xf32>
      %15 = arith.addf %12, %14 : vector<16x256xf32>
      %c0_14 = arith.constant 0 : index
      %c0_15 = arith.constant 0 : index
      %16 = vector.load %arg6[%c0_14, %c0_15] : memref<16x256xbf16, #tpu.memory_space<vmem>>, vector<16x256xbf16>
      %17 = arith.extf %16 : vector<16x256xbf16> to vector<16x256xf32>
      %18 = arith.addf %15, %17 : vector<16x256xf32>
      %cst_16 = arith.constant dense<0.000000e+00> : vector<16xf32>
      %19 = vector.multi_reduction <add>, %18, %cst_16 [1] : vector<16x256xf32> to vector<16xf32>
      %20 = vector.shape_cast %19 : vector<16xf32> to vector<16x1xf32>
      %cst_17 = arith.constant 2.560000e+02 : f32
      %21 = vector.broadcast %cst_17 : f32 to vector<16x1xf32>
      %22 = arith.divf %20, %21 : vector<16x1xf32>
      %23 = vector.broadcast %22 : vector<16x1xf32> to vector<16x256xf32>
      %24 = arith.subf %18, %23 : vector<16x256xf32>
      %25 = arith.mulf %24, %24 : vector<16x256xf32>
      %cst_18 = arith.constant dense<0.000000e+00> : vector<16xf32>
      %26 = vector.multi_reduction <add>, %25, %cst_18 [1] : vector<16x256xf32> to vector<16xf32>
      %27 = vector.shape_cast %26 : vector<16xf32> to vector<16x1xf32>
      %cst_19 = arith.constant 2.560000e+02 : f32
      %28 = vector.broadcast %cst_19 : f32 to vector<16x1xf32>
      %29 = arith.divf %27, %28 : vector<16x1xf32>
      %30 = vector.broadcast %22 : vector<16x1xf32> to vector<16x256xf32>
      %31 = arith.subf %18, %30 : vector<16x256xf32>
      %cst_20 = arith.constant 9.99999996E-13 : f32
      %32 = vector.broadcast %cst_20 : f32 to vector<16x1xf32>
      %33 = arith.addf %29, %32 : vector<16x1xf32>
      %34 = math.rsqrt %33 : vector<16x1xf32>
      %35 = vector.broadcast %34 : vector<16x1xf32> to vector<16x256xf32>
      %36 = arith.mulf %31, %35 : vector<16x256xf32>
      %c0_21 = arith.constant 0 : index
      %c0_22 = arith.constant 0 : index
      %37 = vector.load %arg7[%c0_21, %c0_22] : memref<1x256xf32, #tpu.memory_space<vmem>>, vector<1x256xf32>
      %38 = vector.broadcast %37 : vector<1x256xf32> to vector<16x256xf32>
      %39 = arith.mulf %36, %38 : vector<16x256xf32>
      %c0_23 = arith.constant 0 : index
      %c0_24 = arith.constant 0 : index
      %40 = vector.load %arg8[%c0_23, %c0_24] : memref<1x256xf32, #tpu.memory_space<vmem>>, vector<1x256xf32>
      %41 = vector.broadcast %40 : vector<1x256xf32> to vector<16x256xf32>
      %42 = arith.addf %39, %41 : vector<16x256xf32>
      %43 = arith.truncf %42 : vector<16x256xf32> to vector<16x256xbf16>
      %c0_25 = arith.constant 0 : index
      %c0_26 = arith.constant 0 : index
      %44 = vector.load %arg9[%c0_25, %c0_26] : memref<16x256xbf16, #tpu.memory_space<vmem>>, vector<16x256xbf16>
      tpu.vector_store %arg9[%c0_25, %c0_26], %43 {strides = array<i32>} : memref<16x256xbf16, #tpu.memory_space<vmem>>, vector<16x256xbf16>,
    } else {
    }
    return
  }
  func.func @transform_0(%arg0: i32, %arg1: i32, %arg2: i32) -> (i32, i32) {
    %c0_i32 = arith.constant 0 : i32
    return %arg0, %arg2 : i32, i32
  }
  func.func @transform_1(%arg0: i32, %arg1: i32, %arg2: i32) -> (i32, i32) {
    %c0_i32 = arith.constant 0 : i32
    return %arg2, %arg1 : i32, i32
  }
  func.func @transform_2(%arg0: i32, %arg1: i32, %arg2: i32) -> (i32, i32) {
    %c0_i32 = arith.constant 0 : i32
    %c0_i32_0 = arith.constant 0 : i32
    return %c0_i32, %arg1 : i32, i32
  }
  func.func @transform_3(%arg0: i32, %arg1: i32, %arg2: i32) -> (i32, i32) {
    %c0_i32 = arith.constant 0 : i32
    return %arg0, %arg1 : i32, i32
  }
  func.func @transform_4(%arg0: i32, %arg1: i32, %arg2: i32) -> (i32, i32) {
    %c0_i32 = arith.constant 0 : i32
    %c0_i32_0 = arith.constant 0 : i32
    return %c0_i32, %arg1 : i32, i32
  }
  func.func @transform_5(%arg0: i32, %arg1: i32, %arg2: i32) -> (i32, i32) {
    %c0_i32 = arith.constant 0 : i32
    %c0_i32_0 = arith.constant 0 : i32
    return %c0_i32, %arg1 : i32, i32
  }
  func.func @transform_6(%arg0: i32, %arg1: i32, %arg2: i32) -> (i32, i32) {
    %c0_i32 = arith.constant 0 : i32
    return %arg0, %arg1 : i32, i32
  }
}

module attributes {stable_mosaic.version = 11 : i64} {
  func.func @_linear_kernel(%arg0: i32, %arg1: i32, %arg2: i32, %arg3: memref<16x256xbf16, #tpu.memory_space<vmem>>, %arg4: memref<256x512xbf16, #tpu.memory_space<vmem>>, %arg5: memref<1x512xf32, #tpu.memory_space<vmem>>, %arg6: memref<16x512xbf16, #tpu.memory_space<vmem>>, %arg7: memref<16x512xf32, #tpu.memory_space<vmem>>) attributes {dimension_semantics = [#tpu.dimension_semantics<parallel>, #tpu.dimension_semantics<parallel>, #tpu.dimension_semantics<arbitrary>], iteration_bounds = array<i64: 1, 1, 1>, scalar_prefetch = 0 : i64, scratch_operands = 1 : i64, tpu.core_type = #tpu.core_type<tc>, window_params = [{transform_indices = @transform_0, window_bounds = array<i64: 16, 256>}, {transform_indices = @transform_1, window_bounds = array<i64: 256, 512>}, {transform_indices = @transform_2, window_bounds = array<i64: 1, 512>}, {transform_indices = @transform_3, window_bounds = array<i64: 16, 512>}]} {
    %c0_i32 = arith.constant 0 : i32
    %0 = arith.cmpi eq, %arg2, %c0_i32 : i32
    %1 = arith.extui %0 : i1 to i32
    %c0_i32_0 = arith.constant 0 : i32
    %2 = arith.cmpi ne, %1, %c0_i32_0 : i32
    scf.if %2 {
      %cst_10 = arith.constant 0.000000e+00 : f32
      %12 = vector.broadcast %cst_10 : f32 to vector<16x512xf32>
      %c0_11 = arith.constant 0 : index
      %c0_12 = arith.constant 0 : index
      %13 = vector.load %arg7[%c0_11, %c0_12] : memref<16x512xf32, #tpu.memory_space<vmem>>, vector<16x512xf32>
      tpu.vector_store %arg7[%c0_11, %c0_12], %12 {strides = array<i32>} : memref<16x512xf32, #tpu.memory_space<vmem>>, vector<16x512xf32>,
    } else {
    }
    %c0 = arith.constant 0 : index
    %c0_1 = arith.constant 0 : index
    %3 = vector.load %arg7[%c0, %c0_1] : memref<16x512xf32, #tpu.memory_space<vmem>>, vector<16x512xf32>
    %c0_2 = arith.constant 0 : index
    %c0_3 = arith.constant 0 : index
    %4 = vector.load %arg3[%c0_2, %c0_3] : memref<16x256xbf16, #tpu.memory_space<vmem>>, vector<16x256xbf16>
    %c0_4 = arith.constant 0 : index
    %c0_5 = arith.constant 0 : index
    %5 = vector.load %arg4[%c0_4, %c0_5] : memref<256x512xbf16, #tpu.memory_space<vmem>>, vector<256x512xbf16>
    %cst = arith.constant dense<0.000000e+00> : vector<16x512xf32>
    %6 = tpu.matmul %4, %5, %cst {dimension_numbers = #tpu.dot_dimension_numbers<[1], [0], [0], [1], [0, 0, 1, 1], [], []>} : vector<16x256xbf16>, vector<256x512xbf16>, vector<16x512xf32> -> vector<16x512xf32>
    %7 = arith.addf %3, %6 : vector<16x512xf32>
    %c0_6 = arith.constant 0 : index
    %c0_7 = arith.constant 0 : index
    %8 = vector.load %arg7[%c0_6, %c0_7] : memref<16x512xf32, #tpu.memory_space<vmem>>, vector<16x512xf32>
    tpu.vector_store %arg7[%c0_6, %c0_7], %7 {strides = array<i32>} : memref<16x512xf32, #tpu.memory_space<vmem>>, vector<16x512xf32>,
    %c0_i32_8 = arith.constant 0 : i32
    %9 = arith.cmpi eq, %arg2, %c0_i32_8 : i32
    %10 = arith.extui %9 : i1 to i32
    %c0_i32_9 = arith.constant 0 : i32
    %11 = arith.cmpi ne, %10, %c0_i32_9 : i32
    scf.if %11 {
      %c0_10 = arith.constant 0 : index
      %c0_11 = arith.constant 0 : index
      %12 = vector.load %arg7[%c0_10, %c0_11] : memref<16x512xf32, #tpu.memory_space<vmem>>, vector<16x512xf32>
      %c0_12 = arith.constant 0 : index
      %c0_13 = arith.constant 0 : index
      %13 = vector.load %arg5[%c0_12, %c0_13] : memref<1x512xf32, #tpu.memory_space<vmem>>, vector<1x512xf32>
      %14 = vector.broadcast %13 : vector<1x512xf32> to vector<16x512xf32>
      %15 = arith.addf %12, %14 : vector<16x512xf32>
      %16 = arith.mulf %15, %15 : vector<16x512xf32>
      %17 = arith.mulf %15, %16 : vector<16x512xf32>
      %cst_14 = arith.constant 4.471500e-02 : f32
      %18 = vector.broadcast %cst_14 : f32 to vector<16x512xf32>
      %19 = arith.mulf %18, %17 : vector<16x512xf32>
      %20 = arith.addf %15, %19 : vector<16x512xf32>
      %cst_15 = arith.constant 0.797884583 : f32
      %21 = vector.broadcast %cst_15 : f32 to vector<16x512xf32>
      %22 = arith.mulf %21, %20 : vector<16x512xf32>
      %23 = math.tanh %22 : vector<16x512xf32>
      %cst_16 = arith.constant 1.000000e+00 : f32
      %24 = vector.broadcast %cst_16 : f32 to vector<16x512xf32>
      %25 = arith.addf %24, %23 : vector<16x512xf32>
      %cst_17 = arith.constant 5.000000e-01 : f32
      %26 = vector.broadcast %cst_17 : f32 to vector<16x512xf32>
      %27 = arith.mulf %26, %25 : vector<16x512xf32>
      %28 = arith.mulf %15, %27 : vector<16x512xf32>
      %29 = arith.truncf %28 : vector<16x512xf32> to vector<16x512xbf16>
      %c0_18 = arith.constant 0 : index
      %c0_19 = arith.constant 0 : index
      %30 = vector.load %arg6[%c0_18, %c0_19] : memref<16x512xbf16, #tpu.memory_space<vmem>>, vector<16x512xbf16>
      tpu.vector_store %arg6[%c0_18, %c0_19], %29 {strides = array<i32>} : memref<16x512xbf16, #tpu.memory_space<vmem>>, vector<16x512xbf16>,
    } else {
    }
    return
  }
  func.func @transform_0(%arg0: i32, %arg1: i32, %arg2: i32) -> (i32, i32) {
    %c0_i32 = arith.constant 0 : i32
    return %arg0, %arg2 : i32, i32
  }
  func.func @transform_1(%arg0: i32, %arg1: i32, %arg2: i32) -> (i32, i32) {
    %c0_i32 = arith.constant 0 : i32
    return %arg2, %arg1 : i32, i32
  }
  func.func @transform_2(%arg0: i32, %arg1: i32, %arg2: i32) -> (i32, i32) {
    %c0_i32 = arith.constant 0 : i32
    %c0_i32_0 = arith.constant 0 : i32
    return %c0_i32, %arg1 : i32, i32
  }
  func.func @transform_3(%arg0: i32, %arg1: i32, %arg2: i32) -> (i32, i32) {
    %c0_i32 = arith.constant 0 : i32
    return %arg0, %arg1 : i32, i32
  }
}

module attributes {stable_mosaic.version = 11 : i64} {
  func.func @_linear_res_ln_kernel(%arg0: i32, %arg1: i32, %arg2: i32, %arg3: memref<16x512xbf16, #tpu.memory_space<vmem>>, %arg4: memref<512x256xbf16, #tpu.memory_space<vmem>>, %arg5: memref<1x256xf32, #tpu.memory_space<vmem>>, %arg6: memref<16x256xbf16, #tpu.memory_space<vmem>>, %arg7: memref<1x256xf32, #tpu.memory_space<vmem>>, %arg8: memref<1x256xf32, #tpu.memory_space<vmem>>, %arg9: memref<16x256xbf16, #tpu.memory_space<vmem>>, %arg10: memref<16x256xf32, #tpu.memory_space<vmem>>) attributes {dimension_semantics = [#tpu.dimension_semantics<parallel>, #tpu.dimension_semantics<parallel>, #tpu.dimension_semantics<arbitrary>], iteration_bounds = array<i64: 1, 1, 1>, scalar_prefetch = 0 : i64, scratch_operands = 1 : i64, tpu.core_type = #tpu.core_type<tc>, window_params = [{transform_indices = @transform_0, window_bounds = array<i64: 16, 512>}, {transform_indices = @transform_1, window_bounds = array<i64: 512, 256>}, {transform_indices = @transform_2, window_bounds = array<i64: 1, 256>}, {transform_indices = @transform_3, window_bounds = array<i64: 16, 256>}, {transform_indices = @transform_4, window_bounds = array<i64: 1, 256>}, {transform_indices = @transform_5, window_bounds = array<i64: 1, 256>}, {transform_indices = @transform_6, window_bounds = array<i64: 16, 256>}]} {
    %c0_i32 = arith.constant 0 : i32
    %0 = arith.cmpi eq, %arg2, %c0_i32 : i32
    %1 = arith.extui %0 : i1 to i32
    %c0_i32_0 = arith.constant 0 : i32
    %2 = arith.cmpi ne, %1, %c0_i32_0 : i32
    scf.if %2 {
      %cst_10 = arith.constant 0.000000e+00 : f32
      %12 = vector.broadcast %cst_10 : f32 to vector<16x256xf32>
      %c0_11 = arith.constant 0 : index
      %c0_12 = arith.constant 0 : index
      %13 = vector.load %arg10[%c0_11, %c0_12] : memref<16x256xf32, #tpu.memory_space<vmem>>, vector<16x256xf32>
      tpu.vector_store %arg10[%c0_11, %c0_12], %12 {strides = array<i32>} : memref<16x256xf32, #tpu.memory_space<vmem>>, vector<16x256xf32>,
    } else {
    }
    %c0 = arith.constant 0 : index
    %c0_1 = arith.constant 0 : index
    %3 = vector.load %arg10[%c0, %c0_1] : memref<16x256xf32, #tpu.memory_space<vmem>>, vector<16x256xf32>
    %c0_2 = arith.constant 0 : index
    %c0_3 = arith.constant 0 : index
    %4 = vector.load %arg3[%c0_2, %c0_3] : memref<16x512xbf16, #tpu.memory_space<vmem>>, vector<16x512xbf16>
    %c0_4 = arith.constant 0 : index
    %c0_5 = arith.constant 0 : index
    %5 = vector.load %arg4[%c0_4, %c0_5] : memref<512x256xbf16, #tpu.memory_space<vmem>>, vector<512x256xbf16>
    %cst = arith.constant dense<0.000000e+00> : vector<16x256xf32>
    %6 = tpu.matmul %4, %5, %cst {dimension_numbers = #tpu.dot_dimension_numbers<[1], [0], [0], [1], [0, 0, 1, 1], [], []>} : vector<16x512xbf16>, vector<512x256xbf16>, vector<16x256xf32> -> vector<16x256xf32>
    %7 = arith.addf %3, %6 : vector<16x256xf32>
    %c0_6 = arith.constant 0 : index
    %c0_7 = arith.constant 0 : index
    %8 = vector.load %arg10[%c0_6, %c0_7] : memref<16x256xf32, #tpu.memory_space<vmem>>, vector<16x256xf32>
    tpu.vector_store %arg10[%c0_6, %c0_7], %7 {strides = array<i32>} : memref<16x256xf32, #tpu.memory_space<vmem>>, vector<16x256xf32>,
    %c0_i32_8 = arith.constant 0 : i32
    %9 = arith.cmpi eq, %arg2, %c0_i32_8 : i32
    %10 = arith.extui %9 : i1 to i32
    %c0_i32_9 = arith.constant 0 : i32
    %11 = arith.cmpi ne, %10, %c0_i32_9 : i32
    scf.if %11 {
      %c0_10 = arith.constant 0 : index
      %c0_11 = arith.constant 0 : index
      %12 = vector.load %arg10[%c0_10, %c0_11] : memref<16x256xf32, #tpu.memory_space<vmem>>, vector<16x256xf32>
      %c0_12 = arith.constant 0 : index
      %c0_13 = arith.constant 0 : index
      %13 = vector.load %arg5[%c0_12, %c0_13] : memref<1x256xf32, #tpu.memory_space<vmem>>, vector<1x256xf32>
      %14 = vector.broadcast %13 : vector<1x256xf32> to vector<16x256xf32>
      %15 = arith.addf %12, %14 : vector<16x256xf32>
      %c0_14 = arith.constant 0 : index
      %c0_15 = arith.constant 0 : index
      %16 = vector.load %arg6[%c0_14, %c0_15] : memref<16x256xbf16, #tpu.memory_space<vmem>>, vector<16x256xbf16>
      %17 = arith.extf %16 : vector<16x256xbf16> to vector<16x256xf32>
      %18 = arith.addf %15, %17 : vector<16x256xf32>
      %cst_16 = arith.constant dense<0.000000e+00> : vector<16xf32>
      %19 = vector.multi_reduction <add>, %18, %cst_16 [1] : vector<16x256xf32> to vector<16xf32>
      %20 = vector.shape_cast %19 : vector<16xf32> to vector<16x1xf32>
      %cst_17 = arith.constant 2.560000e+02 : f32
      %21 = vector.broadcast %cst_17 : f32 to vector<16x1xf32>
      %22 = arith.divf %20, %21 : vector<16x1xf32>
      %23 = vector.broadcast %22 : vector<16x1xf32> to vector<16x256xf32>
      %24 = arith.subf %18, %23 : vector<16x256xf32>
      %25 = arith.mulf %24, %24 : vector<16x256xf32>
      %cst_18 = arith.constant dense<0.000000e+00> : vector<16xf32>
      %26 = vector.multi_reduction <add>, %25, %cst_18 [1] : vector<16x256xf32> to vector<16xf32>
      %27 = vector.shape_cast %26 : vector<16xf32> to vector<16x1xf32>
      %cst_19 = arith.constant 2.560000e+02 : f32
      %28 = vector.broadcast %cst_19 : f32 to vector<16x1xf32>
      %29 = arith.divf %27, %28 : vector<16x1xf32>
      %30 = vector.broadcast %22 : vector<16x1xf32> to vector<16x256xf32>
      %31 = arith.subf %18, %30 : vector<16x256xf32>
      %cst_20 = arith.constant 9.99999996E-13 : f32
      %32 = vector.broadcast %cst_20 : f32 to vector<16x1xf32>
      %33 = arith.addf %29, %32 : vector<16x1xf32>
      %34 = math.rsqrt %33 : vector<16x1xf32>
      %35 = vector.broadcast %34 : vector<16x1xf32> to vector<16x256xf32>
      %36 = arith.mulf %31, %35 : vector<16x256xf32>
      %c0_21 = arith.constant 0 : index
      %c0_22 = arith.constant 0 : index
      %37 = vector.load %arg7[%c0_21, %c0_22] : memref<1x256xf32, #tpu.memory_space<vmem>>, vector<1x256xf32>
      %38 = vector.broadcast %37 : vector<1x256xf32> to vector<16x256xf32>
      %39 = arith.mulf %36, %38 : vector<16x256xf32>
      %c0_23 = arith.constant 0 : index
      %c0_24 = arith.constant 0 : index
      %40 = vector.load %arg8[%c0_23, %c0_24] : memref<1x256xf32, #tpu.memory_space<vmem>>, vector<1x256xf32>
      %41 = vector.broadcast %40 : vector<1x256xf32> to vector<16x256xf32>
      %42 = arith.addf %39, %41 : vector<16x256xf32>
      %43 = arith.truncf %42 : vector<16x256xf32> to vector<16x256xbf16>
      %c0_25 = arith.constant 0 : index
      %c0_26 = arith.constant 0 : index
      %44 = vector.load %arg9[%c0_25, %c0_26] : memref<16x256xbf16, #tpu.memory_space<vmem>>, vector<16x256xbf16>
      tpu.vector_store %arg9[%c0_25, %c0_26], %43 {strides = array<i32>} : memref<16x256xbf16, #tpu.memory_space<vmem>>, vector<16x256xbf16>,
    } else {
    }
    return
  }
  func.func @transform_0(%arg0: i32, %arg1: i32, %arg2: i32) -> (i32, i32) {
    %c0_i32 = arith.constant 0 : i32
    return %arg0, %arg2 : i32, i32
  }
  func.func @transform_1(%arg0: i32, %arg1: i32, %arg2: i32) -> (i32, i32) {
    %c0_i32 = arith.constant 0 : i32
    return %arg2, %arg1 : i32, i32
  }
  func.func @transform_2(%arg0: i32, %arg1: i32, %arg2: i32) -> (i32, i32) {
    %c0_i32 = arith.constant 0 : i32
    %c0_i32_0 = arith.constant 0 : i32
    return %c0_i32, %arg1 : i32, i32
  }
  func.func @transform_3(%arg0: i32, %arg1: i32, %arg2: i32) -> (i32, i32) {
    %c0_i32 = arith.constant 0 : i32
    return %arg0, %arg1 : i32, i32
  }
  func.func @transform_4(%arg0: i32, %arg1: i32, %arg2: i32) -> (i32, i32) {
    %c0_i32 = arith.constant 0 : i32
    %c0_i32_0 = arith.constant 0 : i32
    return %c0_i32, %arg1 : i32, i32
  }
  func.func @transform_5(%arg0: i32, %arg1: i32, %arg2: i32) -> (i32, i32) {
    %c0_i32 = arith.constant 0 : i32
    %c0_i32_0 = arith.constant 0 : i32
    return %c0_i32, %arg1 : i32, i32
  }
  func.func @transform_6(%arg0: i32, %arg1: i32, %arg2: i32) -> (i32, i32) {
    %c0_i32 = arith.constant 0 : i32
    return %arg0, %arg1 : i32, i32
  }
}

module attributes {stable_mosaic.version = 11 : i64} {
  func.func @_wce_head_kernel(%arg0: i32, %arg1: i32, %arg2: memref<2x8x256xbf16, #tpu.memory_space<vmem>>, %arg3: memref<2x8x1xf32, #tpu.memory_space<vmem>>, %arg4: memref<2x128xf32, #tpu.memory_space<vmem>>, %arg5: memref<256x256xbf16, #tpu.memory_space<vmem>>, %arg6: memref<128x256xbf16, #tpu.memory_space<vmem>>, %arg7: memref<1x256xf32, #tpu.memory_space<vmem>>, %arg8: memref<256x128xbf16, #tpu.memory_space<vmem>>, %arg9: memref<1x128xf32, #tpu.memory_space<vmem>>, %arg10: memref<2x128xf32, #tpu.memory_space<vmem>>, %arg11: memref<2x256xf32, #tpu.memory_space<vmem>>, %arg12: memref<2x1xf32, #tpu.memory_space<vmem>>) attributes {dimension_semantics = [#tpu.dimension_semantics<parallel>, #tpu.dimension_semantics<arbitrary>], iteration_bounds = array<i64: 1, 1>, scalar_prefetch = 0 : i64, scratch_operands = 2 : i64, tpu.core_type = #tpu.core_type<tc>, window_params = [{transform_indices = @transform_0, window_bounds = array<i64: 2, 8, 256>}, {transform_indices = @transform_1, window_bounds = array<i64: 2, 8, 1>}, {transform_indices = @transform_2, window_bounds = array<i64: 2, 128>}, {pipeline_mode = #tpu.pipeline_mode<synchronous>, transform_indices = @transform_3, window_bounds = array<i64: 256, 256>}, {pipeline_mode = #tpu.pipeline_mode<synchronous>, transform_indices = @transform_4, window_bounds = array<i64: 128, 256>}, {pipeline_mode = #tpu.pipeline_mode<synchronous>, transform_indices = @transform_5, window_bounds = array<i64: 1, 256>}, {pipeline_mode = #tpu.pipeline_mode<synchronous>, transform_indices = @transform_6, window_bounds = array<i64: 256, 128>}, {pipeline_mode = #tpu.pipeline_mode<synchronous>, transform_indices = @transform_7, window_bounds = array<i64: 1, 128>}, {transform_indices = @transform_8, window_bounds = array<i64: 2, 128>}]} {
    %c0_i32 = arith.constant 0 : i32
    %0 = arith.cmpi eq, %arg1, %c0_i32 : i32
    %1 = arith.extui %0 : i1 to i32
    %c0_i32_0 = arith.constant 0 : i32
    %2 = arith.cmpi ne, %1, %c0_i32_0 : i32
    scf.if %2 {
      %cst_17 = arith.constant 0.000000e+00 : f32
      %19 = vector.broadcast %cst_17 : f32 to vector<2x256xf32>
      %c0_18 = arith.constant 0 : index
      %c0_19 = arith.constant 0 : index
      %20 = vector.load %arg11[%c0_18, %c0_19] : memref<2x256xf32, #tpu.memory_space<vmem>>, vector<2x256xf32>
      tpu.vector_store %arg11[%c0_18, %c0_19], %19 {strides = array<i32>} : memref<2x256xf32, #tpu.memory_space<vmem>>, vector<2x256xf32>,
      %cst_20 = arith.constant 0.000000e+00 : f32
      %21 = vector.broadcast %cst_20 : f32 to vector<2x1xf32>
      %c0_21 = arith.constant 0 : index
      %c0_22 = arith.constant 0 : index
      %22 = vector.load %arg12[%c0_21, %c0_22] : memref<2x1xf32, #tpu.memory_space<vmem>>, vector<2x1xf32>
      tpu.vector_store %arg12[%c0_21, %c0_22], %21 {strides = array<i32>} : memref<2x1xf32, #tpu.memory_space<vmem>>, vector<2x1xf32>,
    } else {
    }
    %c0 = arith.constant 0 : index
    %c0_1 = arith.constant 0 : index
    %c0_2 = arith.constant 0 : index
    %3 = vector.load %arg3[%c0, %c0_1, %c0_2] : memref<2x8x1xf32, #tpu.memory_space<vmem>>, vector<2x8x1xf32>
    %c0_3 = arith.constant 0 : index
    %c0_4 = arith.constant 0 : index
    %4 = vector.load %arg11[%c0_3, %c0_4] : memref<2x256xf32, #tpu.memory_space<vmem>>, vector<2x256xf32>
    %c0_5 = arith.constant 0 : index
    %c0_6 = arith.constant 0 : index
    %c0_7 = arith.constant 0 : index
    %5 = vector.load %arg2[%c0_5, %c0_6, %c0_7] : memref<2x8x256xbf16, #tpu.memory_space<vmem>>, vector<2x8x256xbf16>
    %6 = arith.extf %5 : vector<2x8x256xbf16> to vector<2x8x256xf32>
    %7 = vector.broadcast %3 : vector<2x8x1xf32> to vector<2x8x256xf32>
    %8 = arith.mulf %6, %7 : vector<2x8x256xf32>
    %cst = arith.constant dense<0.000000e+00> : vector<2x256xf32>
    %9 = vector.multi_reduction <add>, %8, %cst [1] : vector<2x8x256xf32> to vector<2x256xf32>
    %10 = arith.addf %4, %9 : vector<2x256xf32>
    %c0_8 = arith.constant 0 : index
    %c0_9 = arith.constant 0 : index
    %11 = vector.load %arg11[%c0_8, %c0_9] : memref<2x256xf32, #tpu.memory_space<vmem>>, vector<2x256xf32>
    tpu.vector_store %arg11[%c0_8, %c0_9], %10 {strides = array<i32>} : memref<2x256xf32, #tpu.memory_space<vmem>>, vector<2x256xf32>,
    %c0_10 = arith.constant 0 : index
    %c0_11 = arith.constant 0 : index
    %12 = vector.load %arg12[%c0_10, %c0_11] : memref<2x1xf32, #tpu.memory_space<vmem>>, vector<2x1xf32>
    %cst_12 = arith.constant dense<0.000000e+00> : vector<2x1xf32>
    %13 = vector.multi_reduction <add>, %3, %cst_12 [1] : vector<2x8x1xf32> to vector<2x1xf32>
    %14 = arith.addf %12, %13 : vector<2x1xf32>
    %c0_13 = arith.constant 0 : index
    %c0_14 = arith.constant 0 : index
    %15 = vector.load %arg12[%c0_13, %c0_14] : memref<2x1xf32, #tpu.memory_space<vmem>>, vector<2x1xf32>
    tpu.vector_store %arg12[%c0_13, %c0_14], %14 {strides = array<i32>} : memref<2x1xf32, #tpu.memory_space<vmem>>, vector<2x1xf32>,
    %c0_i32_15 = arith.constant 0 : i32
    %16 = arith.cmpi eq, %arg1, %c0_i32_15 : i32
    %17 = arith.extui %16 : i1 to i32
    %c0_i32_16 = arith.constant 0 : i32
    %18 = arith.cmpi ne, %17, %c0_i32_16 : i32
    scf.if %18 {
      %c0_17 = arith.constant 0 : index
      %c0_18 = arith.constant 0 : index
      %19 = vector.load %arg12[%c0_17, %c0_18] : memref<2x1xf32, #tpu.memory_space<vmem>>, vector<2x1xf32>
      %cst_19 = arith.constant 1.000000e+00 : f32
      %20 = vector.broadcast %cst_19 : f32 to vector<2x1xf32>
      %21 = arith.maximumf %19, %20 : vector<2x1xf32>
      %c0_20 = arith.constant 0 : index
      %c0_21 = arith.constant 0 : index
      %22 = vector.load %arg11[%c0_20, %c0_21] : memref<2x256xf32, #tpu.memory_space<vmem>>, vector<2x256xf32>
      %23 = vector.broadcast %21 : vector<2x1xf32> to vector<2x256xf32>
      %24 = arith.divf %22, %23 : vector<2x256xf32>
      %25 = arith.truncf %24 : vector<2x256xf32> to vector<2x256xbf16>
      %c0_22 = arith.constant 0 : index
      %c0_23 = arith.constant 0 : index
      %26 = vector.load %arg4[%c0_22, %c0_23] : memref<2x128xf32, #tpu.memory_space<vmem>>, vector<2x128xf32>
      %27 = arith.truncf %26 : vector<2x128xf32> to vector<2x128xbf16>
      %c0_24 = arith.constant 0 : index
      %c0_25 = arith.constant 0 : index
      %28 = vector.load %arg5[%c0_24, %c0_25] : memref<256x256xbf16, #tpu.memory_space<vmem>>, vector<256x256xbf16>
      %cst_26 = arith.constant dense<0.000000e+00> : vector<2x256xf32>
      %29 = tpu.matmul %25, %28, %cst_26 {dimension_numbers = #tpu.dot_dimension_numbers<[1], [0], [0], [1], [0, 0, 1, 1], [], []>} : vector<2x256xbf16>, vector<256x256xbf16>, vector<2x256xf32> -> vector<2x256xf32>
      %c0_27 = arith.constant 0 : index
      %c0_28 = arith.constant 0 : index
      %30 = vector.load %arg6[%c0_27, %c0_28] : memref<128x256xbf16, #tpu.memory_space<vmem>>, vector<128x256xbf16>
      %cst_29 = arith.constant dense<0.000000e+00> : vector<2x256xf32>
      %31 = tpu.matmul %27, %30, %cst_29 {dimension_numbers = #tpu.dot_dimension_numbers<[1], [0], [0], [1], [0, 0, 1, 1], [], []>} : vector<2x128xbf16>, vector<128x256xbf16>, vector<2x256xf32> -> vector<2x256xf32>
      %32 = arith.addf %29, %31 : vector<2x256xf32>
      %c0_30 = arith.constant 0 : index
      %c0_31 = arith.constant 0 : index
      %33 = vector.load %arg7[%c0_30, %c0_31] : memref<1x256xf32, #tpu.memory_space<vmem>>, vector<1x256xf32>
      %34 = vector.broadcast %33 : vector<1x256xf32> to vector<2x256xf32>
      %35 = arith.addf %32, %34 : vector<2x256xf32>
      %cst_32 = arith.constant 0.000000e+00 : f32
      %36 = vector.broadcast %cst_32 : f32 to vector<2x256xf32>
      %37 = arith.maximumf %35, %36 : vector<2x256xf32>
      %38 = arith.truncf %37 : vector<2x256xf32> to vector<2x256xbf16>
      %c0_33 = arith.constant 0 : index
      %c0_34 = arith.constant 0 : index
      %39 = vector.load %arg8[%c0_33, %c0_34] : memref<256x128xbf16, #tpu.memory_space<vmem>>, vector<256x128xbf16>
      %cst_35 = arith.constant dense<0.000000e+00> : vector<2x128xf32>
      %40 = tpu.matmul %38, %39, %cst_35 {dimension_numbers = #tpu.dot_dimension_numbers<[1], [0], [0], [1], [0, 0, 1, 1], [], []>} : vector<2x256xbf16>, vector<256x128xbf16>, vector<2x128xf32> -> vector<2x128xf32>
      %c0_36 = arith.constant 0 : index
      %c0_37 = arith.constant 0 : index
      %41 = vector.load %arg9[%c0_36, %c0_37] : memref<1x128xf32, #tpu.memory_space<vmem>>, vector<1x128xf32>
      %42 = vector.broadcast %41 : vector<1x128xf32> to vector<2x128xf32>
      %43 = arith.addf %40, %42 : vector<2x128xf32>
      %c0_38 = arith.constant 0 : index
      %c0_39 = arith.constant 0 : index
      %44 = vector.load %arg10[%c0_38, %c0_39] : memref<2x128xf32, #tpu.memory_space<vmem>>, vector<2x128xf32>
      tpu.vector_store %arg10[%c0_38, %c0_39], %43 {strides = array<i32>} : memref<2x128xf32, #tpu.memory_space<vmem>>, vector<2x128xf32>,
    } else {
    }
    return
  }
  func.func @transform_0(%arg0: i32, %arg1: i32) -> (i32, i32, i32) {
    %c0_i32 = arith.constant 0 : i32
    %c0_i32_0 = arith.constant 0 : i32
    return %arg0, %arg1, %c0_i32 : i32, i32, i32
  }
  func.func @transform_1(%arg0: i32, %arg1: i32) -> (i32, i32, i32) {
    %c0_i32 = arith.constant 0 : i32
    %c0_i32_0 = arith.constant 0 : i32
    return %arg0, %arg1, %c0_i32 : i32, i32, i32
  }
  func.func @transform_2(%arg0: i32, %arg1: i32) -> (i32, i32) {
    %c0_i32 = arith.constant 0 : i32
    %c0_i32_0 = arith.constant 0 : i32
    return %arg0, %c0_i32 : i32, i32
  }
  func.func @transform_3(%arg0: i32, %arg1: i32) -> (i32, i32) {
    %c0_i32 = arith.constant 0 : i32
    %c0_i32_0 = arith.constant 0 : i32
    %c0_i32_1 = arith.constant 0 : i32
    return %c0_i32, %c0_i32_0 : i32, i32
  }
  func.func @transform_4(%arg0: i32, %arg1: i32) -> (i32, i32) {
    %c0_i32 = arith.constant 0 : i32
    %c0_i32_0 = arith.constant 0 : i32
    %c0_i32_1 = arith.constant 0 : i32
    return %c0_i32, %c0_i32_0 : i32, i32
  }
  func.func @transform_5(%arg0: i32, %arg1: i32) -> (i32, i32) {
    %c0_i32 = arith.constant 0 : i32
    %c0_i32_0 = arith.constant 0 : i32
    %c0_i32_1 = arith.constant 0 : i32
    return %c0_i32, %c0_i32_0 : i32, i32
  }
  func.func @transform_6(%arg0: i32, %arg1: i32) -> (i32, i32) {
    %c0_i32 = arith.constant 0 : i32
    %c0_i32_0 = arith.constant 0 : i32
    %c0_i32_1 = arith.constant 0 : i32
    return %c0_i32, %c0_i32_0 : i32, i32
  }
  func.func @transform_7(%arg0: i32, %arg1: i32) -> (i32, i32) {
    %c0_i32 = arith.constant 0 : i32
    %c0_i32_0 = arith.constant 0 : i32
    %c0_i32_1 = arith.constant 0 : i32
    return %c0_i32, %c0_i32_0 : i32, i32
  }
  func.func @transform_8(%arg0: i32, %arg1: i32) -> (i32, i32) {
    %c0_i32 = arith.constant 0 : i32
    %c0_i32_0 = arith.constant 0 : i32
    return %arg0, %c0_i32 : i32, i32
  }
}

</mosaic_0001>

<bundles_post_ra>
// kernel: transformer_wce_classifier_forward.7
= control target key start
LH: loop header
LB: loop body
LE: loop exit
PB: predicated region body
PF: predicated region fallthrough
CT: control target
= control target key end

     0   :  { %s750_s15 = smov 0   ;;  %s752_s16 = smov 0   ;;  %s835_s0 = inlined_call_operand.vmem [shape: bf16[16,768], index: 0, kind: input, shape index: {}, may-alias: {0,1,2}]   ;;  %s836_s1 = inlined_call_operand.vmem [shape: bf16[16,768], index: 1, kind: input, shape index: {}, may-alias: {0,1,2}]   ;;  %s837_s2 = inlined_call_operand.vmem [shape: bf16[16,768], index: 2, kind: input, shape index: {}, may-alias: {0,1,2}]   ;;  %s838_s3 = inlined_call_operand.vmem [shape: f32[2,1,8], index: 3, kind: input, shape index: {}]   ;;  %s839_s4 = inlined_call_operand.vmem [shape: bf16[16,256], index: 4, kind: output, shape index: {}]  }
   0x1   :  { %s754_s17 = smov 0   ;;  %s756_s18 = smov 0  }
   0x2   :  { %s758_s19 = smov 0  }
   0x3 LB: > { %s36_s20 = sadd.s32 1, %s712_s17  ;;  %s40_s21 = sadd.s32 1, %s716_s18  ;;  %s720_s19 = sphi %s758_s19, %s14_s19   ;;  %s716_s18 = sphi %s756_s18, %s843_s18   ;;  %s712_s17 = sphi %s754_s17, %s842_s17   ;;  %s708_s16 = sphi %s752_s16, %s841_s16   ;;  %s704_s15 = sphi %s750_s15, %s840_s15  }
   0x4   : > { %p38_p0 = scmp.ge.s32.totalorder %s36_s20, 2  ;;  %p619_p1 = scmp.ge.s32.totalorder %s720_s19, 1 }
   0x5   : > { %p260_p2 = scmp.lt.s32.totalorder %s720_s19, 5 }
   0x6   : > { %s845_s20 = smov (%p38_p0, %s36_s20), 0  ;;  %s847_s21 = smov (!%p38_p0, %s40_s21), %s716_s18 }
   0x7   : > { %p261_p3 = pnand %p619_p1, %p260_p2  ;;  %p42_p4 = scmp.ge.s32.totalorder %s847_s21, 2 }
   0x8   : > { %p321_p5 = scmp.lt.s32.totalorder (!%p261_p3), %s708_s16, 1  ;;  %s331_s22 = sadd.s32 (!%p261_p3), 2, %s704_s15 }
   0x9   : > { %s849_s21 = smov (%p42_p4, %s847_s21), 0  ;;  %264 = sbr.rel (%p261_p3) target bundleno = 633 (0x279), region = 36 }
   0xa   : > { %p334_p6 = scmp.lt.s32.totalorder (!%p261_p3), %s331_s22, 5  ;;  %p323_p7 = scmp.lt.s32.totalorder (!%p261_p3), %s704_s15, 5 }
   0xb   : > { %s343_s12 = sadd.s32 (!%p261_p3), 4, %s704_s15  ;;  %p363_p9 = scmp.lt.s32.totalorder (!%p261_p3), %s704_s15, 1 }
   0xc   : > { %p346_p8 = scmp.lt.s32.totalorder (!%p261_p3), %s343_s12, 5 }
   0xe   : > { %s851_s16 = smov (!%p321_p5, %s708_s16), 1  ;;  %s853_s22 = smov (!%p334_p6, %s331_s22), 5  ;;  %vm375_vm0 = vcmask 7168   ;;  %v722_v2 = vmov -1e+30   ;;  %vm402_vm1 = vcmask 64512  }
   0xf   : > { %s787_s23 = smul.u32 6, %s851_s16  ;;  %s359_s11 = scalar_lea.vmem %s838_s3, %s851_s16  ;;  %376 = vst.msk [vmem:[#allocation2] sm:$0xff] %vm375_vm0, %v722_v2  ;;  %v723_v9 = vmov 0   ;;  %v724_v10 = vmov 0.0   ;;  %vm437_vm2 = vcmask 1043456  }
  0x10   : > { %s324_s24 = scalar_select %p323_p7, %s704_s15, 5  ;;  %v675_v3 = vld [vmem:[%s359_s11] ss:$0 sm:$0xff]  ;;  %672 = vset.pattern.permute.xlu0 %v723_v9  ;;  %673 = vset.pattern.permute.xlu1 %v723_v9  ;;  %377 = vst.msk [vmem:[#allocation3] sm:$0xff] %vm375_vm0, %v724_v10 }
  0x11   : > { %s337_s25 = sadd.s32 %s787_s23, %s853_s22  ;;  %674 = vset.pattern.permute.xlu2 %v723_v9  ;;  %s855_s12 = smov (!%p346_p8, %s343_s12), 5 }
  0x12   : > { %s621_s26 = sshll.u32 %s337_s25, 2  ;;  %s326_s27 = sadd.s32 %s787_s23, %s324_s24 }
  0x13   : > { %s339_s30 = scalar_lea.vmem %s836_s1, %s621_s26  ;;  %s620_s5 = sshll.u32 %s326_s27, 2 }
  0x14   : > { %v380_v0 = vld [vmem:[%s339_s30] sm:$0xf]  ;;  %s328_s8 = scalar_lea.vmem %s835_s0, %s620_s5  ;;  %s349_s13 = sadd.s32 %s787_s23, %s855_s12 }
  0x15   : > { %389 = vmatpush.bf16.xpose.msra.mxu0 %v380_v0  ;;  %v379_v1 = vld [vmem:[%s328_s8] sm:$0xf]  ;;  %s622_s14 = sshll.u32 %s349_s13, 2  ;;  %s857_s15 = smov (!%p363_p9, %s704_s15), 1 }
  0x16   : > { %v401_v11 = vld [vmem:[#allocation2] sm:$0xff]  ;;  %s351_s25 = scalar_lea.vmem %s837_s2, %s622_s14  ;;  %s623_s23 = sshll.u32 %s851_s16, 1 }
  0x17   : > { %v381_v15 = vld [vmem:[%s351_s25] sm:$0xf]  ;;  %v418_v25 = vld [vmem:[#allocation3] sm:$0xff]  ;;  %s366_s26 = sadd.s32 %s623_s23, %s857_s15 }
  0x18   : > { %v439_v16 = vsel %vm437_vm2, %v381_v15, 0  ;;  %s624_s27 = sshll.u32 %s366_s26, 2 }
  0x19   : > { %448 = vmatpush.bf16.msra.mxu1 %v439_v16  ;;  %s368_s30 = scalar_lea.vmem %s839_s4, %s624_s27 }
  0x1c   : > { %390 = vmatmul.bf16.vlgmr.msra.gmra.mxu0 %v379_v1 }
  0x99   : > { %v391_v4 = vpop.f32.mrf.mxu0 }
  0x9a   : > { %v395_v5 = vmul.f32 0.088388346, %v391_v4 }
  0x9c   : > { %v400_v6 = vadd.f32 %v675_v3, %v395_v5 }
  0x9e   : > { %v403_v7 = vsel %vm402_vm1, %v400_v6, -inf }
  0x9f   : > { %404 = vmax.xlane.f32.xlu0 %v403_v7 }
  0xa1   : > { %v393_v8 = vpop.f32.mrf.mxu0 }
 0x112   : > { %v405_v12 = vpop.xlane.xlu0 %404 }
 0x113   : > { %v406_v13 = vmax.f32 %v401_v11, %v405_v12 }
 0x115   : > { %v407_v14 = vsub.f32 %v401_v11, %v406_v13  ;;  %456 = vst.msk [vmem:[#allocation2] sm:$0xff] %vm375_vm0, %v406_v13  ;;  %412 = vperm.xlu0 %672, %v406_v13  }
 0x117   : > { %v408_v23 = vmul.f32 1.442695, %v407_v14 }
 0x187   : > { %v413_v17 = vpop.permute.xlu0 %412 }
 0x188   : > { %v415_v18 = vsub.f32 %v400_v6, %v413_v17 }
 0x18a   : > { %v416_v19 = vmul.f32 1.442695, %v415_v18 }
 0x18c   : > { %676 = vpow2.f32 %v416_v19 }
 0x18d   : > { %678 = vpow2.f32 %v408_v23 }
 0x192   : > { %v677_v20 = vpop.eup %676 }
 0x193   : > { %v420_v21 = vsel %vm402_vm1, %v677_v20, 0.0  ;;  %v433_v22 = vpack.c.bf16 %v677_v20, %v677_v20  ;;  %v679_v24 = vpop.eup %678 }
 0x194   : > { %421 = vadd.xlane.f32.xlu1 %v420_v21  ;;  %v419_v26 = vmul.f32 %v679_v24, %v418_v25 }
 0x195   : > { %625 = vmatmul.msk.bf16.vlgmr.msra.gmra.mxu1 %vm402_vm1, %v433_v22 }
 0x1ad   : > { %429 = vperm.xlu1 %673, %v679_v24  }
 0x207   : > { %v422_v27 = vpop.xlane.xlu1 %421 }
 0x208   : > { %v423_v28 = vadd.f32 %v422_v27, %v419_v26 }
 0x20a   : > { %425 = vst.msk [vmem:[#allocation3] sm:$0xff] %vm375_vm0, %v423_v28 }
 0x211   : > { %v460_v29 = vld [vmem:[#allocation3] sm:$0xff] }
 0x212   : > { %v450_v30 = vpop.f32.mrf.mxu1  ;;  %680 = vrcp.f32 %v460_v29 }
 0x218   : > { %v681_v31 = vpop.eup %680 }
 0x219   : > { %465 = vperm.xlu2 %674, %v681_v31  }
 0x21a   : > { %v452_v32 = vpop.f32.mrf.mxu1 }
 0x21f   : > { %v430_v33 = vpop.permute.xlu1 %429 }
 0x220   : > { %v432_v34 = vmul.f32 0.0, %v430_v33 }
 0x222   : > { %v454_v35 = vadd.f32 %v450_v30, %v432_v34 }
 0x273   : > { %v466_v36 = vpop.permute.xlu2 %465 }
 0x274   : > { %v468_v37 = vmul.f32 %v466_v36, %v454_v35 }
 0x276   : > { %v469_v38 = vpack.c.bf16 %v468_v37, %v468_v37 }
 0x278   : > { %470 = vst [vmem:[%s368_s30] sm:$0xf] %v469_v38 }
 0x279 PF: > { %s14_s19 = sadd.s32 1, %s720_s19   ;;  %s840_s15 = smov %s712_s17 }
 0x27a   : > { %p11_p10 = scmp.ge.s32.totalorder %s14_s19, 6   ;;  %s841_s16 = smov %s716_s18 }
 0x27b   : > { %s842_s17 = smov %s845_s20  ;;  %s843_s18 = smov %s849_s21 }
 0x27c   :  { %13 = sbr.rel (!%p11_p10) target bundleno = 3 (0x3), region = 83 }

// kernel: transformer_wce_classifier_forward.8
= control target key start
LH: loop header
LB: loop body
LE: loop exit
PB: predicated region body
PF: predicated region fallthrough
CT: control target
= control target key end

     0   :  { %s853_s1 = inlined_call_operand.vmem [shape: bf16[256,256], index: 1, kind: input, shape index: {}]   ;;  %s854_s0 = inlined_call_operand.vmem [shape: bf16[16,256], index: 0, kind: input, shape index: {}]   ;;  %s855_s2 = inlined_call_operand.vmem [shape: f32[1,256], index: 2, kind: input, shape index: {}]   ;;  %s856_s3 = inlined_call_operand.vmem [shape: bf16[16,256], index: 3, kind: input, shape index: {}]   ;;  %s857_s4 = inlined_call_operand.vmem [shape: f32[1,256], index: 4, kind: input, shape index: {}]   ;;  %s858_s5 = inlined_call_operand.vmem [shape: f32[1,256], index: 5, kind: input, shape index: {}]   ;;  %s859_s6 = inlined_call_operand.vmem [shape: bf16[16,256], index: 6, kind: output, shape index: {}]  }
   0x1   :  { %v481_v0 = vld [vmem:[%s853_s1 + $0x70] sm:$0xf]  ;;  %v568_v1 = vld [vmem:[%s853_s1 + $0x74] sm:$0xf0]  ;;  %v567_v5 = vld [vmem:[%s853_s1 + $0x74] sm:$0xf] }
   0x2   :  { %v545_v2 = vld [vmem:[%s853_s1 + $0xf0] sm:$0xf]  ;;  %v482_v3 = vor.u32 %v568_v1, %v481_v0  ;;  %v584_v4 = vld [vmem:[%s853_s1 + $0xf4] sm:$0xf0]  ;;  %v483_v6 = vld [vmem:[%s853_s1 + $0x78] sm:$0xf0] }
   0x3   :  { %v546_v7 = vor.u32 %v584_v4, %v545_v2  ;;  %v486_v8 = vor.u32 %v567_v5, %v483_v6  ;;  %v583_v9 = vld [vmem:[%s853_s1 + $0xf4] sm:$0xf]  ;;  %v547_v10 = vld [vmem:[%s853_s1 + $0xf8] sm:$0xf0]  ;;  %v473_v11 = vld [vmem:[%s853_s1 + $0x60] sm:$0xf] }
   0x4   :  { %239 = vmatpush.bf16.msra.mxu0 %v482_v3  ;;  %v550_v12 = vor.u32 %v583_v9, %v547_v10  ;;  %v566_v13 = vld [vmem:[%s853_s1 + $0x64] sm:$0xf0]  ;;  %v537_v14 = vld [vmem:[%s853_s1 + $0xe0] sm:$0xf]  ;;  %v565_v18 = vld [vmem:[%s853_s1 + $0x64] sm:$0xf] }
   0x5   :  { %v582_v15 = vld [vmem:[%s853_s1 + $0xe4] sm:$0xf0]  ;;  %253 = vmatpush.bf16.msra.mxu1 %v546_v7  ;;  %267 = vmatpush.bf16.msra.mxu2 %v486_v8  ;;  %v474_v16 = vor.u32 %v566_v13, %v473_v11  ;;  %v475_v19 = vld [vmem:[%s853_s1 + $0x68] sm:$0xf0]  ;;  %v581_v20 = vld [vmem:[%s853_s1 + $0xe4] sm:$0xf] }
   0x6   :  { %v538_v17 = vor.u32 %v582_v15, %v537_v14  ;;  %281 = vmatpush.bf16.msra.mxu3 %v550_v12  ;;  %v478_v21 = vor.u32 %v565_v18, %v475_v19  ;;  %v539_v22 = vld [vmem:[%s853_s1 + $0xe8] sm:$0xf0]  ;;  %v465_v23 = vld [vmem:[%s853_s1 + $0x50] sm:$0xf]  ;;  %v564_v24 = vld [vmem:[%s853_s1 + $0x54] sm:$0xf0] }
   0x7   :  { %v542_v25 = vor.u32 %v581_v20, %v539_v22  ;;  %v529_v26 = vld [vmem:[%s853_s1 + $0xd0] sm:$0xf]  ;;  %v580_v27 = vld [vmem:[%s853_s1 + $0xd4] sm:$0xf0]  ;;  %v563_v28 = vld [vmem:[%s853_s1 + $0x54] sm:$0xf]  ;;  %v466_v29 = vor.u32 %v564_v24, %v465_v23 }
   0x8   :  { %240 = vmatpush.bf16.msra.mxu0 %v474_v16  ;;  %v467_v30 = vld [vmem:[%s853_s1 + $0x58] sm:$0xf0]  ;;  %v579_v31 = vld [vmem:[%s853_s1 + $0xd4] sm:$0xf]  ;;  %v530_v33 = vor.u32 %v580_v27, %v529_v26  ;;  %v457_v35 = vld [vmem:[%s853_s1 + $0x40] sm:$0xf] }
   0x9   :  { %v531_v32 = vld [vmem:[%s853_s1 + $0xd8] sm:$0xf0]  ;;  %254 = vmatpush.bf16.msra.mxu1 %v538_v17  ;;  %268 = vmatpush.bf16.msra.mxu2 %v478_v21  ;;  %v470_v34 = vor.u32 %v563_v28, %v467_v30  ;;  %v562_v36 = vld [vmem:[%s853_s1 + $0x44] sm:$0xf0]  ;;  %v521_v37 = vld [vmem:[%s853_s1 + $0xc0] sm:$0xf] }
   0xa   :  { %282 = vmatpush.bf16.msra.mxu3 %v542_v25  ;;  %v534_v38 = vor.u32 %v579_v31, %v531_v32  ;;  %v578_v39 = vld [vmem:[%s853_s1 + $0xc4] sm:$0xf0]  ;;  %v561_v40 = vld [vmem:[%s853_s1 + $0x44] sm:$0xf]  ;;  %v459_v41 = vld [vmem:[%s853_s1 + $0x48] sm:$0xf0]  ;;  %v458_v44 = vor.u32 %v562_v36, %v457_v35 }
   0xb   :  { %v577_v42 = vld [vmem:[%s853_s1 + $0xc4] sm:$0xf]  ;;  %v523_v43 = vld [vmem:[%s853_s1 + $0xc8] sm:$0xf0]  ;;  %v522_v45 = vor.u32 %v578_v39, %v521_v37  ;;  %v462_v46 = vor.u32 %v561_v40, %v459_v41  ;;  %v449_v47 = vld [vmem:[%s853_s1 + $0x30] sm:$0xf] }
   0xc   :  { %241 = vmatpush.bf16.msra.mxu0 %v466_v29  ;;  %v560_v48 = vld [vmem:[%s853_s1 + $0x34] sm:$0xf0]  ;;  %v513_v49 = vld [vmem:[%s853_s1 + $0xb0] sm:$0xf]  ;;  %v526_v50 = vor.u32 %v577_v42, %v523_v43  ;;  %v559_v52 = vld [vmem:[%s853_s1 + $0x34] sm:$0xf] }
   0xd   :  { %255 = vmatpush.bf16.msra.mxu1 %v530_v33  ;;  %269 = vmatpush.bf16.msra.mxu2 %v470_v34  ;;  %v576_v51 = vld [vmem:[%s853_s1 + $0xb4] sm:$0xf0]  ;;  %v451_v53 = vld [vmem:[%s853_s1 + $0x38] sm:$0xf0]  ;;  %v575_v54 = vld [vmem:[%s853_s1 + $0xb4] sm:$0xf]  ;;  %v450_v56 = vor.u32 %v560_v48, %v449_v47 }
   0xe   :  { %283 = vmatpush.bf16.msra.mxu3 %v534_v38  ;;  %v515_v55 = vld [vmem:[%s853_s1 + $0xb8] sm:$0xf0]  ;;  %v514_v57 = vor.u32 %v576_v51, %v513_v49  ;;  %v454_v58 = vor.u32 %v559_v52, %v451_v53  ;;  %v441_v59 = vld [vmem:[%s853_s1 + $0x20] sm:$0xf]  ;;  %v558_v60 = vld [vmem:[%s853_s1 + $0x24] sm:$0xf0] }
   0xf   :  { %v505_v61 = vld [vmem:[%s853_s1 + $0xa0] sm:$0xf]  ;;  %v518_v62 = vor.u32 %v575_v54, %v515_v55  ;;  %v574_v63 = vld [vmem:[%s853_s1 + $0xa4] sm:$0xf0]  ;;  %v557_v0 = vld [vmem:[%s853_s1 + $0x24] sm:$0xf]  ;;  %v442_v4 = vor.u32 %v558_v60, %v441_v59 }
  0x10   :  { %242 = vmatpush.bf16.msra.mxu0 %v458_v44  ;;  %v443_v1 = vld [vmem:[%s853_s1 + $0x28] sm:$0xf0]  ;;  %v573_v2 = vld [vmem:[%s853_s1 + $0xa4] sm:$0xf]  ;;  %v506_v5 = vor.u32 %v574_v63, %v505_v61  ;;  %v433_v7 = vld [vmem:[%s853_s1 + $0x10] sm:$0xf] }
  0x11   :  { %256 = vmatpush.bf16.msra.mxu1 %v522_v45  ;;  %270 = vmatpush.bf16.msra.mxu2 %v462_v46  ;;  %v507_v3 = vld [vmem:[%s853_s1 + $0xa8] sm:$0xf0]  ;;  %v446_v6 = vor.u32 %v557_v0, %v443_v1  ;;  %v556_v8 = vld [vmem:[%s853_s1 + $0x14] sm:$0xf0]  ;;  %v497_v9 = vld [vmem:[%s853_s1 + $0x90] sm:$0xf] }
  0x12   :  { %284 = vmatpush.bf16.msra.mxu3 %v526_v50  ;;  %v510_v10 = vor.u32 %v573_v2, %v507_v3  ;;  %v572_v11 = vld [vmem:[%s853_s1 + $0x94] sm:$0xf0]  ;;  %v555_v12 = vld [vmem:[%s853_s1 + $0x14] sm:$0xf]  ;;  %v435_v13 = vld [vmem:[%s853_s1 + $0x18] sm:$0xf0]  ;;  %v434_v16 = vor.u32 %v556_v8, %v433_v7 }
  0x13   :  { %v571_v14 = vld [vmem:[%s853_s1 + $0x94] sm:$0xf]  ;;  %v499_v15 = vld [vmem:[%s853_s1 + $0x98] sm:$0xf0]  ;;  %v498_v17 = vor.u32 %v572_v11, %v497_v9  ;;  %v438_v18 = vor.u32 %v555_v12, %v435_v13  ;;  %v425_v19 = vld [vmem:[%s853_s1] sm:$0xf] }
  0x14   :  { %243 = vmatpush.bf16.msra.mxu0 %v450_v56  ;;  %v554_v20 = vld [vmem:[%s853_s1 + $0x4] sm:$0xf0]  ;;  %v489_v21 = vld [vmem:[%s853_s1 + $0x80] sm:$0xf]  ;;  %v502_v22 = vor.u32 %v571_v14, %v499_v15  ;;  %v553_v24 = vld [vmem:[%s853_s1 + $0x4] sm:$0xf] }
  0x15   :  { %257 = vmatpush.bf16.msra.mxu1 %v514_v57  ;;  %271 = vmatpush.bf16.msra.mxu2 %v454_v58  ;;  %v570_v23 = vld [vmem:[%s853_s1 + $0x84] sm:$0xf0]  ;;  %v427_v25 = vld [vmem:[%s853_s1 + $0x8] sm:$0xf0]  ;;  %v569_v26 = vld [vmem:[%s853_s1 + $0x84] sm:$0xf]  ;;  %v426_v28 = vor.u32 %v554_v20, %v425_v19 }
  0x16   :  { %285 = vmatpush.bf16.msra.mxu3 %v518_v62  ;;  %v491_v27 = vld [vmem:[%s853_s1 + $0x88] sm:$0xf0]  ;;  %v417_v29 = vld [vmem:[%s854_s0] sm:$0xf]  ;;  %v552_v30 = vld [vmem:[%s854_s0 + $0x4] sm:$0xf0]  ;;  %v490_v31 = vor.u32 %v570_v23, %v489_v21  ;;  %v430_v32 = vor.u32 %v553_v24, %v427_v25 }
  0x17   :  { %v551_v33 = vld [vmem:[%s854_s0 + $0x4] sm:$0xf]  ;;  %v419_v34 = vld [vmem:[%s854_s0 + $0x8] sm:$0xf0]  ;;  %v494_v35 = vor.u32 %v569_v26, %v491_v27  ;;  %v418_v36 = vor.u32 %v552_v30, %v417_v29  ;;  %v310_v39 = vld [vmem:[%s855_s2] sm:$0x3] }
  0x18   :  { %244 = vmatpush.bf16.msra.mxu0 %v442_v4  ;;  %v422_v37 = vor.u32 %v551_v33, %v419_v34  ;;  %v312_v42 = vperm.slane %v310_v39, 0  ;;  %v320_v43 = vld [vmem:[%s856_s3] sm:$0xff]  ;;  %v313_v46 = vperm.slane %v310_v39, 1  ;;  %v321_v57 = vld [vmem:[%s856_s3 + $0x8] sm:$0xff] }
  0x19   :  { %258 = vmatpush.bf16.msra.mxu1 %v506_v5  ;;  %272 = vmatpush.bf16.msra.mxu2 %v446_v6  ;;  %v322_v47 = vunpack.c.l.bf16 %v320_v43  ;;  %v323_v50 = vunpack.c.h.bf16 %v320_v43  ;;  %v324_v63 = vunpack.c.l.bf16 %v321_v57  ;;  %v325_v0 = vunpack.c.h.bf16 %v321_v57  ;;  %v397_v39 = vld [vmem:[%s858_s5] sm:$0x3] }
  0x1a   :  { %286 = vmatpush.bf16.msra.mxu3 %v510_v10  ;;  %v592_v5 = vmov 256.0  }
  0x1b   :  { %586 = vrcp.f32 %v592_v5 }
  0x1c   :  { %245 = vmatpush.bf16.msra.mxu0 %v434_v16 }
  0x1d   :  { %259 = vmatpush.bf16.msra.mxu1 %v498_v17  ;;  %273 = vmatpush.bf16.msra.mxu2 %v438_v18 }
  0x1e   :  { %287 = vmatpush.bf16.msra.mxu3 %v502_v22 }
  0x20   :  { %246 = vmatpush.bf16.msra.mxu0 %v426_v28 }
  0x21   :  { %260 = vmatpush.bf16.msra.mxu1 %v490_v31  ;;  %274 = vmatpush.bf16.msra.mxu2 %v430_v32  ;;  %v587_v6 = vpop.eup %586 }
  0x22   :  { %288 = vmatpush.bf16.msra.mxu3 %v494_v35  ;;  %v337_v7 = vmul.f32 256.0, %v587_v6  ;;  %vm341_vm0 = vweird.f32 %v587_v6 }
  0x23   :  { %247 = vmatmul.bf16.vlgmr.msra.gmra.mxu0 %v418_v36 }
  0x24   :  { %261 = vmatmul.bf16.vlgmr.msra.gmra.mxu1 %v422_v37  ;;  %275 = vmatmul.bf16.vlgmr.msra.gmra.mxu2 %v418_v36  ;;  %v338_v8 = vsub.f32 1.0, %v337_v7  ;;  %v387_v36 = vld [vmem:[%s857_s4] sm:$0x3] }
  0x25   :  { %289 = vmatmul.bf16.vlgmr.msra.gmra.mxu3 %v422_v37  ;;  %v390_v43 = vperm.slane %v387_v36, 1 }
  0x26   :  { %v339_v9 = vmul.f32 %v587_v6, %v338_v8 }
  0x28   :  { %v340_v10 = vadd.f32 %v587_v6, %v339_v9 }
  0x2a   :  { %v342_v11 = vsel %vm341_vm0, %v587_v6, %v340_v10 }
  0xa0   :  { %v248_v38 = vpop.f32.mrf.mxu0 }
  0xa1   :  { %v262_v40 = vpop.f32.mrf.mxu1 }
  0xa2   :  { %v263_v41 = vadd.f32 %v262_v40, %v248_v38 }
  0xa4   :  { %v316_v44 = vadd.f32 %v312_v42, %v263_v41 }
  0xa6   :  { %v326_v54 = vadd.f32 %v322_v47, %v316_v44  ;;  %v400_v47 = vperm.slane %v397_v39, 1 }
  0xa7   :  { %v276_v45 = vpop.f32.mrf.mxu2 }
  0xa8   :  { %v290_v48 = vpop.f32.mrf.mxu3  ;;  %v250_v51 = vpop.f32.mrf.mxu0 }
  0xa9   :  { %v291_v49 = vadd.f32 %v290_v48, %v276_v45  ;;  %v264_v52 = vpop.f32.mrf.mxu1 }
  0xaa   :  { %v265_v55 = vadd.f32 %v264_v52, %v250_v51 }
  0xab   :  { %v317_v53 = vadd.f32 %v313_v46, %v291_v49 }
  0xac   :  { %v318_v61 = vadd.f32 %v312_v42, %v265_v55  ;;  %v389_v42 = vperm.slane %v387_v36, 0 }
  0xad   :  { %v327_v56 = vadd.f32 %v323_v50, %v317_v53 }
  0xae   :  { %v328_v2 = vadd.f32 %v324_v63, %v318_v61 }
  0xaf   :  { %v278_v58 = vpop.f32.mrf.mxu2  ;;  %v330_v59 = vadd.f32 %v327_v56, %v326_v54 }
  0xb0   :  { %v292_v60 = vpop.f32.mrf.mxu3 }
  0xb1   :  { %v293_v62 = vadd.f32 %v292_v60, %v278_v58  ;;  %331 = vadd.xlane.f32.xlu0 %v330_v59 }
  0xb3   :  { %v319_v1 = vadd.f32 %v313_v46, %v293_v62  ;;  %v399_v46 = vperm.slane %v397_v39, 0 }
  0xb5   :  { %v329_v3 = vadd.f32 %v325_v0, %v319_v1 }
  0xb7   :  { %v333_v4 = vadd.f32 %v329_v3, %v328_v2 }
  0xb9   :  { %334 = vadd.xlane.f32.xlu0 %v333_v4 }
 0x124   :  { %v332_v12 = vpop.xlane.xlu0 %331 }
 0x125   :  { %v343_v13 = vmul.f32 %v342_v11, %v332_v12 }
 0x127   :  { %v345_v14 = vsub.f32 %v326_v54, %v343_v13  ;;  %v346_v15 = vsub.f32 %v327_v56, %v343_v13 }
 0x129   :  { %v349_v16 = vmul.f32 %v345_v14, %v345_v14  ;;  %v350_v17 = vmul.f32 %v346_v15, %v346_v15 }
 0x12b   :  { %v353_v18 = vadd.f32 %v350_v17, %v349_v16 }
 0x12c   :  { %v335_v19 = vpop.xlane.xlu0 %334 }
 0x12d   :  { %v344_v20 = vmul.f32 %v342_v11, %v335_v19  ;;  %354 = vadd.xlane.f32.xlu1 %v353_v18 }
 0x12f   :  { %v347_v21 = vsub.f32 %v328_v2, %v344_v20  ;;  %v348_v22 = vsub.f32 %v329_v3, %v344_v20 }
 0x131   :  { %v351_v23 = vmul.f32 %v347_v21, %v347_v21  ;;  %v352_v24 = vmul.f32 %v348_v22, %v348_v22 }
 0x133   :  { %v356_v25 = vadd.f32 %v352_v24, %v351_v23 }
 0x135   :  { %357 = vadd.xlane.f32.xlu1 %v356_v25 }
 0x1a0   :  { %v355_v26 = vpop.xlane.xlu1 %354 }
 0x1a1   :  { %v359_v27 = vmul.f32 %v355_v26, %v342_v11 }
 0x1a3   :  { %v361_v28 = vadd.f32 1e-12, %v359_v27 }
 0x1a5   :  { %588 = vrsqrt.f32 %v361_v28  ;;  %vm369_vm2 = vweird.f32 %v361_v28 }
 0x1a8   :  { %v358_v29 = vpop.xlane.xlu1 %357 }
 0x1a9   :  { %v360_v30 = vmul.f32 %v358_v29, %v342_v11 }
 0x1ab   :  { %v589_v31 = vpop.eup %588  ;;  %v362_v32 = vadd.f32 1e-12, %v360_v30 }
 0x1ac   :  { %v364_v33 = vmul.f32 %v589_v31, %v361_v28  ;;  %vm370_vm1 = vweird.f32 %v589_v31 }
 0x1ad   :  { %590 = vrsqrt.f32 %v362_v32  ;;  %vm371_vm3 = vmor %vm369_vm2, %vm370_vm1  ;;  %vm379_vm5 = vweird.f32 %v362_v32 }
 0x1ae   :  { %v365_v34 = vmul.f32 %v589_v31, %v364_v33 }
 0x1b0   :  { %v366_v35 = vmul.f32 0.5, %v365_v34 }
 0x1b2   :  { %v367_v37 = vsub.f32 1.5, %v366_v35 }
 0x1b3   :  { %v591_v38 = vpop.eup %590 }
 0x1b4   :  { %v368_v40 = vmul.f32 %v589_v31, %v367_v37  ;;  %v374_v41 = vmul.f32 %v591_v38, %v362_v32  ;;  %vm380_vm4 = vweird.f32 %v591_v38 }
 0x1b5   :  { %vm381_vm6 = vmor %vm379_vm5, %vm380_vm4 }
 0x1b6   :  { %v372_v44 = vsel %vm371_vm3, %v589_v31, %v368_v40  ;;  %v375_v45 = vmul.f32 %v591_v38, %v374_v41 }
 0x1b7   :  { %v383_v48 = vmul.f32 %v372_v44, %v345_v14  ;;  %v384_v49 = vmul.f32 %v372_v44, %v346_v15 }
 0x1b8   :  { %v376_v50 = vmul.f32 0.5, %v375_v45 }
 0x1b9   :  { %v393_v51 = vmul.f32 %v389_v42, %v383_v48  ;;  %v394_v52 = vmul.f32 %v390_v43, %v384_v49 }
 0x1ba   :  { %v377_v53 = vsub.f32 1.5, %v376_v50 }
 0x1bb   :  { %v403_v54 = vadd.f32 %v399_v46, %v393_v51  ;;  %v404_v55 = vadd.f32 %v400_v47, %v394_v52 }
 0x1bc   :  { %v378_v56 = vmul.f32 %v591_v38, %v377_v53 }
 0x1bd   :  { %v407_v57 = vpack.c.bf16 %v404_v55, %v403_v54 }
 0x1be   :  { %v382_v58 = vsel %vm381_vm6, %v591_v38, %v378_v56 }
 0x1bf   :  { %409 = vst [vmem:[%s859_s6] sm:$0xff] %v407_v57  ;;  %v385_v59 = vmul.f32 %v382_v58, %v347_v21  ;;  %v386_v60 = vmul.f32 %v382_v58, %v348_v22 }
 0x1c1   :  { %v395_v61 = vmul.f32 %v389_v42, %v385_v59  ;;  %v396_v62 = vmul.f32 %v390_v43, %v386_v60 }
 0x1c3   :  { %v405_v63 = vadd.f32 %v399_v46, %v395_v61  ;;  %v406_v0 = vadd.f32 %v400_v47, %v396_v62 }
 0x1c5   :  { %v408_v1 = vpack.c.bf16 %v406_v0, %v405_v63 }
 0x1c7   :  { %410 = vst [vmem:[%s859_s6 + $0x8] sm:$0xff] %v408_v1 }

// kernel: transformer_wce_classifier_forward.6
= control target key start
LH: loop header
LB: loop body
LE: loop exit
PB: predicated region body
PF: predicated region fallthrough
CT: control target
= control target key end

     0   :  { %s2610_s12 = smov 0   ;;  %s2612_s13 = smov 0   ;;  %s3580_s0 = inlined_call_operand.vmem [shape: bf16[16,256], index: 0, kind: input, shape index: {}]   ;;  %s3581_s1 = inlined_call_operand.vmem [shape: bf16[256,768], index: 1, kind: input, shape index: {}]   ;;  %s3582_s2 = inlined_call_operand.vmem [shape: f32[1,768], index: 2, kind: input, shape index: {}]   ;;  %s3583_s3 = inlined_call_operand.vmem [shape: bf16[16,768], index: 3, kind: output, shape index: {}]  }
   0x1   :  { %s2614_s14 = smov 0   ;;  %s2616_s15 = smov 0  }
   0x2   :  { %s2618_s16 = smov 0  }
   0x3 LB: > { %s28_s17 = sadd.s32 1, %s2484_s15  ;;  %s1723_s18 = sadd.s32 4294967295, %s2488_s16   ;;  %s2488_s16 = sphi %s2618_s16, %s13_s16   ;;  %s2484_s15 = sphi %s2616_s15, %s3608_s15   ;;  %s2480_s14 = sphi %s2614_s14, %s3607_s14   ;;  %s2476_s13 = sphi %s2612_s13, %s3606_s13   ;;  %s2472_s12 = sphi %s2610_s12, %s3605_s12  }
   0x4   : > { %p30_p0 = scmp.ge.s32.totalorder %s28_s17, 2  ;;  %p76_p1 = scmp.ne.s32.totalorder %s2476_s13, %s2472_s12 }
   0x5   : > { %p77_p2 = scmp.eq.s32.totalorder %s2488_s16, 0  ;;  %p134_p4 = scmp.eq.s32.totalorder %s1723_s18, 1 }
   0x6   : > { %s3610_s17 = smov (%p30_p0, %s28_s17), 0  ;;  %s69_s20 = sadd.s32 1, %s2476_s13 }
   0x7   : > { %p78_p3 = por %p77_p2, %p76_p1  ;;  %s65_s19 = ssub.s32 %s2484_s15, %s3610_s17 }
   0x8   : > { %p67_p5 = scmp.eq.s32.totalorder %s65_s19, 0  ;;  %p2645_p6 = por %p134_p4, %p76_p1 }
   0x9   : > { %p1727_p7 = scmp.ge.s32.totalorder %s2488_s16, 2 }
   0xa   : > { %s2650_s22 = scalar_select %p67_p5, %s2476_s13, %s69_s20  }
   0xb   : > { %171 = sbr.rel (%p1727_p7) target bundleno = 183 (0xb7), region = 20 }
  0x10   : > { %174 = sbr.rel (!%p78_p3) target bundleno = 183 (0xb7), region = 24  ;;  %s176_s23 = sand.u32 (%p78_p3), 1, %s2476_s13  }
  0x11   : > { %s1729_s24 = sshll.u32 (%p78_p3), %s2484_s15, 2  ;;  %s1728_s25 = sshll.u32 (%p78_p3), %s176_s23, 9 }
  0x12   : > { %s181_s26 = ssub.s32 (%p78_p3), 6, %s1729_s24  ;;  %s2044_s27 = sshll.u32 (%p78_p3), %s2484_s15, 4 }
  0x13   : > { %p182_p8 = scmp.lt.s32.totalorder (%p78_p3), %s181_s26, 4  ;;  %s2659_s30 = scalar_lea.vmem (%p78_p3), %s3581_s1, %s2044_s27  }
  0x14   : > { %s2663_s6 = scalar_lea.vmem (%p78_p3), [#allocation3], %s1728_s25  }
  0x15   : > { %s3612_s26 = smov (!%p182_p8, %s181_s26), 4 }
  0x16   : > { %s1730_s4 = sshll.u32 %s3612_s26, 7  ;;  %s2661_s5 = sshll.u32 %s3612_s26, 2 }
  0x17   : > { %p1734_p9 = scmp.eq.s32.totalorder %s1730_s4, 0 }
  0x18   : > { %p194_p10 = scmp.lt.u32.totalorder (!%p1734_p9), %s2661_s5, 8 }
  0x19   : > { %193 = sbr.rel (%p1734_p9) target bundleno = 183 (0xb7), region = 28 }
  0x1e   : > { %197 = sbr.rel (%p194_p10) target bundleno = 143 (0x8f), region = 32  ;;  %s2667_s7 = sand.u32 (!%p194_p10), 7, %s2661_s5  }
  0x1f   : > { %p276_p11 = scmp.eq.s32.totalorder (!%p194_p10), %s2667_s7, 0  ;;  %p1735_p12 = scmp.ne.s32.totalorder (!%p194_p10), %s2667_s7, 0 }
  0x23   : > { %279 = sbr.rel (%p1735_p12) target bundleno = 73 (0x49), region = 47  ;;  %s280_s8 = sshrl.u32 (!%p1735_p12), %s2661_s5, 3 }
  0x24   : > { %s3585_s9 = smov (!%p1735_p12), %s2663_s6  ;;  %s3586_s10 = smov (!%p1735_p12), %s2659_s30 }
  0x25   : > { %s2678_s11 = smov (!%p1735_p12), 0   ;;  %s2680_s18 = smov (!%p1735_p12), 0  }
  0x28 LB: >> { %v290_v0 = vld [vmem:[%s2496_s10] sm:$0xff]  ;;  %v292_v1 = vld [vmem:[%s2496_s10 + $0x18] sm:$0xff]  ;;  %v294_v2 = vld [vmem:[%s2496_s10 + $0x30] sm:$0xff]  ;;  %s354_s19 = sadd.s32 1, %s2500_s11  ;;  %s284_s18 = sadd.s32 1, %s2504_s18   ;;  %s2504_s18 = sphi %s2680_s18, %s284_s18   ;;  %s2500_s11 = sphi %s2678_s11, %s3589_s11   ;;  %s2496_s10 = sphi %s3586_s10, %s3588_s10   ;;  %s2492_s9 = sphi %s3585_s9, %s3587_s9  }
  0x29   : >> { %291 = vst [vmem:[%s2492_s9] sm:$0xff] %v290_v0  ;;  %v296_v3 = vld [vmem:[%s2496_s10 + $0x48] sm:$0xff]  ;;  %p355_p13 = scmp.ge.s32.totalorder %s354_s19, %s280_s8  ;;  %v298_v4 = vld [vmem:[%s2496_s10 + $0x60] sm:$0xff]  ;;  %v300_v5 = vld [vmem:[%s2496_s10 + $0x78] sm:$0xff]  ;;  %p283_p0 = scmp.ge.s32.totalorder %s284_s18, %s280_s8 }
  0x2a   : >> { %293 = vst [vmem:[%s2492_s9 + $0x10] sm:$0xff] %v292_v1  ;;  %v302_v6 = vld [vmem:[%s2496_s10 + $0x90] sm:$0xff]  ;;  %v304_v7 = vld [vmem:[%s2496_s10 + $0xa8] sm:$0xff]  ;;  %v306_v8 = vld [vmem:[%s2496_s10 + $0xc0] sm:$0xff] }
  0x2b   : >> { %295 = vst [vmem:[%s2492_s9 + $0x20] sm:$0xff] %v294_v2  ;;  %s3614_s19 = smov (%p355_p13, %s354_s19), 0  ;;  %v308_v9 = vld [vmem:[%s2496_s10 + $0xd8] sm:$0xff]  ;;  %v310_v10 = vld [vmem:[%s2496_s10 + $0xf0] sm:$0xff]  ;;  %v312_v11 = vld [vmem:[%s2496_s10 + $0x108] sm:$0xff] }
  0x2c   : >> { %297 = vst [vmem:[%s2492_s9 + $0x30] sm:$0xff] %v296_v3  ;;  %s1737_s20 = sshll.u32 %s3614_s19, 3  ;;  %v314_v12 = vld [vmem:[%s2496_s10 + $0x120] sm:$0xff]  ;;  %v316_v13 = vld [vmem:[%s2496_s10 + $0x138] sm:$0xff]  ;;  %v318_v14 = vld [vmem:[%s2496_s10 + $0x150] sm:$0xff]  ;;  %s3589_s11 = smov %s3614_s19 }
  0x2d   : >> { %299 = vst [vmem:[%s2492_s9 + $0x40] sm:$0xff] %v298_v4  ;;  %s2713_s23 = scalar_lea.vmem %s2659_s30, %s1737_s20   ;;  %s2716_s24 = scalar_lea.vmem %s2663_s6, %s1737_s20 [#allocation3]   ;;  %v320_v15 = vld [vmem:[%s2496_s10 + $0x168] sm:$0xff]  ;;  %v322_v16 = vld [vmem:[%s2496_s10 + $0x180] sm:$0xff]  ;;  %v324_v17 = vld [vmem:[%s2496_s10 + $0x198] sm:$0xff] }
  0x2e   : >> { %301 = vst [vmem:[%s2492_s9 + $0x50] sm:$0xff] %v300_v5  ;;  %v326_v18 = vld [vmem:[%s2496_s10 + $0x1b0] sm:$0xff]  ;;  %v328_v19 = vld [vmem:[%s2496_s10 + $0x1c8] sm:$0xff]  ;;  %v330_v20 = vld [vmem:[%s2496_s10 + $0x1e0] sm:$0xff] }
  0x2f   : >> { %303 = vst [vmem:[%s2492_s9 + $0x60] sm:$0xff] %v302_v6  ;;  %v332_v21 = vld [vmem:[%s2496_s10 + $0x1f8] sm:$0xff]  ;;  %v334_v22 = vld [vmem:[%s2496_s10 + $0x210] sm:$0xff]  ;;  %v336_v23 = vld [vmem:[%s2496_s10 + $0x228] sm:$0xff] }
  0x30   : >> { %305 = vst [vmem:[%s2492_s9 + $0x70] sm:$0xff] %v304_v7  ;;  %v338_v24 = vld [vmem:[%s2496_s10 + $0x240] sm:$0xff]  ;;  %v340_v25 = vld [vmem:[%s2496_s10 + $0x258] sm:$0xff]  ;;  %v342_v26 = vld [vmem:[%s2496_s10 + $0x270] sm:$0xff] }
  0x31   : >> { %307 = vst [vmem:[%s2492_s9 + $0x80] sm:$0xff] %v306_v8  ;;  %v344_v27 = vld [vmem:[%s2496_s10 + $0x288] sm:$0xff]  ;;  %v346_v28 = vld [vmem:[%s2496_s10 + $0x2a0] sm:$0xff]  ;;  %v348_v29 = vld [vmem:[%s2496_s10 + $0x2b8] sm:$0xff] }
  0x32   : >> { %309 = vst [vmem:[%s2492_s9 + $0x90] sm:$0xff] %v308_v9  ;;  %v350_v30 = vld [vmem:[%s2496_s10 + $0x2d0] sm:$0xff]  ;;  %v352_v31 = vld [vmem:[%s2496_s10 + $0x2e8] sm:$0xff]  ;;  %s3588_s10 = smov %s2713_s23 }
  0x33   : >> { %311 = vst [vmem:[%s2492_s9 + $0xa0] sm:$0xff] %v310_v10 }
  0x34   : >> { %313 = vst [vmem:[%s2492_s9 + $0xb0] sm:$0xff] %v312_v11 }
  0x35   : >> { %315 = vst [vmem:[%s2492_s9 + $0xc0] sm:$0xff] %v314_v12 }
  0x36   : >> { %317 = vst [vmem:[%s2492_s9 + $0xd0] sm:$0xff] %v316_v13 }
  0x37   : >> { %319 = vst [vmem:[%s2492_s9 + $0xe0] sm:$0xff] %v318_v14 }
  0x38   : >> { %321 = vst [vmem:[%s2492_s9 + $0xf0] sm:$0xff] %v320_v15 }
  0x39   : >> { %323 = vst [vmem:[%s2492_s9 + $0x100] sm:$0xff] %v322_v16 }
  0x3a   : >> { %325 = vst [vmem:[%s2492_s9 + $0x110] sm:$0xff] %v324_v17 }
  0x3b   : >> { %327 = vst [vmem:[%s2492_s9 + $0x120] sm:$0xff] %v326_v18 }
  0x3c   : >> { %329 = vst [vmem:[%s2492_s9 + $0x130] sm:$0xff] %v328_v19 }
  0x3d   : >> { %331 = vst [vmem:[%s2492_s9 + $0x140] sm:$0xff] %v330_v20 }
  0x3e   : >> { %333 = vst [vmem:[%s2492_s9 + $0x150] sm:$0xff] %v332_v21 }
  0x3f   : >> { %335 = vst [vmem:[%s2492_s9 + $0x160] sm:$0xff] %v334_v22 }
  0x40   : >> { %337 = vst [vmem:[%s2492_s9 + $0x170] sm:$0xff] %v336_v23 }
  0x41   : >> { %339 = vst [vmem:[%s2492_s9 + $0x180] sm:$0xff] %v338_v24 }
  0x42   : >> { %341 = vst [vmem:[%s2492_s9 + $0x190] sm:$0xff] %v340_v25 }
  0x43   : >> { %343 = vst [vmem:[%s2492_s9 + $0x1a0] sm:$0xff] %v342_v26 }
  0x44   : >> { %345 = vst [vmem:[%s2492_s9 + $0x1b0] sm:$0xff] %v344_v27  ;;  %286 = sbr.rel (!%p283_p0) target bundleno = 40 (0x28), region = 227 }
  0x45   : >> { %347 = vst [vmem:[%s2492_s9 + $0x1c0] sm:$0xff] %v346_v28 }
  0x46   : >> { %349 = vst [vmem:[%s2492_s9 + $0x1d0] sm:$0xff] %v348_v29 }
  0x47   : >> { %351 = vst [vmem:[%s2492_s9 + $0x1e0] sm:$0xff] %v350_v30 }
  0x48   : >> { %353 = vst [vmem:[%s2492_s9 + $0x1f0] sm:$0xff] %v352_v31  ;;  %s3587_s9 = smov %s2716_s24 }
  0x49 PF: > { %363 = sbr.rel (%p276_p11) target bundleno = 143 (0x8f), region = 58  ;;  %s365_s25 = ssub.s32 (!%p276_p11), %s2661_s5, %s2667_s7 }
  0x4a   : > { %s369_s26 = sshrl.u32 (!%p276_p11), %s2661_s5, 3  ;;  %s2787_s27 = scalar_lea.vmem (!%p276_p11), %s2659_s30, %s365_s25 }
  0x4b   : > { %s2790_s28 = scalar_lea.vmem (!%p276_p11), %s2663_s6, %s365_s25 [#allocation3]  ;;  %s3590_s29 = smov (!%p276_p11), %s2663_s6 }
  0x4c   : > { %s3591_s4 = smov (!%p276_p11), %s2659_s30  ;;  %s2798_s8 = smov (!%p276_p11), 0  }
  0x4d   : > { %s2800_s9 = smov (!%p276_p11), 0  }
  0x4e LB: >> { %v379_v32 = vld [vmem:[%s2512_s4] sm:$0xff]  ;;  %v381_v33 = vld [vmem:[%s2512_s4 + $0x18] sm:$0xff]  ;;  %v383_v34 = vld [vmem:[%s2512_s4 + $0x30] sm:$0xff]  ;;  %s443_s10 = sadd.s32 1, %s2516_s8  ;;  %s373_s9 = sadd.s32 1, %s2520_s9   ;;  %s2520_s9 = sphi %s2800_s9, %s373_s9   ;;  %s2516_s8 = sphi %s2798_s8, %s3594_s8   ;;  %s2512_s4 = sphi %s3591_s4, %s3593_s4   ;;  %s2508_s29 = sphi %s3590_s29, %s3592_s29  }
  0x4f   : >> { %380 = vst [vmem:[%s2508_s29] sm:$0xff] %v379_v32  ;;  %v385_v35 = vld [vmem:[%s2512_s4 + $0x48] sm:$0xff]  ;;  %p444_p1 = scmp.ge.s32.totalorder %s443_s10, %s369_s26  ;;  %v387_v36 = vld [vmem:[%s2512_s4 + $0x60] sm:$0xff]  ;;  %v389_v37 = vld [vmem:[%s2512_s4 + $0x78] sm:$0xff]  ;;  %p372_p2 = scmp.ge.s32.totalorder %s373_s9, %s369_s26 }
  0x50   : >> { %382 = vst [vmem:[%s2508_s29 + $0x10] sm:$0xff] %v381_v33  ;;  %v391_v38 = vld [vmem:[%s2512_s4 + $0x90] sm:$0xff]  ;;  %v393_v39 = vld [vmem:[%s2512_s4 + $0xa8] sm:$0xff]  ;;  %v395_v40 = vld [vmem:[%s2512_s4 + $0xc0] sm:$0xff]  ;;  %s2586_s20 = smov (%p372_p2), 1  }
  0x51   : >> { %384 = vst [vmem:[%s2508_s29 + $0x20] sm:$0xff] %v383_v34  ;;  %s3616_s10 = smov (%p444_p1, %s443_s10), 0  ;;  %v397_v41 = vld [vmem:[%s2512_s4 + $0xd8] sm:$0xff]  ;;  %v399_v42 = vld [vmem:[%s2512_s4 + $0xf0] sm:$0xff]  ;;  %v401_v43 = vld [vmem:[%s2512_s4 + $0x108] sm:$0xff]  ;;  %s450_s23 = sshll.u32 (%p372_p2), %s2586_s20, %s2667_s7 }
  0x52   : >> { %386 = vst [vmem:[%s2508_s29 + $0x30] sm:$0xff] %v385_v35  ;;  %s1740_s11 = sshll.u32 %s3616_s10, 3  ;;  %v403_v44 = vld [vmem:[%s2512_s4 + $0x120] sm:$0xff]  ;;  %v405_v45 = vld [vmem:[%s2512_s4 + $0x138] sm:$0xff]  ;;  %v407_v46 = vld [vmem:[%s2512_s4 + $0x150] sm:$0xff]  ;;  %s3594_s8 = smov %s3616_s10 }
  0x53   : >> { %388 = vst [vmem:[%s2508_s29 + $0x40] sm:$0xff] %v387_v36  ;;  %s2833_s18 = scalar_lea.vmem %s2659_s30, %s1740_s11   ;;  %s2836_s19 = scalar_lea.vmem %s2663_s6, %s1740_s11 [#allocation3]   ;;  %v409_v47 = vld [vmem:[%s2512_s4 + $0x168] sm:$0xff]  ;;  %v411_v48 = vld [vmem:[%s2512_s4 + $0x180] sm:$0xff]  ;;  %v413_v49 = vld [vmem:[%s2512_s4 + $0x198] sm:$0xff] }
  0x54   : >> { %390 = vst [vmem:[%s2508_s29 + $0x50] sm:$0xff] %v389_v37  ;;  %v415_v50 = vld [vmem:[%s2512_s4 + $0x1b0] sm:$0xff]  ;;  %v417_v51 = vld [vmem:[%s2512_s4 + $0x1c8] sm:$0xff]  ;;  %v419_v52 = vld [vmem:[%s2512_s4 + $0x1e0] sm:$0xff]  ;;  %s2902_s24 = sadd.s32 (%p372_p2), 4294967295, %s450_s23 }
  0x55   : >> { %392 = vst [vmem:[%s2508_s29 + $0x60] sm:$0xff] %v391_v38  ;;  %v421_v53 = vld [vmem:[%s2512_s4 + $0x1f8] sm:$0xff]  ;;  %v423_v54 = vld [vmem:[%s2512_s4 + $0x210] sm:$0xff]  ;;  %v425_v55 = vld [vmem:[%s2512_s4 + $0x228] sm:$0xff] }
  0x56   : >> { %394 = vst [vmem:[%s2508_s29 + $0x70] sm:$0xff] %v393_v39  ;;  %v427_v56 = vld [vmem:[%s2512_s4 + $0x240] sm:$0xff]  ;;  %v429_v57 = vld [vmem:[%s2512_s4 + $0x258] sm:$0xff]  ;;  %v431_v58 = vld [vmem:[%s2512_s4 + $0x270] sm:$0xff] }
  0x57   : >> { %396 = vst [vmem:[%s2508_s29 + $0x80] sm:$0xff] %v395_v40  ;;  %v433_v59 = vld [vmem:[%s2512_s4 + $0x288] sm:$0xff]  ;;  %v435_v60 = vld [vmem:[%s2512_s4 + $0x2a0] sm:$0xff]  ;;  %v437_v61 = vld [vmem:[%s2512_s4 + $0x2b8] sm:$0xff] }
  0x58   : >> { %398 = vst [vmem:[%s2508_s29 + $0x90] sm:$0xff] %v397_v41  ;;  %v439_v62 = vld [vmem:[%s2512_s4 + $0x2d0] sm:$0xff]  ;;  %v441_v63 = vld [vmem:[%s2512_s4 + $0x2e8] sm:$0xff]  ;;  %s3593_s4 = smov %s2833_s18 }
  0x59   : >> { %400 = vst [vmem:[%s2508_s29 + $0xa0] sm:$0xff] %v399_v42  ;;  %v460_v0 = vld [vmem:[%s2787_s27] sm:%s2902_s24] (%p372_p2) }
  0x5a   : >> { %402 = vst [vmem:[%s2508_s29 + $0xb0] sm:$0xff] %v401_v43  ;;  %v462_v1 = vld [vmem:[%s2787_s27 + $0x18] sm:%s2902_s24] (%p372_p2) }
  0x5b   : >> { %404 = vst [vmem:[%s2508_s29 + $0xc0] sm:$0xff] %v403_v44  ;;  %v464_v2 = vld [vmem:[%s2787_s27 + $0x30] sm:%s2902_s24] (%p372_p2) }
  0x5c   : >> { %406 = vst [vmem:[%s2508_s29 + $0xd0] sm:$0xff] %v405_v45  ;;  %v466_v3 = vld [vmem:[%s2787_s27 + $0x48] sm:%s2902_s24] (%p372_p2) }
  0x5d   : >> { %408 = vst [vmem:[%s2508_s29 + $0xe0] sm:$0xff] %v407_v46  ;;  %v468_v4 = vld [vmem:[%s2787_s27 + $0x60] sm:%s2902_s24] (%p372_p2) }
  0x5e   : >> { %410 = vst [vmem:[%s2508_s29 + $0xf0] sm:$0xff] %v409_v47  ;;  %v470_v5 = vld [vmem:[%s2787_s27 + $0x78] sm:%s2902_s24] (%p372_p2) }
  0x5f   : >> { %412 = vst [vmem:[%s2508_s29 + $0x100] sm:$0xff] %v411_v48  ;;  %v472_v6 = vld [vmem:[%s2787_s27 + $0x90] sm:%s2902_s24] (%p372_p2) }
  0x60   : >> { %414 = vst [vmem:[%s2508_s29 + $0x110] sm:$0xff] %v413_v49  ;;  %v474_v7 = vld [vmem:[%s2787_s27 + $0xa8] sm:%s2902_s24] (%p372_p2) }
  0x61   : >> { %416 = vst [vmem:[%s2508_s29 + $0x120] sm:$0xff] %v415_v50  ;;  %v476_v8 = vld [vmem:[%s2787_s27 + $0xc0] sm:%s2902_s24] (%p372_p2) }
  0x62   : >> { %418 = vst [vmem:[%s2508_s29 + $0x130] sm:$0xff] %v417_v51  ;;  %v478_v9 = vld [vmem:[%s2787_s27 + $0xd8] sm:%s2902_s24] (%p372_p2) }
  0x63   : >> { %420 = vst [vmem:[%s2508_s29 + $0x140] sm:$0xff] %v419_v52  ;;  %v480_v10 = vld [vmem:[%s2787_s27 + $0xf0] sm:%s2902_s24] (%p372_p2) }
  0x64   : >> { %422 = vst [vmem:[%s2508_s29 + $0x150] sm:$0xff] %v421_v53  ;;  %v482_v11 = vld [vmem:[%s2787_s27 + $0x108] sm:%s2902_s24] (%p372_p2) }
  0x65   : >> { %424 = vst [vmem:[%s2508_s29 + $0x160] sm:$0xff] %v423_v54  ;;  %v484_v12 = vld [vmem:[%s2787_s27 + $0x120] sm:%s2902_s24] (%p372_p2) }
  0x66   : >> { %426 = vst [vmem:[%s2508_s29 + $0x170] sm:$0xff] %v425_v55  ;;  %v486_v13 = vld [vmem:[%s2787_s27 + $0x138] sm:%s2902_s24] (%p372_p2) }
  0x67   : >> { %428 = vst [vmem:[%s2508_s29 + $0x180] sm:$0xff] %v427_v56  ;;  %v488_v14 = vld [vmem:[%s2787_s27 + $0x150] sm:%s2902_s24] (%p372_p2) }
  0x68   : >> { %430 = vst [vmem:[%s2508_s29 + $0x190] sm:$0xff] %v429_v57  ;;  %v490_v15 = vld [vmem:[%s2787_s27 + $0x168] sm:%s2902_s24] (%p372_p2) }
  0x69   : >> { %432 = vst [vmem:[%s2508_s29 + $0x1a0] sm:$0xff] %v431_v58  ;;  %v492_v16 = vld [vmem:[%s2787_s27 + $0x180] sm:%s2902_s24] (%p372_p2) }
  0x6a   : >> { %434 = vst [vmem:[%s2508_s29 + $0x1b0] sm:$0xff] %v433_v59  ;;  %375 = sbr.rel (!%p372_p2) target bundleno = 78 (0x4e), region = 238  ;;  %v494_v17 = vld [vmem:[%s2787_s27 + $0x198] sm:%s2902_s24] (%p372_p2) }
  0x6b   : >> { %436 = vst [vmem:[%s2508_s29 + $0x1c0] sm:$0xff] %v435_v60  ;;  %v496_v18 = vld [vmem:[%s2787_s27 + $0x1b0] sm:%s2902_s24] (%p372_p2) }
  0x6c   : >> { %438 = vst [vmem:[%s2508_s29 + $0x1d0] sm:$0xff] %v437_v61  ;;  %v498_v19 = vld [vmem:[%s2787_s27 + $0x1c8] sm:%s2902_s24] (%p372_p2) }
  0x6d   : >> { %440 = vst [vmem:[%s2508_s29 + $0x1e0] sm:$0xff] %v439_v62  ;;  %v500_v20 = vld [vmem:[%s2787_s27 + $0x1e0] sm:%s2902_s24] (%p372_p2) }
  0x6e   : >> { %442 = vst [vmem:[%s2508_s29 + $0x1f0] sm:$0xff] %v441_v63  ;;  %s3592_s29 = smov %s2836_s19  ;;  %v502_v21 = vld [vmem:[%s2787_s27 + $0x1f8] sm:%s2902_s24] (%p372_p2) }
  0x6f   : > { %461 = vst [vmem:[%s2790_s28] sm:%s2902_s24] %v460_v0  ;;  %v504_v22 = vld [vmem:[%s2787_s27 + $0x210] sm:%s2902_s24] }
  0x70   : > { %463 = vst [vmem:[%s2790_s28 + $0x10] sm:%s2902_s24] %v462_v1  ;;  %v506_v23 = vld [vmem:[%s2787_s27 + $0x228] sm:%s2902_s24] }
  0x71   : > { %465 = vst [vmem:[%s2790_s28 + $0x20] sm:%s2902_s24] %v464_v2  ;;  %v508_v24 = vld [vmem:[%s2787_s27 + $0x240] sm:%s2902_s24] }
  0x72   : > { %467 = vst [vmem:[%s2790_s28 + $0x30] sm:%s2902_s24] %v466_v3  ;;  %v510_v25 = vld [vmem:[%s2787_s27 + $0x258] sm:%s2902_s24] }
  0x73   : > { %469 = vst [vmem:[%s2790_s28 + $0x40] sm:%s2902_s24] %v468_v4  ;;  %v512_v26 = vld [vmem:[%s2787_s27 + $0x270] sm:%s2902_s24] }
  0x74   : > { %471 = vst [vmem:[%s2790_s28 + $0x50] sm:%s2902_s24] %v470_v5  ;;  %v514_v27 = vld [vmem:[%s2787_s27 + $0x288] sm:%s2902_s24] }
  0x75   : > { %473 = vst [vmem:[%s2790_s28 + $0x60] sm:%s2902_s24] %v472_v6  ;;  %v516_v28 = vld [vmem:[%s2787_s27 + $0x2a0] sm:%s2902_s24] }
  0x76   : > { %475 = vst [vmem:[%s2790_s28 + $0x70] sm:%s2902_s24] %v474_v7  ;;  %v518_v29 = vld [vmem:[%s2787_s27 + $0x2b8] sm:%s2902_s24] }
  0x77   : > { %477 = vst [vmem:[%s2790_s28 + $0x80] sm:%s2902_s24] %v476_v8  ;;  %v520_v30 = vld [vmem:[%s2787_s27 + $0x2d0] sm:%s2902_s24] }
  0x78   : > { %479 = vst [vmem:[%s2790_s28 + $0x90] sm:%s2902_s24] %v478_v9  ;;  %v522_v31 = vld [vmem:[%s2787_s27 + $0x2e8] sm:%s2902_s24] }
  0x79   : > { %481 = vst [vmem:[%s2790_s28 + $0xa0] sm:%s2902_s24] %v480_v10 }
  0x7a   : > { %483 = vst [vmem:[%s2790_s28 + $0xb0] sm:%s2902_s24] %v482_v11 }
  0x7b   : > { %485 = vst [vmem:[%s2790_s28 + $0xc0] sm:%s2902_s24] %v484_v12 }
  0x7c   : > { %487 = vst [vmem:[%s2790_s28 + $0xd0] sm:%s2902_s24] %v486_v13 }
  0x7d   : > { %489 = vst [vmem:[%s2790_s28 + $0xe0] sm:%s2902_s24] %v488_v14 }
  0x7e   : > { %491 = vst [vmem:[%s2790_s28 + $0xf0] sm:%s2902_s24] %v490_v15 }
  0x7f   : > { %493 = vst [vmem:[%s2790_s28 + $0x100] sm:%s2902_s24] %v492_v16 }
  0x80   : > { %495 = vst [vmem:[%s2790_s28 + $0x110] sm:%s2902_s24] %v494_v17 }
  0x81   : > { %497 = vst [vmem:[%s2790_s28 + $0x120] sm:%s2902_s24] %v496_v18 }
  0x82   : > { %499 = vst [vmem:[%s2790_s28 + $0x130] sm:%s2902_s24] %v498_v19 }
  0x83   : > { %501 = vst [vmem:[%s2790_s28 + $0x140] sm:%s2902_s24] %v500_v20 }
  0x84   : > { %503 = vst [vmem:[%s2790_s28 + $0x150] sm:%s2902_s24] %v502_v21 }
  0x85   : > { %505 = vst [vmem:[%s2790_s28 + $0x160] sm:%s2902_s24] %v504_v22 }
  0x86   : > { %507 = vst [vmem:[%s2790_s28 + $0x170] sm:%s2902_s24] %v506_v23 }
  0x87   : > { %509 = vst [vmem:[%s2790_s28 + $0x180] sm:%s2902_s24] %v508_v24 }
  0x88   : > { %511 = vst [vmem:[%s2790_s28 + $0x190] sm:%s2902_s24] %v510_v25 }
  0x89   : > { %513 = vst [vmem:[%s2790_s28 + $0x1a0] sm:%s2902_s24] %v512_v26 }
  0x8a   : > { %515 = vst [vmem:[%s2790_s28 + $0x1b0] sm:%s2902_s24] %v514_v27 }
  0x8b   : > { %517 = vst [vmem:[%s2790_s28 + $0x1c0] sm:%s2902_s24] %v516_v28 }
  0x8c   : > { %519 = vst [vmem:[%s2790_s28 + $0x1d0] sm:%s2902_s24] %v518_v29 }
  0x8d   : > { %521 = vst [vmem:[%s2790_s28 + $0x1e0] sm:%s2902_s24] %v520_v30 }
  0x8e   : > { %523 = vst [vmem:[%s2790_s28 + $0x1f0] sm:%s2902_s24] %v522_v31 }
  0x8f PF: > { %p1743_p3 = scmp.ge.u32.totalorder %s2661_s5, 8 }
  0x90   : > { %s2587_s7 = smov (!%p1743_p3), 1  }
  0x91   : > { %200 = sbr.rel (%p1743_p3) target bundleno = 183 (0xb7), region = 36  ;;  %s201_s25 = sshll.u32 (!%p1743_p3), %s2587_s7, %s2661_s5 }
  0x92   : > { %s3034_s26 = sadd.s32 (!%p1743_p3), 4294967295, %s201_s25 }
  0x96   : > { %v211_v32 = vld [vmem:[%s2659_s30] sm:%s3034_s26]  ;;  %v213_v33 = vld [vmem:[%s2659_s30 + $0x18] sm:%s3034_s26] }
  0x97   : > { %212 = vst [vmem:[%s2663_s6] sm:%s3034_s26] %v211_v32  ;;  %v215_v34 = vld [vmem:[%s2659_s30 + $0x30] sm:%s3034_s26] }
  0x98   : > { %214 = vst [vmem:[%s2663_s6 + $0x10] sm:%s3034_s26] %v213_v33  ;;  %v217_v35 = vld [vmem:[%s2659_s30 + $0x48] sm:%s3034_s26] }
  0x99   : > { %216 = vst [vmem:[%s2663_s6 + $0x20] sm:%s3034_s26] %v215_v34  ;;  %v219_v36 = vld [vmem:[%s2659_s30 + $0x60] sm:%s3034_s26] }
  0x9a   : > { %218 = vst [vmem:[%s2663_s6 + $0x30] sm:%s3034_s26] %v217_v35  ;;  %v221_v37 = vld [vmem:[%s2659_s30 + $0x78] sm:%s3034_s26] }
  0x9b   : > { %220 = vst [vmem:[%s2663_s6 + $0x40] sm:%s3034_s26] %v219_v36  ;;  %v223_v38 = vld [vmem:[%s2659_s30 + $0x90] sm:%s3034_s26] }
  0x9c   : > { %222 = vst [vmem:[%s2663_s6 + $0x50] sm:%s3034_s26] %v221_v37  ;;  %v225_v39 = vld [vmem:[%s2659_s30 + $0xa8] sm:%s3034_s26] }
  0x9d   : > { %224 = vst [vmem:[%s2663_s6 + $0x60] sm:%s3034_s26] %v223_v38  ;;  %v227_v40 = vld [vmem:[%s2659_s30 + $0xc0] sm:%s3034_s26] }
  0x9e   : > { %226 = vst [vmem:[%s2663_s6 + $0x70] sm:%s3034_s26] %v225_v39  ;;  %v229_v41 = vld [vmem:[%s2659_s30 + $0xd8] sm:%s3034_s26] }
  0x9f   : > { %228 = vst [vmem:[%s2663_s6 + $0x80] sm:%s3034_s26] %v227_v40  ;;  %v231_v42 = vld [vmem:[%s2659_s30 + $0xf0] sm:%s3034_s26] }
  0xa0   : > { %230 = vst [vmem:[%s2663_s6 + $0x90] sm:%s3034_s26] %v229_v41  ;;  %v233_v43 = vld [vmem:[%s2659_s30 + $0x108] sm:%s3034_s26] }
  0xa1   : > { %232 = vst [vmem:[%s2663_s6 + $0xa0] sm:%s3034_s26] %v231_v42  ;;  %v235_v44 = vld [vmem:[%s2659_s30 + $0x120] sm:%s3034_s26] }
  0xa2   : > { %234 = vst [vmem:[%s2663_s6 + $0xb0] sm:%s3034_s26] %v233_v43  ;;  %v237_v45 = vld [vmem:[%s2659_s30 + $0x138] sm:%s3034_s26] }
  0xa3   : > { %236 = vst [vmem:[%s2663_s6 + $0xc0] sm:%s3034_s26] %v235_v44  ;;  %v239_v46 = vld [vmem:[%s2659_s30 + $0x150] sm:%s3034_s26] }
  0xa4   : > { %238 = vst [vmem:[%s2663_s6 + $0xd0] sm:%s3034_s26] %v237_v45  ;;  %v241_v47 = vld [vmem:[%s2659_s30 + $0x168] sm:%s3034_s26] }
  0xa5   : > { %240 = vst [vmem:[%s2663_s6 + $0xe0] sm:%s3034_s26] %v239_v46  ;;  %v243_v48 = vld [vmem:[%s2659_s30 + $0x180] sm:%s3034_s26] }
  0xa6   : > { %242 = vst [vmem:[%s2663_s6 + $0xf0] sm:%s3034_s26] %v241_v47  ;;  %v245_v49 = vld [vmem:[%s2659_s30 + $0x198] sm:%s3034_s26] }
  0xa7   : > { %244 = vst [vmem:[%s2663_s6 + $0x100] sm:%s3034_s26] %v243_v48  ;;  %v247_v50 = vld [vmem:[%s2659_s30 + $0x1b0] sm:%s3034_s26] }
  0xa8   : > { %246 = vst [vmem:[%s2663_s6 + $0x110] sm:%s3034_s26] %v245_v49  ;;  %v249_v51 = vld [vmem:[%s2659_s30 + $0x1c8] sm:%s3034_s26] }
  0xa9   : > { %248 = vst [vmem:[%s2663_s6 + $0x120] sm:%s3034_s26] %v247_v50  ;;  %v251_v52 = vld [vmem:[%s2659_s30 + $0x1e0] sm:%s3034_s26] }
  0xaa   : > { %250 = vst [vmem:[%s2663_s6 + $0x130] sm:%s3034_s26] %v249_v51  ;;  %v253_v53 = vld [vmem:[%s2659_s30 + $0x1f8] sm:%s3034_s26] }
  0xab   : > { %252 = vst [vmem:[%s2663_s6 + $0x140] sm:%s3034_s26] %v251_v52  ;;  %v255_v54 = vld [vmem:[%s2659_s30 + $0x210] sm:%s3034_s26] }
  0xac   : > { %254 = vst [vmem:[%s2663_s6 + $0x150] sm:%s3034_s26] %v253_v53  ;;  %v257_v55 = vld [vmem:[%s2659_s30 + $0x228] sm:%s3034_s26] }
  0xad   : > { %256 = vst [vmem:[%s2663_s6 + $0x160] sm:%s3034_s26] %v255_v54  ;;  %v259_v56 = vld [vmem:[%s2659_s30 + $0x240] sm:%s3034_s26] }
  0xae   : > { %258 = vst [vmem:[%s2663_s6 + $0x170] sm:%s3034_s26] %v257_v55  ;;  %v261_v57 = vld [vmem:[%s2659_s30 + $0x258] sm:%s3034_s26] }
  0xaf   : > { %260 = vst [vmem:[%s2663_s6 + $0x180] sm:%s3034_s26] %v259_v56  ;;  %v263_v58 = vld [vmem:[%s2659_s30 + $0x270] sm:%s3034_s26] }
  0xb0   : > { %262 = vst [vmem:[%s2663_s6 + $0x190] sm:%s3034_s26] %v261_v57  ;;  %v265_v59 = vld [vmem:[%s2659_s30 + $0x288] sm:%s3034_s26] }
  0xb1   : > { %264 = vst [vmem:[%s2663_s6 + $0x1a0] sm:%s3034_s26] %v263_v58  ;;  %v267_v60 = vld [vmem:[%s2659_s30 + $0x2a0] sm:%s3034_s26] }
  0xb2   : > { %266 = vst [vmem:[%s2663_s6 + $0x1b0] sm:%s3034_s26] %v265_v59  ;;  %v269_v61 = vld [vmem:[%s2659_s30 + $0x2b8] sm:%s3034_s26] }
  0xb3   : > { %268 = vst [vmem:[%s2663_s6 + $0x1c0] sm:%s3034_s26] %v267_v60  ;;  %v271_v62 = vld [vmem:[%s2659_s30 + $0x2d0] sm:%s3034_s26] }
  0xb4   : > { %270 = vst [vmem:[%s2663_s6 + $0x1d0] sm:%s3034_s26] %v269_v61  ;;  %v273_v63 = vld [vmem:[%s2659_s30 + $0x2e8] sm:%s3034_s26] }
  0xb5   : > { %272 = vst [vmem:[%s2663_s6 + $0x1e0] sm:%s3034_s26] %v271_v62 }
  0xb6   : > { %274 = vst [vmem:[%s2663_s6 + $0x1f0] sm:%s3034_s26] %v273_v63 }
  0xb7 PF: > { %p1745_p4 = scmp.ge.s32.totalorder %s2488_s16, 1  ;;  %p540_p5 = scmp.lt.s32.totalorder %s2488_s16, 3 }
  0xb9   : > { %p541_p7 = pnand %p1745_p4, %p540_p5 }
  0xba   : > { %s547_s5 = sand.u32 (!%p541_p7), 1, %s2472_s12   ;;  %s3324_s18 = sshll.u32 (!%p541_p7), %s2480_s14, 2 }
  0xbb   : > { %544 = sbr.rel (%p541_p7) target bundleno = 531 (0x213), region = 80  ;;  %s1746_s27 = sshll.u32 (!%p541_p7), %s547_s5, 9 }
  0xbc   : > { %s3169_s28 = scalar_lea.vmem (!%p541_p7), [#allocation3], %s1746_s27  ;;  %p608_p8 = scmp.lt.s32.totalorder (!%p541_p7), %s3324_s18, 5 }
  0xbd   : > { %s1747_s7 = sshll.u32 (!%p541_p7), %s547_s5, 5 }
  0xbe   : > { %s3333_s25 = scalar_lea.vmem (!%p541_p7), [#allocation4], %s1747_s7  }
  0xc0   : > { %v1871_v0 = vld [vmem:[%s3169_s28 + $0xe0] sm:$0xf]  ;;  %v2077_v1 = vld [vmem:[%s3169_s28 + $0xec] sm:$0xf0]  ;;  %v2075_v5 = vld [vmem:[%s3169_s28 + $0xe4] sm:$0xf] }
  0xc1   : > { %v1999_v2 = vld [vmem:[%s3169_s28 + $0x1e0] sm:$0xf]  ;;  %v1872_v3 = vor.u32 %v2077_v1, %v1871_v0  ;;  %v2109_v4 = vld [vmem:[%s3169_s28 + $0x1ec] sm:$0xf0]  ;;  %v1873_v6 = vld [vmem:[%s3169_s28 + $0xf0] sm:$0xf0] }
  0xc2   : > { %v2000_v7 = vor.u32 %v2109_v4, %v1999_v2  ;;  %v1876_v8 = vor.u32 %v2075_v5, %v1873_v6  ;;  %v2107_v9 = vld [vmem:[%s3169_s28 + $0x1e4] sm:$0xf]  ;;  %v2001_v10 = vld [vmem:[%s3169_s28 + $0x1f0] sm:$0xf0]  ;;  %v1855_v11 = vld [vmem:[%s3169_s28 + $0xc0] sm:$0xf] }
  0xc3   : > { %1037 = vmatpush.bf16.msra.mxu0 %v1872_v3  ;;  %v2004_v12 = vor.u32 %v2107_v9, %v2001_v10  ;;  %v2073_v13 = vld [vmem:[%s3169_s28 + $0xcc] sm:$0xf0]  ;;  %v1983_v14 = vld [vmem:[%s3169_s28 + $0x1c0] sm:$0xf]  ;;  %v2071_v18 = vld [vmem:[%s3169_s28 + $0xc4] sm:$0xf] }
  0xc4   : > { %v2105_v15 = vld [vmem:[%s3169_s28 + $0x1cc] sm:$0xf0]  ;;  %1051 = vmatpush.bf16.msra.mxu1 %v2000_v7  ;;  %1065 = vmatpush.bf16.msra.mxu2 %v1876_v8  ;;  %v1856_v16 = vor.u32 %v2073_v13, %v1855_v11  ;;  %v1857_v19 = vld [vmem:[%s3169_s28 + $0xd0] sm:$0xf0]  ;;  %v2103_v20 = vld [vmem:[%s3169_s28 + $0x1c4] sm:$0xf] }
  0xc5   : > { %v1984_v17 = vor.u32 %v2105_v15, %v1983_v14  ;;  %1079 = vmatpush.bf16.msra.mxu3 %v2004_v12  ;;  %v1860_v21 = vor.u32 %v2071_v18, %v1857_v19  ;;  %v1985_v22 = vld [vmem:[%s3169_s28 + $0x1d0] sm:$0xf0]  ;;  %v1839_v23 = vld [vmem:[%s3169_s28 + $0xa0] sm:$0xf]  ;;  %v2069_v24 = vld [vmem:[%s3169_s28 + $0xac] sm:$0xf0] }
  0xc6   : > { %v1988_v25 = vor.u32 %v2103_v20, %v1985_v22  ;;  %v1967_v26 = vld [vmem:[%s3169_s28 + $0x1a0] sm:$0xf]  ;;  %v2101_v27 = vld [vmem:[%s3169_s28 + $0x1ac] sm:$0xf0]  ;;  %v2067_v28 = vld [vmem:[%s3169_s28 + $0xa4] sm:$0xf]  ;;  %v1840_v29 = vor.u32 %v2069_v24, %v1839_v23 }
  0xc7   : > { %1038 = vmatpush.bf16.msra.mxu0 %v1856_v16  ;;  %v1841_v30 = vld [vmem:[%s3169_s28 + $0xb0] sm:$0xf0]  ;;  %v2099_v31 = vld [vmem:[%s3169_s28 + $0x1a4] sm:$0xf]  ;;  %v1968_v33 = vor.u32 %v2101_v27, %v1967_v26  ;;  %v1823_v35 = vld [vmem:[%s3169_s28 + $0x80] sm:$0xf] }
  0xc8   : > { %v1969_v32 = vld [vmem:[%s3169_s28 + $0x1b0] sm:$0xf0]  ;;  %1052 = vmatpush.bf16.msra.mxu1 %v1984_v17  ;;  %1066 = vmatpush.bf16.msra.mxu2 %v1860_v21  ;;  %v1844_v34 = vor.u32 %v2067_v28, %v1841_v30  ;;  %v2065_v36 = vld [vmem:[%s3169_s28 + $0x8c] sm:$0xf0]  ;;  %v1951_v37 = vld [vmem:[%s3169_s28 + $0x180] sm:$0xf] }
  0xc9   : > { %1080 = vmatpush.bf16.msra.mxu3 %v1988_v25  ;;  %v1972_v38 = vor.u32 %v2099_v31, %v1969_v32  ;;  %v2097_v39 = vld [vmem:[%s3169_s28 + $0x18c] sm:$0xf0]  ;;  %v2063_v40 = vld [vmem:[%s3169_s28 + $0x84] sm:$0xf]  ;;  %v1825_v41 = vld [vmem:[%s3169_s28 + $0x90] sm:$0xf0]  ;;  %v1824_v44 = vor.u32 %v2065_v36, %v1823_v35 }
  0xca   : > { %v2095_v42 = vld [vmem:[%s3169_s28 + $0x184] sm:$0xf]  ;;  %v1953_v43 = vld [vmem:[%s3169_s28 + $0x190] sm:$0xf0]  ;;  %v1952_v45 = vor.u32 %v2097_v39, %v1951_v37  ;;  %v1828_v46 = vor.u32 %v2063_v40, %v1825_v41  ;;  %v1807_v47 = vld [vmem:[%s3169_s28 + $0x60] sm:$0xf] }
  0xcb   : > { %1039 = vmatpush.bf16.msra.mxu0 %v1840_v29  ;;  %v2061_v48 = vld [vmem:[%s3169_s28 + $0x6c] sm:$0xf0]  ;;  %v1935_v49 = vld [vmem:[%s3169_s28 + $0x160] sm:$0xf]  ;;  %v1956_v50 = vor.u32 %v2095_v42, %v1953_v43  ;;  %v2059_v52 = vld [vmem:[%s3169_s28 + $0x64] sm:$0xf] }
  0xcc   : > { %1053 = vmatpush.bf16.msra.mxu1 %v1968_v33  ;;  %1067 = vmatpush.bf16.msra.mxu2 %v1844_v34  ;;  %v2093_v51 = vld [vmem:[%s3169_s28 + $0x16c] sm:$0xf0]  ;;  %v1809_v53 = vld [vmem:[%s3169_s28 + $0x70] sm:$0xf0]  ;;  %v2091_v54 = vld [vmem:[%s3169_s28 + $0x164] sm:$0xf]  ;;  %v1808_v56 = vor.u32 %v2061_v48, %v1807_v47 }
  0xcd   : > { %1081 = vmatpush.bf16.msra.mxu3 %v1972_v38  ;;  %v1937_v55 = vld [vmem:[%s3169_s28 + $0x170] sm:$0xf0]  ;;  %v1936_v57 = vor.u32 %v2093_v51, %v1935_v49  ;;  %v1812_v58 = vor.u32 %v2059_v52, %v1809_v53  ;;  %v1791_v59 = vld [vmem:[%s3169_s28 + $0x40] sm:$0xf]  ;;  %v2057_v60 = vld [vmem:[%s3169_s28 + $0x4c] sm:$0xf0] }
  0xce   : > { %v1919_v61 = vld [vmem:[%s3169_s28 + $0x140] sm:$0xf]  ;;  %v1940_v62 = vor.u32 %v2091_v54, %v1937_v55  ;;  %v2089_v63 = vld [vmem:[%s3169_s28 + $0x14c] sm:$0xf0]  ;;  %v2055_v0 = vld [vmem:[%s3169_s28 + $0x44] sm:$0xf]  ;;  %v1792_v4 = vor.u32 %v2057_v60, %v1791_v59 }
  0xcf   : > { %1040 = vmatpush.bf16.msra.mxu0 %v1824_v44  ;;  %v1793_v1 = vld [vmem:[%s3169_s28 + $0x50] sm:$0xf0]  ;;  %v2087_v2 = vld [vmem:[%s3169_s28 + $0x144] sm:$0xf]  ;;  %v1920_v5 = vor.u32 %v2089_v63, %v1919_v61  ;;  %v1775_v7 = vld [vmem:[%s3169_s28 + $0x20] sm:$0xf] }
  0xd0   : > { %1054 = vmatpush.bf16.msra.mxu1 %v1952_v45  ;;  %1068 = vmatpush.bf16.msra.mxu2 %v1828_v46  ;;  %v1921_v3 = vld [vmem:[%s3169_s28 + $0x150] sm:$0xf0]  ;;  %v1796_v6 = vor.u32 %v2055_v0, %v1793_v1  ;;  %v2053_v8 = vld [vmem:[%s3169_s28 + $0x2c] sm:$0xf0]  ;;  %v1903_v9 = vld [vmem:[%s3169_s28 + $0x120] sm:$0xf] }
  0xd1   : > { %1082 = vmatpush.bf16.msra.mxu3 %v1956_v50  ;;  %v1924_v10 = vor.u32 %v2087_v2, %v1921_v3  ;;  %v2085_v11 = vld [vmem:[%s3169_s28 + $0x12c] sm:$0xf0]  ;;  %v2051_v12 = vld [vmem:[%s3169_s28 + $0x24] sm:$0xf]  ;;  %v1777_v13 = vld [vmem:[%s3169_s28 + $0x30] sm:$0xf0]  ;;  %v1776_v16 = vor.u32 %v2053_v8, %v1775_v7 }
  0xd2   : > { %v2083_v14 = vld [vmem:[%s3169_s28 + $0x124] sm:$0xf]  ;;  %v1905_v15 = vld [vmem:[%s3169_s28 + $0x130] sm:$0xf0]  ;;  %v1759_v17 = vld [vmem:[%s3169_s28] sm:$0xf]  ;;  %v1904_v20 = vor.u32 %v2085_v11, %v1903_v9  ;;  %v1780_v21 = vor.u32 %v2051_v12, %v1777_v13 }
  0xd3   : > { %1041 = vmatpush.bf16.msra.mxu0 %v1808_v56  ;;  %v2049_v18 = vld [vmem:[%s3169_s28 + $0xc] sm:$0xf0]  ;;  %v1887_v19 = vld [vmem:[%s3169_s28 + $0x100] sm:$0xf]  ;;  %v2047_v23 = vld [vmem:[%s3169_s28 + $0x4] sm:$0xf]  ;;  %v1908_v25 = vor.u32 %v2083_v14, %v1905_v15 }
  0xd4   : > { %1055 = vmatpush.bf16.msra.mxu1 %v1936_v57  ;;  %1069 = vmatpush.bf16.msra.mxu2 %v1812_v58  ;;  %v2081_v22 = vld [vmem:[%s3169_s28 + $0x10c] sm:$0xf0]  ;;  %v1761_v24 = vld [vmem:[%s3169_s28 + $0x10] sm:$0xf0]  ;;  %v2079_v26 = vld [vmem:[%s3169_s28 + $0x104] sm:$0xf]  ;;  %v1760_v32 = vor.u32 %v2049_v18, %v1759_v17 }
  0xd5   : > { %1083 = vmatpush.bf16.msra.mxu3 %v1940_v62  ;;  %v1889_v27 = vld [vmem:[%s3169_s28 + $0x110] sm:$0xf0]  ;;  %v1879_v28 = vld [vmem:[%s3169_s28 + $0xe8] sm:$0xf]  ;;  %v2078_v29 = vld [vmem:[%s3169_s28 + $0xf4] sm:$0xf0]  ;;  %v1888_v36 = vor.u32 %v2081_v22, %v1887_v19  ;;  %v1764_v37 = vor.u32 %v2047_v23, %v1761_v24 }
  0xd6   : > { %v2007_v30 = vld [vmem:[%s3169_s28 + $0x1e8] sm:$0xf]  ;;  %v2110_v31 = vld [vmem:[%s3169_s28 + $0x1f4] sm:$0xf0]  ;;  %v2076_v33 = vld [vmem:[%s3169_s28 + $0xec] sm:$0xf]  ;;  %v1892_v41 = vor.u32 %v2079_v26, %v1889_v27  ;;  %v1880_v42 = vor.u32 %v2078_v29, %v1879_v28 }
  0xd7   : > { %1042 = vmatpush.bf16.msra.mxu0 %v1792_v4  ;;  %v1881_v34 = vld [vmem:[%s3169_s28 + $0xf8] sm:$0xf0]  ;;  %v2108_v35 = vld [vmem:[%s3169_s28 + $0x1ec] sm:$0xf]  ;;  %v1751_v39 = vld [vmem:[%s3580_s0] sm:$0xf]  ;;  %v2008_v45 = vor.u32 %v2110_v31, %v2007_v30 }
  0xd8   : > { %1056 = vmatpush.bf16.msra.mxu1 %v1920_v5  ;;  %1070 = vmatpush.bf16.msra.mxu2 %v1796_v6  ;;  %v2009_v38 = vld [vmem:[%s3169_s28 + $0x1f8] sm:$0xf0]  ;;  %v2046_v40 = vld [vmem:[%s3580_s0 + $0x4] sm:$0xf0]  ;;  %v2045_v43 = vld [vmem:[%s3580_s0 + $0x4] sm:$0xf]  ;;  %v1884_v46 = vor.u32 %v2076_v33, %v1881_v34 }
  0xd9   : > { %1084 = vmatpush.bf16.msra.mxu3 %v1924_v10  ;;  %v1753_v44 = vld [vmem:[%s3580_s0 + $0x8] sm:$0xf0]  ;;  %v1863_v47 = vld [vmem:[%s3169_s28 + $0xc8] sm:$0xf]  ;;  %v2074_v48 = vld [vmem:[%s3169_s28 + $0xd4] sm:$0xf0]  ;;  %v2012_v50 = vor.u32 %v2108_v35, %v2009_v38  ;;  %v3261_v54 = vor.u32 %v2046_v40, %v1751_v39 }
  0xda   : > { %v1991_v49 = vld [vmem:[%s3169_s28 + $0x1c8] sm:$0xf]  ;;  %v2106_v51 = vld [vmem:[%s3169_s28 + $0x1d4] sm:$0xf0]  ;;  %v2072_v52 = vld [vmem:[%s3169_s28 + $0xcc] sm:$0xf]  ;;  %v3265_v57 = vor.u32 %v2045_v43, %v1753_v44  ;;  %v1864_v58 = vor.u32 %v2074_v48, %v1863_v47 }
  0xdb   : > { %1043 = vmatpush.bf16.msra.mxu0 %v1776_v16  ;;  %v1865_v53 = vld [vmem:[%s3169_s28 + $0xd8] sm:$0xf0]  ;;  %v2104_v55 = vld [vmem:[%s3169_s28 + $0x1cc] sm:$0xf]  ;;  %v1992_v59 = vor.u32 %v2106_v51, %v1991_v49  ;;  %v1847_v61 = vld [vmem:[%s3169_s28 + $0xa8] sm:$0xf] }
  0xdc   : > { %1057 = vmatpush.bf16.msra.mxu1 %v1904_v20  ;;  %1071 = vmatpush.bf16.msra.mxu2 %v1780_v21  ;;  %v1993_v56 = vld [vmem:[%s3169_s28 + $0x1d8] sm:$0xf0]  ;;  %v1868_v60 = vor.u32 %v2072_v52, %v1865_v53  ;;  %v2070_v62 = vld [vmem:[%s3169_s28 + $0xb4] sm:$0xf0]  ;;  %v1975_v63 = vld [vmem:[%s3169_s28 + $0x1a8] sm:$0xf] }
  0xdd   : > { %1085 = vmatpush.bf16.msra.mxu3 %v1908_v25  ;;  %v1996_v0 = vor.u32 %v2104_v55, %v1993_v56  ;;  %v2102_v1 = vld [vmem:[%s3169_s28 + $0x1b4] sm:$0xf0]  ;;  %v2068_v2 = vld [vmem:[%s3169_s28 + $0xac] sm:$0xf]  ;;  %v1849_v3 = vld [vmem:[%s3169_s28 + $0xb8] sm:$0xf0]  ;;  %v1848_v6 = vor.u32 %v2070_v62, %v1847_v61 }
  0xde   : > { %v2100_v4 = vld [vmem:[%s3169_s28 + $0x1ac] sm:$0xf]  ;;  %v1977_v5 = vld [vmem:[%s3169_s28 + $0x1b8] sm:$0xf0]  ;;  %v1976_v7 = vor.u32 %v2102_v1, %v1975_v63  ;;  %v1852_v8 = vor.u32 %v2068_v2, %v1849_v3  ;;  %v1831_v9 = vld [vmem:[%s3169_s28 + $0x88] sm:$0xf] }
  0xdf   : > { %1044 = vmatpush.bf16.msra.mxu0 %v1760_v32  ;;  %v2066_v10 = vld [vmem:[%s3169_s28 + $0x94] sm:$0xf0]  ;;  %v1959_v11 = vld [vmem:[%s3169_s28 + $0x188] sm:$0xf]  ;;  %v1980_v12 = vor.u32 %v2100_v4, %v1977_v5  ;;  %v2064_v14 = vld [vmem:[%s3169_s28 + $0x8c] sm:$0xf] }
  0xe0   : > { %1058 = vmatpush.bf16.msra.mxu1 %v1888_v36  ;;  %1072 = vmatpush.bf16.msra.mxu2 %v1764_v37  ;;  %v2098_v13 = vld [vmem:[%s3169_s28 + $0x194] sm:$0xf0]  ;;  %v1833_v15 = vld [vmem:[%s3169_s28 + $0x98] sm:$0xf0]  ;;  %v2096_v16 = vld [vmem:[%s3169_s28 + $0x18c] sm:$0xf]  ;;  %v1832_v18 = vor.u32 %v2066_v10, %v1831_v9 }
  0xe1   : > { %1086 = vmatpush.bf16.msra.mxu3 %v1892_v41  ;;  %v1961_v17 = vld [vmem:[%s3169_s28 + $0x198] sm:$0xf0]  ;;  %v1960_v19 = vor.u32 %v2098_v13, %v1959_v11  ;;  %v1836_v20 = vor.u32 %v2064_v14, %v1833_v15  ;;  %v1815_v21 = vld [vmem:[%s3169_s28 + $0x68] sm:$0xf]  ;;  %v2062_v22 = vld [vmem:[%s3169_s28 + $0x74] sm:$0xf0] }
  0xe2   : > { %1045 = vmatmul.bf16.vlgmr.msra.gmra.mxu0 %v3261_v54  ;;  %v1943_v23 = vld [vmem:[%s3169_s28 + $0x168] sm:$0xf]  ;;  %v1964_v24 = vor.u32 %v2096_v16, %v1961_v17  ;;  %v2094_v25 = vld [vmem:[%s3169_s28 + $0x174] sm:$0xf0]  ;;  %v2060_v26 = vld [vmem:[%s3169_s28 + $0x6c] sm:$0xf]  ;;  %v1816_v30 = vor.u32 %v2062_v22, %v1815_v21 }
  0xe3   : > { %1093 = vmatpush.bf16.msrb.mxu0 %v1880_v42  ;;  %1073 = vmatmul.bf16.vlgmr.msra.gmra.mxu2 %v3261_v54  ;;  %v1817_v27 = vld [vmem:[%s3169_s28 + $0x78] sm:$0xf0]  ;;  %v2092_v28 = vld [vmem:[%s3169_s28 + $0x16c] sm:$0xf]  ;;  %v1944_v31 = vor.u32 %v2094_v25, %v1943_v23  ;;  %v1799_v33 = vld [vmem:[%s3169_s28 + $0x48] sm:$0xf] }
  0xe4   : > { %1107 = vmatpush.bf16.msrb.mxu1 %v2008_v45  ;;  %1121 = vmatpush.bf16.msrb.mxu2 %v1884_v46  ;;  %v1945_v29 = vld [vmem:[%s3169_s28 + $0x178] sm:$0xf0]  ;;  %v1820_v32 = vor.u32 %v2060_v26, %v1817_v27  ;;  %v2058_v34 = vld [vmem:[%s3169_s28 + $0x54] sm:$0xf0]  ;;  %v1927_v35 = vld [vmem:[%s3169_s28 + $0x148] sm:$0xf] }
  0xe5   : > { %1135 = vmatpush.bf16.msrb.mxu3 %v2012_v50  ;;  %1059 = vmatmul.bf16.vlgmr.msra.gmra.mxu1 %v3265_v57  ;;  %v1948_v36 = vor.u32 %v2092_v28, %v1945_v29  ;;  %v2090_v37 = vld [vmem:[%s3169_s28 + $0x154] sm:$0xf0]  ;;  %v2056_v38 = vld [vmem:[%s3169_s28 + $0x4c] sm:$0xf]  ;;  %v1801_v39 = vld [vmem:[%s3169_s28 + $0x58] sm:$0xf0]  ;;  %v1800_v42 = vor.u32 %v2058_v34, %v1799_v33 }
  0xe6   : > { %1087 = vmatmul.bf16.vlgmr.msra.gmra.mxu3 %v3265_v57  ;;  %v2088_v40 = vld [vmem:[%s3169_s28 + $0x14c] sm:$0xf]  ;;  %v1929_v41 = vld [vmem:[%s3169_s28 + $0x158] sm:$0xf0]  ;;  %v1928_v43 = vor.u32 %v2090_v37, %v1927_v35  ;;  %v1804_v44 = vor.u32 %v2056_v38, %v1801_v39  ;;  %v1783_v45 = vld [vmem:[%s3169_s28 + $0x28] sm:$0xf] }
  0xe7   : > { %1094 = vmatpush.bf16.msrb.mxu0 %v1864_v58  ;;  %v2054_v46 = vld [vmem:[%s3169_s28 + $0x34] sm:$0xf0]  ;;  %v1911_v47 = vld [vmem:[%s3169_s28 + $0x128] sm:$0xf]  ;;  %v1932_v48 = vor.u32 %v2088_v40, %v1929_v41  ;;  %v2052_v50 = vld [vmem:[%s3169_s28 + $0x2c] sm:$0xf] }
  0xe8   : > { %1108 = vmatpush.bf16.msrb.mxu1 %v1992_v59  ;;  %1122 = vmatpush.bf16.msrb.mxu2 %v1868_v60  ;;  %v2086_v49 = vld [vmem:[%s3169_s28 + $0x134] sm:$0xf0]  ;;  %v1785_v51 = vld [vmem:[%s3169_s28 + $0x38] sm:$0xf0]  ;;  %v2084_v52 = vld [vmem:[%s3169_s28 + $0x12c] sm:$0xf]  ;;  %v1784_v55 = vor.u32 %v2054_v46, %v1783_v45 }
  0xe9   : > { %1136 = vmatpush.bf16.msrb.mxu3 %v1996_v0  ;;  %v1913_v53 = vld [vmem:[%s3169_s28 + $0x138] sm:$0xf0]  ;;  %v1912_v56 = vor.u32 %v2086_v49, %v1911_v47  ;;  %v1788_v58 = vor.u32 %v2052_v50, %v1785_v51  ;;  %v1767_v59 = vld [vmem:[%s3169_s28 + $0x8] sm:$0xf]  ;;  %v2050_v60 = vld [vmem:[%s3169_s28 + $0x14] sm:$0xf0] }
  0xea   : > { %v1895_v61 = vld [vmem:[%s3169_s28 + $0x108] sm:$0xf]  ;;  %v1916_v62 = vor.u32 %v2084_v52, %v1913_v53  ;;  %v2082_v63 = vld [vmem:[%s3169_s28 + $0x114] sm:$0xf0]  ;;  %v2048_v0 = vld [vmem:[%s3169_s28 + $0xc] sm:$0xf]  ;;  %v1768_v4 = vor.u32 %v2050_v60, %v1767_v59 }
  0xeb   : > { %1095 = vmatpush.bf16.msrb.mxu0 %v1848_v6  ;;  %v1769_v1 = vld [vmem:[%s3169_s28 + $0x18] sm:$0xf0]  ;;  %v2080_v2 = vld [vmem:[%s3169_s28 + $0x10c] sm:$0xf]  ;;  %v1896_v5 = vor.u32 %v2082_v63, %v1895_v61  ;;  %s609_s19 = scalar_select %p608_p8, %s3324_s18, 5 }
  0xec   : > { %1109 = vmatpush.bf16.msrb.mxu1 %v1976_v7  ;;  %1123 = vmatpush.bf16.msrb.mxu2 %v1852_v8  ;;  %v1897_v3 = vld [vmem:[%s3169_s28 + $0x118] sm:$0xf0]  ;;  %v1772_v6 = vor.u32 %v2048_v0, %v1769_v1  ;;  %s1211_s12 = ssub.s32 (%p2645_p6), 6, %s3324_s18  ;;  %s2111_s26 = sshll.u32 (%p2645_p6), %s2480_s14, 4 }
  0xed   : > { %1137 = vmatpush.bf16.msrb.mxu3 %v1980_v12  ;;  %v1900_v7 = vor.u32 %v2080_v2, %v1897_v3  ;;  %s610_s24 = scalar_lea.vmem %s3582_s2, %s609_s19  ;;  %p1212_p9 = scmp.lt.s32.totalorder (%p2645_p6), %s1211_s12, 4 }
  0xee   : > { %v1176_v9 = vld [vmem:[%s610_s24] sm:$0xf]  ;;  %s3346_s28 = scalar_lea.vmem (%p2645_p6), %s3583_s3, %s2111_s26  }
  0xef   : > { %1096 = vmatpush.bf16.msrb.mxu0 %v1832_v18  ;;  %v1178_v12 = vperm.slane %v1176_v9, 0  ;;  %v1179_v14 = vperm.slane %v1176_v9, 1 }
  0xf0   : > { %1110 = vmatpush.bf16.msrb.mxu1 %v1960_v19  ;;  %1124 = vmatpush.bf16.msrb.mxu2 %v1836_v20 }
  0xf1   : > { %1138 = vmatpush.bf16.msrb.mxu3 %v1964_v24 }
  0xf3   : > { %1097 = vmatpush.bf16.msrb.mxu0 %v1816_v30  ;;  %v1180_v30 = vperm.slane %v1176_v9, 2 }
  0xf4   : > { %1111 = vmatpush.bf16.msrb.mxu1 %v1944_v31  ;;  %1125 = vmatpush.bf16.msrb.mxu2 %v1820_v32  ;;  %v1181_v32 = vperm.slane %v1176_v9, 3 }
  0xf5   : > { %1139 = vmatpush.bf16.msrb.mxu3 %v1948_v36 }
  0xf7   : > { %1098 = vmatpush.bf16.msrb.mxu0 %v1800_v42 }
  0xf8   : > { %1112 = vmatpush.bf16.msrb.mxu1 %v1928_v43  ;;  %1126 = vmatpush.bf16.msrb.mxu2 %v1804_v44 }
  0xf9   : > { %1140 = vmatpush.bf16.msrb.mxu3 %v1932_v48 }
  0xfb   : > { %1099 = vmatpush.bf16.msrb.mxu0 %v1784_v55 }
  0xfc   : > { %1113 = vmatpush.bf16.msrb.mxu1 %v1912_v56  ;;  %1127 = vmatpush.bf16.msrb.mxu2 %v1788_v58 }
  0xfd   : > { %1141 = vmatpush.bf16.msrb.mxu3 %v1916_v62 }
  0xff   : > { %1100 = vmatpush.bf16.msrb.mxu0 %v1768_v4 }
 0x100   : > { %1114 = vmatpush.bf16.msrb.mxu1 %v1896_v5  ;;  %1128 = vmatpush.bf16.msrb.mxu2 %v1772_v6 }
 0x101   : > { %1142 = vmatpush.bf16.msrb.mxu3 %v1900_v7 }
 0x102   : > { %1101 = vmatmul.bf16.vlgmr.msrb.gmra.mxu0 %v3261_v54 }
 0x103   : > { %1115 = vmatmul.bf16.vlgmr.msrb.gmra.mxu1 %v3265_v57  ;;  %1129 = vmatmul.bf16.vlgmr.msrb.gmra.mxu2 %v3261_v54 }
 0x104   : > { %1143 = vmatmul.bf16.vlgmr.msrb.gmra.mxu3 %v3265_v57 }
 0x15f   : > { %v1046_v8 = vpop.f32.mrf.mxu0 }
 0x162   : > { %v1060_v10 = vpop.f32.mrf.mxu1 }
 0x163   : > { %v1061_v11 = vadd.f32 %v1060_v10, %v1046_v8 }
 0x165   : > { %v1186_v15 = vadd.f32 %v1178_v12, %v1061_v11 }
 0x166   : > { %v1074_v13 = vpop.f32.mrf.mxu2 }
 0x167   : > { %v1048_v16 = vpop.f32.mrf.mxu0 }
 0x169   : > { %v1088_v54 = vpop.f32.mrf.mxu3 }
 0x16a   : > { %v1089_v57 = vadd.f32 %v1088_v54, %v1074_v13  ;;  %v1062_v18 = vpop.f32.mrf.mxu1 }
 0x16b   : > { %v1063_v20 = vadd.f32 %v1062_v18, %v1048_v16 }
 0x16c   : > { %v1187_v17 = vadd.f32 %v1179_v14, %v1089_v57 }
 0x16d   : > { %v1190_v23 = vadd.f32 %v1178_v12, %v1063_v20 }
 0x16e   : > { %v1194_v19 = vpack.c.bf16 %v1187_v17, %v1186_v15  ;;  %v1076_v21 = vpop.f32.mrf.mxu2 }
 0x170   : > { %1198 = vst [vmem:[%s3333_s25] sm:$0xff] %v1194_v19 }
 0x171   : > { %v1090_v22 = vpop.f32.mrf.mxu3 }
 0x172   : > { %v1091_v24 = vadd.f32 %v1090_v22, %v1076_v21 }
 0x174   : > { %v1191_v25 = vadd.f32 %v1179_v14, %v1091_v24 }
 0x176   : > { %v1196_v26 = vpack.c.bf16 %v1191_v25, %v1190_v23 }
 0x178   : > { %1200 = vst [vmem:[%s3333_s25 + $0x10] sm:$0xff] %v1196_v26 }
 0x17f   : > { %v1102_v27 = vpop.f32.mrf.mxu0 }
 0x180   : > { %v1116_v28 = vpop.f32.mrf.mxu1 }
 0x181   : > { %v1117_v29 = vadd.f32 %v1116_v28, %v1102_v27 }
 0x183   : > { %v1188_v34 = vadd.f32 %v1180_v30, %v1117_v29 }
 0x186   : > { %v1130_v31 = vpop.f32.mrf.mxu2 }
 0x187   : > { %v1144_v33 = vpop.f32.mrf.mxu3  ;;  %v1104_v37 = vpop.f32.mrf.mxu0 }
 0x188   : > { %v1145_v35 = vadd.f32 %v1144_v33, %v1130_v31  ;;  %v1118_v38 = vpop.f32.mrf.mxu1 }
 0x189   : > { %v1119_v40 = vadd.f32 %v1118_v38, %v1104_v37 }
 0x18a   : > { %v1189_v36 = vadd.f32 %v1181_v32, %v1145_v35 }
 0x18b   : > { %v1192_v44 = vadd.f32 %v1180_v30, %v1119_v40 }
 0x18c   : > { %v1195_v39 = vpack.c.bf16 %v1189_v36, %v1188_v34 }
 0x18e   : > { %1199 = vst [vmem:[%s3333_s25 + $0x8] sm:$0xff] %v1195_v39  ;;  %v1132_v41 = vpop.f32.mrf.mxu2 }
 0x18f   : > { %v1146_v42 = vpop.f32.mrf.mxu3 }
 0x190   : > { %v1147_v43 = vadd.f32 %v1146_v42, %v1132_v41 }
 0x192   : > { %v1193_v45 = vadd.f32 %v1181_v32, %v1147_v43  ;;  %1208 = sbr.rel (!%p2645_p6) target bundleno = 531 (0x213), region = 96 }
 0x194   : > { %v1197_v46 = vpack.c.bf16 %v1193_v45, %v1192_v44 }
 0x196   : > { %1201 = vst [vmem:[%s3333_s25 + $0x18] sm:$0xff] %v1197_v46 }
 0x197   : > { %s3618_s12 = smov (!%p1212_p9, %s1211_s12), 4 }
 0x198   : > { %s2015_s30 = sshll.u32 %s3618_s12, 3  ;;  %s3348_s6 = sshll.u32 %s3618_s12, 2 }
 0x199   : > { %p2019_p10 = scmp.eq.s32.totalorder %s2015_s30, 0 }
 0x19a   : > { %p1224_p11 = scmp.lt.u32.totalorder (!%p2019_p10), %s3348_s6, 8 }
 0x19b   : > { %1223 = sbr.rel (%p2019_p10) target bundleno = 531 (0x213), region = 100 }
 0x1a0   : > { %1227 = sbr.rel (%p1224_p11) target bundleno = 521 (0x209), region = 104  ;;  %s3352_s21 = sand.u32 (!%p1224_p11), 7, %s3348_s6  }
 0x1a1   : > { %p1246_p6 = scmp.eq.s32.totalorder (!%p1224_p11), %s3352_s21, 0  ;;  %p2020_p12 = scmp.ne.s32.totalorder (!%p1224_p11), %s3352_s21, 0 }
 0x1a5   : > { %1249 = sbr.rel (%p2020_p12) target bundleno = 468 (0x1d4), region = 119  ;;  %s1250_s14 = sshrl.u32 (!%p2020_p12), %s3348_s6, 3 }
 0x1a6   : > { %s3359_s29 = sshrl.u32 (!%p2020_p12), %s1250_s14, 4 }
 0x1a7   : > { %p2021_p13 = scmp.le.s32.totalorder (!%p2020_p12), %s3359_s29, 0 }
 0x1aa   : > { %1625 = sbr.rel (%p2021_p13) target bundleno = 451 (0x1c3), region = 243  ;;  %s3595_s4 = smov (!%p2021_p13), %s3346_s28 }
 0x1ab   : > { %s3596_s8 = smov (!%p2021_p13), %s3333_s25  ;;  %s3368_s9 = smov (!%p2021_p13), 0  }
 0x1ac   : > { %s3370_s10 = smov (!%p2021_p13), 0  }
 0x1af LB: >> { %v1261_v47 = vld [vmem:[%s2528_s8] sm:$0xff]  ;;  %v1263_v48 = vld [vmem:[%s2528_s8 + $0x8] sm:$0xff]  ;;  %v1265_v49 = vld [vmem:[%s2528_s8 + $0x10] sm:$0xff]  ;;  %s1325_s11 = sadd.s32 1, %s2532_s9  ;;  %s1255_s10 = sadd.s32 1, %s2536_s10   ;;  %s2536_s10 = sphi %s3370_s10, %s1255_s10   ;;  %s2532_s9 = sphi %s3368_s9, %s3599_s9   ;;  %s2528_s8 = sphi %s3596_s8, %s3598_s8   ;;  %s2524_s4 = sphi %s3595_s4, %s3597_s4  }
 0x1b0   : >> { %1262 = vst [vmem:[%s2524_s4] sm:$0xff] %v1261_v47  ;;  %v1295_v50 = vld [vmem:[%s2528_s8 + $0x18] sm:$0xff]  ;;  %v1297_v51 = vld [vmem:[%s2528_s8 + $0x20] sm:$0xff]  ;;  %p1326_p0 = scmp.ge.s32.totalorder %s1325_s11, %s3359_s29  ;;  %v1299_v52 = vld [vmem:[%s2528_s8 + $0x28] sm:$0xff]  ;;  %p1254_p1 = scmp.ge.s32.totalorder %s1255_s10, %s3359_s29 }
 0x1b1   : >> { %1264 = vst [vmem:[%s2524_s4 + $0x8] sm:$0xff] %v1263_v48  ;;  %v1301_v53 = vld [vmem:[%s2528_s8 + $0x30] sm:$0xff]  ;;  %v1303_v55 = vld [vmem:[%s2528_s8 + $0x38] sm:$0xff]  ;;  %v1305_v56 = vld [vmem:[%s2528_s8 + $0x40] sm:$0xff] }
 0x1b2   : >> { %1266 = vst [vmem:[%s2524_s4 + $0x10] sm:$0xff] %v1265_v49  ;;  %s3620_s11 = smov (%p1326_p0, %s1325_s11), 0  ;;  %v1307_v58 = vld [vmem:[%s2528_s8 + $0x48] sm:$0xff]  ;;  %v1309_v59 = vld [vmem:[%s2528_s8 + $0x50] sm:$0xff]  ;;  %v1311_v60 = vld [vmem:[%s2528_s8 + $0x58] sm:$0xff] }
 0x1b3   : >> { %1294 = vst [vmem:[%s2524_s4 + $0x18] sm:$0xff] %v1265_v49  ;;  %s2022_s18 = sshll.u32 %s3620_s11, 7  ;;  %v1313_v61 = vld [vmem:[%s2528_s8 + $0x60] sm:$0xff]  ;;  %v1315_v62 = vld [vmem:[%s2528_s8 + $0x68] sm:$0xff]  ;;  %v1317_v63 = vld [vmem:[%s2528_s8 + $0x70] sm:$0xff]  ;;  %s3599_s9 = smov %s3620_s11 }
 0x1b4   : >> { %1296 = vst [vmem:[%s2524_s4 + $0x20] sm:$0xff] %v1295_v50  ;;  %s1330_s19 = scalar_lea.vmem %s3333_s25, %s2022_s18 [#allocation4]   ;;  %s1331_s20 = scalar_lea.vmem %s3346_s28, %s2022_s18   ;;  %v1319_v0 = vld [vmem:[%s2528_s8 + $0x78] sm:$0xff]  ;;  %v1321_v1 = vld [vmem:[%s2528_s8 + $0x80] sm:$0xff]  ;;  %v1323_v2 = vld [vmem:[%s2528_s8 + $0x88] sm:$0xff] }
 0x1b5   : >> { %1298 = vst [vmem:[%s2524_s4 + $0x28] sm:$0xff] %v1297_v51  ;;  %s3598_s8 = smov %s1330_s19 }
 0x1b6   : >> { %1300 = vst [vmem:[%s2524_s4 + $0x30] sm:$0xff] %v1299_v52 }
 0x1b7   : >> { %1302 = vst [vmem:[%s2524_s4 + $0x38] sm:$0xff] %v1301_v53 }
 0x1b8   : >> { %1304 = vst [vmem:[%s2524_s4 + $0x40] sm:$0xff] %v1303_v55 }
 0x1b9   : >> { %1306 = vst [vmem:[%s2524_s4 + $0x48] sm:$0xff] %v1305_v56 }
 0x1ba   : >> { %1308 = vst [vmem:[%s2524_s4 + $0x50] sm:$0xff] %v1307_v58 }
 0x1bb   : >> { %1310 = vst [vmem:[%s2524_s4 + $0x58] sm:$0xff] %v1309_v59 }
 0x1bc   : >> { %1312 = vst [vmem:[%s2524_s4 + $0x60] sm:$0xff] %v1311_v60 }
 0x1bd   : >> { %1314 = vst [vmem:[%s2524_s4 + $0x68] sm:$0xff] %v1313_v61 }
 0x1be   : >> { %1316 = vst [vmem:[%s2524_s4 + $0x70] sm:$0xff] %v1315_v62  ;;  %1257 = sbr.rel (!%p1254_p1) target bundleno = 431 (0x1af), region = 249 }
 0x1bf   : >> { %1318 = vst [vmem:[%s2524_s4 + $0x78] sm:$0xff] %v1317_v63 }
 0x1c0   : >> { %1320 = vst [vmem:[%s2524_s4 + $0x80] sm:$0xff] %v1319_v0 }
 0x1c1   : >> { %1322 = vst [vmem:[%s2524_s4 + $0x88] sm:$0xff] %v1321_v1 }
 0x1c2   : >> { %1324 = vst [vmem:[%s2524_s4 + $0x90] sm:$0xff] %v1323_v2  ;;  %s3597_s4 = smov %s1331_s20 }
 0x1c3 PF: > { %s3438_s23 = sand.u32 15, %s1250_s14   ;;  %s2112_s24 = sshll.u32 %s3359_s29, 7 }
 0x1c4   : > { %s3442_s7 = scalar_lea.vmem %s3333_s25, %s2112_s24 [#allocation4]   ;;  %s1338_s12 = scalar_lea.vmem %s3346_s28, %s2112_s24  }
 0x1c5   : > { %p2027_p2 = scmp.le.s32.totalorder %s3438_s23, 0 }
 0x1c6   : > { %s2538_s26 = smov (!%p2027_p2), %s1338_s12   ;;  %s2542_s5 = smov (!%p2027_p2), %s3442_s7  }
 0x1c7   : > { %1639 = sbr.rel (%p2027_p2) target bundleno = 468 (0x1d4), region = 254  ;;  %s2546_s27 = smov (!%p2027_p2), 0  }
 0x1c8   : > { %s2550_s30 = smov (!%p2027_p2), 0  }
 0x1cc LB: >> { %v1348_v3 = vld [vmem:[%s2544_s5] sm:$0xff]  ;;  %v1350_v4 = vld [vmem:[%s2544_s5 + $0x10] sm:$0xff]  ;;  %s1352_s14 = sadd.s32 1, %s2548_s27  ;;  %s1342_s30 = sadd.s32 1, %s2552_s30   ;;  %s2552_s30 = sphi %s2550_s30, %s1342_s30   ;;  %s2548_s27 = sphi %s2546_s27, %s2547_s27   ;;  %s2544_s5 = sphi %s2542_s5, %s1357_s5   ;;  %s2540_s26 = sphi %s2538_s26, %s1358_s26  }
 0x1cd   : >> { %1349 = vst [vmem:[%s2540_s26] sm:$0xff] %v1348_v3  ;;  %p1353_p3 = scmp.ge.s32.totalorder %s1352_s14, %s3438_s23  ;;  %p1341_p4 = scmp.ge.s32.totalorder %s1342_s30, %s3438_s23 }
 0x1ce   : >> { %1351 = vst [vmem:[%s2540_s26 + $0x18] sm:$0xff] %v1350_v4 }
 0x1cf   : >> { %s3622_s14 = smov (%p1353_p3, %s1352_s14), 0  ;;  %1344 = sbr.rel (!%p1341_p4) target bundleno = 460 (0x1cc), region = 260 }
 0x1d0   : >> { %s2028_s29 = sshll.u32 %s3622_s14, 3  ;;  %s2547_s27 = smov %s3622_s14  }
 0x1d1   : >> { %s1357_s5 = scalar_lea.vmem %s3442_s7, %s2028_s29 [#allocation4]   ;;  %s1358_s26 = scalar_lea.vmem %s1338_s12, %s2028_s29  }
 0x1d4 PF: > { %1361 = sbr.rel (%p1246_p6) target bundleno = 521 (0x209), region = 137  ;;  %s1363_s4 = ssub.s32 (!%p1246_p6), %s3348_s6, %s3352_s21 }
 0x1d5   : > { %s1367_s8 = sshrl.u32 (!%p1246_p6), %s3348_s6, 3  ;;  %s3456_s9 = scalar_lea.vmem (!%p1246_p6), %s3333_s25, %s1363_s4 [#allocation4] }
 0x1d6   : > { %s3459_s10 = scalar_lea.vmem (!%p1246_p6), %s3346_s28, %s1363_s4  ;;  %s3463_s11 = sshrl.u32 (!%p1246_p6), %s1367_s8, 4 }
 0x1d7   : > { %p2030_p5 = scmp.le.s32.totalorder (!%p1246_p6), %s3463_s11, 0 }
 0x1d9   : > { %1653 = sbr.rel (%p2030_p5) target bundleno = 498 (0x1f2), region = 265  ;;  %s3600_s18 = smov (!%p2030_p5), %s3346_s28 }
 0x1da   : > { %s3601_s19 = smov (!%p2030_p5), %s3333_s25  ;;  %s3472_s20 = smov (!%p2030_p5), 0  }
 0x1db   : > { %s3474_s23 = smov (!%p2030_p5), 0  }
 0x1de LB: >> { %v1378_v5 = vld [vmem:[%s2560_s19] sm:$0xff]  ;;  %v1380_v6 = vld [vmem:[%s2560_s19 + $0x8] sm:$0xff]  ;;  %v1382_v7 = vld [vmem:[%s2560_s19 + $0x10] sm:$0xff]  ;;  %s1442_s24 = sadd.s32 1, %s2564_s20  ;;  %s1372_s23 = sadd.s32 1, %s2568_s23   ;;  %s2568_s23 = sphi %s3474_s23, %s1372_s23   ;;  %s2564_s20 = sphi %s3472_s20, %s3604_s20   ;;  %s2560_s19 = sphi %s3601_s19, %s3603_s19   ;;  %s2556_s18 = sphi %s3600_s18, %s3602_s18  }
 0x1df   : >> { %1379 = vst [vmem:[%s2556_s18] sm:$0xff] %v1378_v5  ;;  %v1412_v8 = vld [vmem:[%s2560_s19 + $0x18] sm:$0xff]  ;;  %v1414_v9 = vld [vmem:[%s2560_s19 + $0x20] sm:$0xff]  ;;  %p1443_p7 = scmp.ge.s32.totalorder %s1442_s24, %s3463_s11  ;;  %v1416_v10 = vld [vmem:[%s2560_s19 + $0x28] sm:$0xff]  ;;  %p1371_p8 = scmp.ge.s32.totalorder %s1372_s23, %s3463_s11 }
 0x1e0   : >> { %1381 = vst [vmem:[%s2556_s18 + $0x8] sm:$0xff] %v1380_v6  ;;  %v1418_v11 = vld [vmem:[%s2560_s19 + $0x30] sm:$0xff]  ;;  %v1420_v12 = vld [vmem:[%s2560_s19 + $0x38] sm:$0xff]  ;;  %v1422_v13 = vld [vmem:[%s2560_s19 + $0x40] sm:$0xff] }
 0x1e1   : >> { %1383 = vst [vmem:[%s2556_s18 + $0x10] sm:$0xff] %v1382_v7  ;;  %s3624_s24 = smov (%p1443_p7, %s1442_s24), 0  ;;  %v1424_v14 = vld [vmem:[%s2560_s19 + $0x48] sm:$0xff]  ;;  %v1426_v54 = vld [vmem:[%s2560_s19 + $0x50] sm:$0xff]  ;;  %v1428_v15 = vld [vmem:[%s2560_s19 + $0x58] sm:$0xff] }
 0x1e2   : >> { %1411 = vst [vmem:[%s2556_s18 + $0x18] sm:$0xff] %v1382_v7  ;;  %s2031_s7 = sshll.u32 %s3624_s24, 7  ;;  %v1430_v57 = vld [vmem:[%s2560_s19 + $0x60] sm:$0xff]  ;;  %v1432_v16 = vld [vmem:[%s2560_s19 + $0x68] sm:$0xff]  ;;  %v1434_v17 = vld [vmem:[%s2560_s19 + $0x70] sm:$0xff]  ;;  %s3604_s20 = smov %s3624_s24 }
 0x1e3   : >> { %1413 = vst [vmem:[%s2556_s18 + $0x20] sm:$0xff] %v1412_v8  ;;  %s1447_s12 = scalar_lea.vmem %s3333_s25, %s2031_s7 [#allocation4]   ;;  %s1448_s26 = scalar_lea.vmem %s3346_s28, %s2031_s7   ;;  %v1436_v18 = vld [vmem:[%s2560_s19 + $0x78] sm:$0xff]  ;;  %v1438_v19 = vld [vmem:[%s2560_s19 + $0x80] sm:$0xff]  ;;  %v1440_v20 = vld [vmem:[%s2560_s19 + $0x88] sm:$0xff] }
 0x1e4   : >> { %1415 = vst [vmem:[%s2556_s18 + $0x28] sm:$0xff] %v1414_v9  ;;  %s3603_s19 = smov %s1447_s12 }
 0x1e5   : >> { %1417 = vst [vmem:[%s2556_s18 + $0x30] sm:$0xff] %v1416_v10 }
 0x1e6   : >> { %1419 = vst [vmem:[%s2556_s18 + $0x38] sm:$0xff] %v1418_v11 }
 0x1e7   : >> { %1421 = vst [vmem:[%s2556_s18 + $0x40] sm:$0xff] %v1420_v12 }
 0x1e8   : >> { %1423 = vst [vmem:[%s2556_s18 + $0x48] sm:$0xff] %v1422_v13 }
 0x1e9   : >> { %1425 = vst [vmem:[%s2556_s18 + $0x50] sm:$0xff] %v1424_v14 }
 0x1ea   : >> { %1427 = vst [vmem:[%s2556_s18 + $0x58] sm:$0xff] %v1426_v54 }
 0x1eb   : >> { %1429 = vst [vmem:[%s2556_s18 + $0x60] sm:$0xff] %v1428_v15 }
 0x1ec   : >> { %1431 = vst [vmem:[%s2556_s18 + $0x68] sm:$0xff] %v1430_v57 }
 0x1ed   : >> { %1433 = vst [vmem:[%s2556_s18 + $0x70] sm:$0xff] %v1432_v16  ;;  %1374 = sbr.rel (!%p1371_p8) target bundleno = 478 (0x1de), region = 271 }
 0x1ee   : >> { %1435 = vst [vmem:[%s2556_s18 + $0x78] sm:$0xff] %v1434_v17 }
 0x1ef   : >> { %1437 = vst [vmem:[%s2556_s18 + $0x80] sm:$0xff] %v1436_v18 }
 0x1f0   : >> { %1439 = vst [vmem:[%s2556_s18 + $0x88] sm:$0xff] %v1438_v19 }
 0x1f1   : >> { %1441 = vst [vmem:[%s2556_s18 + $0x90] sm:$0xff] %v1440_v20  ;;  %s3602_s18 = smov %s1448_s26 }
 0x1f2 PF: > { %s3542_s5 = sand.u32 15, %s1367_s8   ;;  %s2114_s27 = sshll.u32 %s3463_s11, 7 }
 0x1f3   : > { %s3546_s30 = scalar_lea.vmem %s3333_s25, %s2114_s27 [#allocation4]   ;;  %s1455_s14 = scalar_lea.vmem %s3346_s28, %s2114_s27  }
 0x1f4   : > { %p2036_p9 = scmp.le.s32.totalorder %s3542_s5, 0 }
 0x1f5   : > { %s2570_s29 = smov (!%p2036_p9), %s1455_s14   ;;  %s2574_s4 = smov (!%p2036_p9), %s3546_s30  }
 0x1f6   : > { %1667 = sbr.rel (%p2036_p9) target bundleno = 515 (0x203), region = 276  ;;  %s2578_s23 = smov (!%p2036_p9), 0  }
 0x1f7   : > { %s2582_s24 = smov (!%p2036_p9), 0  }
 0x1fb LB: >> { %v1465_v21 = vld [vmem:[%s2576_s4] sm:$0xff]  ;;  %v1467_v22 = vld [vmem:[%s2576_s4 + $0x10] sm:$0xff]  ;;  %s1469_s8 = sadd.s32 1, %s2580_s23  ;;  %s1459_s24 = sadd.s32 1, %s2584_s24   ;;  %s2584_s24 = sphi %s2582_s24, %s1459_s24   ;;  %s2580_s23 = sphi %s2578_s23, %s2579_s23   ;;  %s2576_s4 = sphi %s2574_s4, %s1474_s4   ;;  %s2572_s29 = sphi %s2570_s29, %s1475_s29  }
 0x1fc   : >> { %1466 = vst [vmem:[%s2572_s29] sm:$0xff] %v1465_v21  ;;  %p1470_p10 = scmp.ge.s32.totalorder %s1469_s8, %s3542_s5  ;;  %p1458_p11 = scmp.ge.s32.totalorder %s1459_s24, %s3542_s5 }
 0x1fd   : >> { %1468 = vst [vmem:[%s2572_s29 + $0x18] sm:$0xff] %v1467_v22 }
 0x1fe   : >> { %s3626_s8 = smov (%p1470_p10, %s1469_s8), 0  ;;  %1461 = sbr.rel (!%p1458_p11) target bundleno = 507 (0x1fb), region = 282 }
 0x1ff   : >> { %s2037_s11 = sshll.u32 %s3626_s8, 3  ;;  %s2579_s23 = smov %s3626_s8  }
 0x200   : >> { %s1474_s4 = scalar_lea.vmem %s3546_s30, %s2037_s11 [#allocation4]   ;;  %s1475_s29 = scalar_lea.vmem %s1455_s14, %s2037_s11  }
 0x203 PF: > { %s2588_s18 = smov 1  }
 0x204   : > { %s1476_s19 = sshll.u32 %s2588_s18, %s3352_s21 }
 0x205   : > { %s2039_s20 = sadd.s32 4294967295, %s1476_s19 }
 0x206   : > { %v1486_v23 = vld [vmem:[%s3456_s9] sm:%s2039_s20]  ;;  %v1488_v24 = vld [vmem:[%s3456_s9 + $0x10] sm:%s2039_s20] }
 0x207   : > { %1487 = vst [vmem:[%s3459_s10] sm:%s2039_s20] %v1486_v23 }
 0x208   : > { %1489 = vst [vmem:[%s3459_s10 + $0x18] sm:%s2039_s20] %v1488_v24 }
 0x209 PF: > { %p2040_p6 = scmp.ge.u32.totalorder %s3348_s6, 8 }
 0x20a   : > { %s2589_s7 = smov (!%p2040_p6), 1  }
 0x20b   : > { %1230 = sbr.rel (%p2040_p6) target bundleno = 531 (0x213), region = 108  ;;  %s1231_s12 = sshll.u32 (!%p2040_p6), %s2589_s7, %s3348_s6 }
 0x20c   : > { %s2041_s26 = sadd.s32 (!%p2040_p6), 4294967295, %s1231_s12 }
 0x210   : > { %v1241_v25 = vld [vmem:[%s3333_s25] sm:%s2041_s26]  ;;  %v1243_v26 = vld [vmem:[%s3333_s25 + $0x10] sm:%s2041_s26] }
 0x211   : > { %1242 = vst [vmem:[%s3346_s28] sm:%s2041_s26] %v1241_v25 }
 0x212   : > { %1244 = vst [vmem:[%s3346_s28 + $0x18] sm:%s2041_s26] %v1243_v26 }
 0x213 PF: > { %s13_s16 = sadd.s32 1, %s2488_s16   ;;  %s3605_s12 = smov %s2476_s13 }
 0x214   : > { %p10_p12 = scmp.ge.s32.totalorder %s13_s16, 4   ;;  %s3606_s13 = smov %s2650_s22 }
 0x215   : > { %s3607_s14 = smov %s2484_s15  ;;  %s3608_s15 = smov %s3610_s17 }
 0x216   :  { %12 = sbr.rel (!%p10_p12) target bundleno = 3 (0x3), region = 293 }

// kernel: transformer_wce_classifier_forward.9
= control target key start
LH: loop header
LB: loop body
LE: loop exit
PB: predicated region body
PF: predicated region fallthrough
CT: control target
= control target key end

     0   :  { %s1466_s1 = inlined_call_operand.vmem [shape: bf16[256,512], index: 1, kind: input, shape index: {}]   ;;  %s1467_s0 = inlined_call_operand.vmem [shape: bf16[16,256], index: 0, kind: input, shape index: {}]   ;;  %s1468_s2 = inlined_call_operand.vmem [shape: f32[1,512], index: 2, kind: input, shape index: {}]   ;;  %s1469_s3 = inlined_call_operand.vmem [shape: bf16[16,512], index: 3, kind: output, shape index: {}]  }
   0x1   :  { %v793_v0 = vld [vmem:[%s1466_s1 + $0xe0] sm:$0xf]  ;;  %v967_v1 = vld [vmem:[%s1466_s1 + $0xec] sm:$0xf0]  ;;  %v965_v5 = vld [vmem:[%s1466_s1 + $0xe4] sm:$0xf] }
   0x2   :  { %v921_v2 = vld [vmem:[%s1466_s1 + $0x1e0] sm:$0xf]  ;;  %v794_v3 = vor.u32 %v967_v1, %v793_v0  ;;  %v999_v4 = vld [vmem:[%s1466_s1 + $0x1ec] sm:$0xf0]  ;;  %v795_v6 = vld [vmem:[%s1466_s1 + $0xf0] sm:$0xf0] }
   0x3   :  { %v922_v7 = vor.u32 %v999_v4, %v921_v2  ;;  %v798_v8 = vor.u32 %v965_v5, %v795_v6  ;;  %v997_v9 = vld [vmem:[%s1466_s1 + $0x1e4] sm:$0xf]  ;;  %v923_v10 = vld [vmem:[%s1466_s1 + $0x1f0] sm:$0xf0]  ;;  %v777_v11 = vld [vmem:[%s1466_s1 + $0xc0] sm:$0xf] }
   0x4   :  { %430 = vmatpush.bf16.msra.mxu0 %v794_v3  ;;  %v926_v12 = vor.u32 %v997_v9, %v923_v10  ;;  %v963_v13 = vld [vmem:[%s1466_s1 + $0xcc] sm:$0xf0]  ;;  %v905_v14 = vld [vmem:[%s1466_s1 + $0x1c0] sm:$0xf]  ;;  %v961_v18 = vld [vmem:[%s1466_s1 + $0xc4] sm:$0xf] }
   0x5   :  { %v995_v15 = vld [vmem:[%s1466_s1 + $0x1cc] sm:$0xf0]  ;;  %444 = vmatpush.bf16.msra.mxu1 %v922_v7  ;;  %458 = vmatpush.bf16.msra.mxu2 %v798_v8  ;;  %v778_v16 = vor.u32 %v963_v13, %v777_v11  ;;  %v779_v19 = vld [vmem:[%s1466_s1 + $0xd0] sm:$0xf0]  ;;  %v993_v20 = vld [vmem:[%s1466_s1 + $0x1c4] sm:$0xf] }
   0x6   :  { %v906_v17 = vor.u32 %v995_v15, %v905_v14  ;;  %472 = vmatpush.bf16.msra.mxu3 %v926_v12  ;;  %v782_v21 = vor.u32 %v961_v18, %v779_v19  ;;  %v907_v22 = vld [vmem:[%s1466_s1 + $0x1d0] sm:$0xf0]  ;;  %v761_v23 = vld [vmem:[%s1466_s1 + $0xa0] sm:$0xf]  ;;  %v959_v24 = vld [vmem:[%s1466_s1 + $0xac] sm:$0xf0] }
   0x7   :  { %v910_v25 = vor.u32 %v993_v20, %v907_v22  ;;  %v889_v26 = vld [vmem:[%s1466_s1 + $0x1a0] sm:$0xf]  ;;  %v991_v27 = vld [vmem:[%s1466_s1 + $0x1ac] sm:$0xf0]  ;;  %v957_v28 = vld [vmem:[%s1466_s1 + $0xa4] sm:$0xf]  ;;  %v762_v29 = vor.u32 %v959_v24, %v761_v23 }
   0x8   :  { %431 = vmatpush.bf16.msra.mxu0 %v778_v16  ;;  %v763_v30 = vld [vmem:[%s1466_s1 + $0xb0] sm:$0xf0]  ;;  %v989_v31 = vld [vmem:[%s1466_s1 + $0x1a4] sm:$0xf]  ;;  %v890_v33 = vor.u32 %v991_v27, %v889_v26  ;;  %v745_v35 = vld [vmem:[%s1466_s1 + $0x80] sm:$0xf] }
   0x9   :  { %v891_v32 = vld [vmem:[%s1466_s1 + $0x1b0] sm:$0xf0]  ;;  %445 = vmatpush.bf16.msra.mxu1 %v906_v17  ;;  %459 = vmatpush.bf16.msra.mxu2 %v782_v21  ;;  %v766_v34 = vor.u32 %v957_v28, %v763_v30  ;;  %v955_v36 = vld [vmem:[%s1466_s1 + $0x8c] sm:$0xf0]  ;;  %v873_v37 = vld [vmem:[%s1466_s1 + $0x180] sm:$0xf] }
   0xa   :  { %473 = vmatpush.bf16.msra.mxu3 %v910_v25  ;;  %v894_v38 = vor.u32 %v989_v31, %v891_v32  ;;  %v987_v39 = vld [vmem:[%s1466_s1 + $0x18c] sm:$0xf0]  ;;  %v953_v40 = vld [vmem:[%s1466_s1 + $0x84] sm:$0xf]  ;;  %v747_v41 = vld [vmem:[%s1466_s1 + $0x90] sm:$0xf0]  ;;  %v746_v44 = vor.u32 %v955_v36, %v745_v35 }
   0xb   :  { %v985_v42 = vld [vmem:[%s1466_s1 + $0x184] sm:$0xf]  ;;  %v875_v43 = vld [vmem:[%s1466_s1 + $0x190] sm:$0xf0]  ;;  %v874_v45 = vor.u32 %v987_v39, %v873_v37  ;;  %v750_v46 = vor.u32 %v953_v40, %v747_v41  ;;  %v729_v47 = vld [vmem:[%s1466_s1 + $0x60] sm:$0xf] }
   0xc   :  { %432 = vmatpush.bf16.msra.mxu0 %v762_v29  ;;  %v951_v48 = vld [vmem:[%s1466_s1 + $0x6c] sm:$0xf0]  ;;  %v857_v49 = vld [vmem:[%s1466_s1 + $0x160] sm:$0xf]  ;;  %v878_v50 = vor.u32 %v985_v42, %v875_v43  ;;  %v949_v52 = vld [vmem:[%s1466_s1 + $0x64] sm:$0xf] }
   0xd   :  { %446 = vmatpush.bf16.msra.mxu1 %v890_v33  ;;  %460 = vmatpush.bf16.msra.mxu2 %v766_v34  ;;  %v983_v51 = vld [vmem:[%s1466_s1 + $0x16c] sm:$0xf0]  ;;  %v731_v53 = vld [vmem:[%s1466_s1 + $0x70] sm:$0xf0]  ;;  %v981_v54 = vld [vmem:[%s1466_s1 + $0x164] sm:$0xf]  ;;  %v730_v56 = vor.u32 %v951_v48, %v729_v47 }
   0xe   :  { %474 = vmatpush.bf16.msra.mxu3 %v894_v38  ;;  %v859_v55 = vld [vmem:[%s1466_s1 + $0x170] sm:$0xf0]  ;;  %v858_v57 = vor.u32 %v983_v51, %v857_v49  ;;  %v734_v58 = vor.u32 %v949_v52, %v731_v53  ;;  %v713_v59 = vld [vmem:[%s1466_s1 + $0x40] sm:$0xf]  ;;  %v947_v60 = vld [vmem:[%s1466_s1 + $0x4c] sm:$0xf0] }
   0xf   :  { %v841_v61 = vld [vmem:[%s1466_s1 + $0x140] sm:$0xf]  ;;  %v862_v62 = vor.u32 %v981_v54, %v859_v55  ;;  %v979_v63 = vld [vmem:[%s1466_s1 + $0x14c] sm:$0xf0]  ;;  %v945_v0 = vld [vmem:[%s1466_s1 + $0x44] sm:$0xf]  ;;  %v714_v4 = vor.u32 %v947_v60, %v713_v59 }
  0x10   :  { %433 = vmatpush.bf16.msra.mxu0 %v746_v44  ;;  %v715_v1 = vld [vmem:[%s1466_s1 + $0x50] sm:$0xf0]  ;;  %v977_v2 = vld [vmem:[%s1466_s1 + $0x144] sm:$0xf]  ;;  %v842_v5 = vor.u32 %v979_v63, %v841_v61  ;;  %v697_v7 = vld [vmem:[%s1466_s1 + $0x20] sm:$0xf] }
  0x11   :  { %447 = vmatpush.bf16.msra.mxu1 %v874_v45  ;;  %461 = vmatpush.bf16.msra.mxu2 %v750_v46  ;;  %v843_v3 = vld [vmem:[%s1466_s1 + $0x150] sm:$0xf0]  ;;  %v718_v6 = vor.u32 %v945_v0, %v715_v1  ;;  %v943_v8 = vld [vmem:[%s1466_s1 + $0x2c] sm:$0xf0]  ;;  %v825_v9 = vld [vmem:[%s1466_s1 + $0x120] sm:$0xf] }
  0x12   :  { %475 = vmatpush.bf16.msra.mxu3 %v878_v50  ;;  %v846_v10 = vor.u32 %v977_v2, %v843_v3  ;;  %v975_v11 = vld [vmem:[%s1466_s1 + $0x12c] sm:$0xf0]  ;;  %v941_v12 = vld [vmem:[%s1466_s1 + $0x24] sm:$0xf]  ;;  %v699_v13 = vld [vmem:[%s1466_s1 + $0x30] sm:$0xf0]  ;;  %v698_v16 = vor.u32 %v943_v8, %v697_v7 }
  0x13   :  { %v973_v14 = vld [vmem:[%s1466_s1 + $0x124] sm:$0xf]  ;;  %v827_v15 = vld [vmem:[%s1466_s1 + $0x130] sm:$0xf0]  ;;  %v681_v17 = vld [vmem:[%s1466_s1] sm:$0xf]  ;;  %v826_v20 = vor.u32 %v975_v11, %v825_v9  ;;  %v702_v21 = vor.u32 %v941_v12, %v699_v13 }
  0x14   :  { %434 = vmatpush.bf16.msra.mxu0 %v730_v56  ;;  %v939_v18 = vld [vmem:[%s1466_s1 + $0xc] sm:$0xf0]  ;;  %v809_v19 = vld [vmem:[%s1466_s1 + $0x100] sm:$0xf]  ;;  %v937_v23 = vld [vmem:[%s1466_s1 + $0x4] sm:$0xf]  ;;  %v830_v25 = vor.u32 %v973_v14, %v827_v15 }
  0x15   :  { %448 = vmatpush.bf16.msra.mxu1 %v858_v57  ;;  %462 = vmatpush.bf16.msra.mxu2 %v734_v58  ;;  %v971_v22 = vld [vmem:[%s1466_s1 + $0x10c] sm:$0xf0]  ;;  %v683_v24 = vld [vmem:[%s1466_s1 + $0x10] sm:$0xf0]  ;;  %v969_v26 = vld [vmem:[%s1466_s1 + $0x104] sm:$0xf]  ;;  %v682_v32 = vor.u32 %v939_v18, %v681_v17 }
  0x16   :  { %476 = vmatpush.bf16.msra.mxu3 %v862_v62  ;;  %v811_v27 = vld [vmem:[%s1466_s1 + $0x110] sm:$0xf0]  ;;  %v801_v28 = vld [vmem:[%s1466_s1 + $0xe8] sm:$0xf]  ;;  %v968_v29 = vld [vmem:[%s1466_s1 + $0xf4] sm:$0xf0]  ;;  %v810_v36 = vor.u32 %v971_v22, %v809_v19  ;;  %v686_v37 = vor.u32 %v937_v23, %v683_v24 }
  0x17   :  { %v929_v30 = vld [vmem:[%s1466_s1 + $0x1e8] sm:$0xf]  ;;  %v1000_v31 = vld [vmem:[%s1466_s1 + $0x1f4] sm:$0xf0]  ;;  %v966_v33 = vld [vmem:[%s1466_s1 + $0xec] sm:$0xf]  ;;  %v814_v41 = vor.u32 %v969_v26, %v811_v27  ;;  %v802_v42 = vor.u32 %v968_v29, %v801_v28 }
  0x18   :  { %435 = vmatpush.bf16.msra.mxu0 %v714_v4  ;;  %v803_v34 = vld [vmem:[%s1466_s1 + $0xf8] sm:$0xf0]  ;;  %v998_v35 = vld [vmem:[%s1466_s1 + $0x1ec] sm:$0xf]  ;;  %v673_v39 = vld [vmem:[%s1467_s0] sm:$0xf]  ;;  %v930_v45 = vor.u32 %v1000_v31, %v929_v30 }
  0x19   :  { %449 = vmatpush.bf16.msra.mxu1 %v842_v5  ;;  %463 = vmatpush.bf16.msra.mxu2 %v718_v6  ;;  %v931_v38 = vld [vmem:[%s1466_s1 + $0x1f8] sm:$0xf0]  ;;  %v936_v40 = vld [vmem:[%s1467_s0 + $0x4] sm:$0xf0]  ;;  %v935_v43 = vld [vmem:[%s1467_s0 + $0x4] sm:$0xf]  ;;  %v806_v46 = vor.u32 %v966_v33, %v803_v34 }
  0x1a   :  { %477 = vmatpush.bf16.msra.mxu3 %v846_v10  ;;  %v675_v44 = vld [vmem:[%s1467_s0 + $0x8] sm:$0xf0]  ;;  %v785_v47 = vld [vmem:[%s1466_s1 + $0xc8] sm:$0xf]  ;;  %v964_v48 = vld [vmem:[%s1466_s1 + $0xd4] sm:$0xf0]  ;;  %v934_v50 = vor.u32 %v998_v35, %v931_v38  ;;  %v1274_v51 = vor.u32 %v936_v40, %v673_v39 }
  0x1b   :  { %v913_v49 = vld [vmem:[%s1466_s1 + $0x1c8] sm:$0xf]  ;;  %v996_v52 = vld [vmem:[%s1466_s1 + $0x1d4] sm:$0xf0]  ;;  %v962_v53 = vld [vmem:[%s1466_s1 + $0xcc] sm:$0xf]  ;;  %v1285_v55 = vor.u32 %v935_v43, %v675_v44  ;;  %v786_v58 = vor.u32 %v964_v48, %v785_v47 }
  0x1c   :  { %436 = vmatpush.bf16.msra.mxu0 %v698_v16  ;;  %v787_v54 = vld [vmem:[%s1466_s1 + $0xd8] sm:$0xf0]  ;;  %v994_v56 = vld [vmem:[%s1466_s1 + $0x1cc] sm:$0xf]  ;;  %v914_v59 = vor.u32 %v996_v52, %v913_v49  ;;  %v769_v61 = vld [vmem:[%s1466_s1 + $0xa8] sm:$0xf] }
  0x1d   :  { %450 = vmatpush.bf16.msra.mxu1 %v826_v20  ;;  %464 = vmatpush.bf16.msra.mxu2 %v702_v21  ;;  %v915_v57 = vld [vmem:[%s1466_s1 + $0x1d8] sm:$0xf0]  ;;  %v790_v60 = vor.u32 %v962_v53, %v787_v54  ;;  %v960_v62 = vld [vmem:[%s1466_s1 + $0xb4] sm:$0xf0]  ;;  %v897_v63 = vld [vmem:[%s1466_s1 + $0x1a8] sm:$0xf] }
  0x1e   :  { %478 = vmatpush.bf16.msra.mxu3 %v830_v25  ;;  %v918_v0 = vor.u32 %v994_v56, %v915_v57  ;;  %v992_v1 = vld [vmem:[%s1466_s1 + $0x1b4] sm:$0xf0]  ;;  %v958_v2 = vld [vmem:[%s1466_s1 + $0xac] sm:$0xf]  ;;  %v771_v3 = vld [vmem:[%s1466_s1 + $0xb8] sm:$0xf0]  ;;  %v770_v6 = vor.u32 %v960_v62, %v769_v61 }
  0x1f   :  { %v990_v4 = vld [vmem:[%s1466_s1 + $0x1ac] sm:$0xf]  ;;  %v899_v5 = vld [vmem:[%s1466_s1 + $0x1b8] sm:$0xf0]  ;;  %v898_v7 = vor.u32 %v992_v1, %v897_v63  ;;  %v774_v8 = vor.u32 %v958_v2, %v771_v3  ;;  %v753_v9 = vld [vmem:[%s1466_s1 + $0x88] sm:$0xf] }
  0x20   :  { %437 = vmatpush.bf16.msra.mxu0 %v682_v32  ;;  %v956_v10 = vld [vmem:[%s1466_s1 + $0x94] sm:$0xf0]  ;;  %v881_v11 = vld [vmem:[%s1466_s1 + $0x188] sm:$0xf]  ;;  %v902_v12 = vor.u32 %v990_v4, %v899_v5  ;;  %v954_v14 = vld [vmem:[%s1466_s1 + $0x8c] sm:$0xf] }
  0x21   :  { %451 = vmatpush.bf16.msra.mxu1 %v810_v36  ;;  %465 = vmatpush.bf16.msra.mxu2 %v686_v37  ;;  %v988_v13 = vld [vmem:[%s1466_s1 + $0x194] sm:$0xf0]  ;;  %v755_v15 = vld [vmem:[%s1466_s1 + $0x98] sm:$0xf0]  ;;  %v986_v16 = vld [vmem:[%s1466_s1 + $0x18c] sm:$0xf]  ;;  %v754_v18 = vor.u32 %v956_v10, %v753_v9 }
  0x22   :  { %479 = vmatpush.bf16.msra.mxu3 %v814_v41  ;;  %v883_v17 = vld [vmem:[%s1466_s1 + $0x198] sm:$0xf0]  ;;  %v882_v19 = vor.u32 %v988_v13, %v881_v11  ;;  %v758_v20 = vor.u32 %v954_v14, %v755_v15  ;;  %v737_v21 = vld [vmem:[%s1466_s1 + $0x68] sm:$0xf]  ;;  %v952_v22 = vld [vmem:[%s1466_s1 + $0x74] sm:$0xf0] }
  0x23   :  { %438 = vmatmul.bf16.vlgmr.msra.gmra.mxu0 %v1274_v51  ;;  %v865_v23 = vld [vmem:[%s1466_s1 + $0x168] sm:$0xf]  ;;  %v886_v24 = vor.u32 %v986_v16, %v883_v17  ;;  %v984_v25 = vld [vmem:[%s1466_s1 + $0x174] sm:$0xf0]  ;;  %v950_v26 = vld [vmem:[%s1466_s1 + $0x6c] sm:$0xf]  ;;  %v738_v30 = vor.u32 %v952_v22, %v737_v21 }
  0x24   :  { %486 = vmatpush.bf16.msrb.mxu0 %v802_v42  ;;  %452 = vmatmul.bf16.vlgmr.msra.gmra.mxu1 %v1285_v55  ;;  %v739_v27 = vld [vmem:[%s1466_s1 + $0x78] sm:$0xf0]  ;;  %v982_v28 = vld [vmem:[%s1466_s1 + $0x16c] sm:$0xf]  ;;  %v866_v31 = vor.u32 %v984_v25, %v865_v23  ;;  %v721_v33 = vld [vmem:[%s1466_s1 + $0x48] sm:$0xf] }
  0x25   :  { %500 = vmatpush.bf16.msrb.mxu1 %v930_v45  ;;  %514 = vmatpush.bf16.msrb.mxu2 %v806_v46  ;;  %v867_v29 = vld [vmem:[%s1466_s1 + $0x178] sm:$0xf0]  ;;  %v742_v32 = vor.u32 %v950_v26, %v739_v27  ;;  %v948_v34 = vld [vmem:[%s1466_s1 + $0x54] sm:$0xf0]  ;;  %v849_v35 = vld [vmem:[%s1466_s1 + $0x148] sm:$0xf] }
  0x26   :  { %528 = vmatpush.bf16.msrb.mxu3 %v934_v50  ;;  %466 = vmatmul.bf16.vlgmr.msra.gmra.mxu2 %v1274_v51  ;;  %v870_v36 = vor.u32 %v982_v28, %v867_v29  ;;  %v980_v37 = vld [vmem:[%s1466_s1 + $0x154] sm:$0xf0]  ;;  %v946_v38 = vld [vmem:[%s1466_s1 + $0x4c] sm:$0xf]  ;;  %v723_v39 = vld [vmem:[%s1466_s1 + $0x58] sm:$0xf0]  ;;  %v722_v42 = vor.u32 %v948_v34, %v721_v33 }
  0x27   :  { %480 = vmatmul.bf16.vlgmr.msra.gmra.mxu3 %v1285_v55  ;;  %v978_v40 = vld [vmem:[%s1466_s1 + $0x14c] sm:$0xf]  ;;  %v851_v41 = vld [vmem:[%s1466_s1 + $0x158] sm:$0xf0]  ;;  %v850_v43 = vor.u32 %v980_v37, %v849_v35  ;;  %v726_v44 = vor.u32 %v946_v38, %v723_v39  ;;  %v705_v45 = vld [vmem:[%s1466_s1 + $0x28] sm:$0xf] }
  0x28   :  { %487 = vmatpush.bf16.msrb.mxu0 %v786_v58  ;;  %v944_v46 = vld [vmem:[%s1466_s1 + $0x34] sm:$0xf0]  ;;  %v833_v47 = vld [vmem:[%s1466_s1 + $0x128] sm:$0xf]  ;;  %v854_v48 = vor.u32 %v978_v40, %v851_v41  ;;  %v942_v50 = vld [vmem:[%s1466_s1 + $0x2c] sm:$0xf] }
  0x29   :  { %501 = vmatpush.bf16.msrb.mxu1 %v914_v59  ;;  %515 = vmatpush.bf16.msrb.mxu2 %v790_v60  ;;  %v976_v49 = vld [vmem:[%s1466_s1 + $0x134] sm:$0xf0]  ;;  %v707_v52 = vld [vmem:[%s1466_s1 + $0x38] sm:$0xf0]  ;;  %v974_v53 = vld [vmem:[%s1466_s1 + $0x12c] sm:$0xf]  ;;  %v706_v56 = vor.u32 %v944_v46, %v705_v45 }
  0x2a   :  { %529 = vmatpush.bf16.msrb.mxu3 %v918_v0  ;;  %v835_v54 = vld [vmem:[%s1466_s1 + $0x138] sm:$0xf0]  ;;  %v834_v57 = vor.u32 %v976_v49, %v833_v47  ;;  %v710_v58 = vor.u32 %v942_v50, %v707_v52  ;;  %v689_v59 = vld [vmem:[%s1466_s1 + $0x8] sm:$0xf]  ;;  %v940_v60 = vld [vmem:[%s1466_s1 + $0x14] sm:$0xf0] }
  0x2b   :  { %v817_v61 = vld [vmem:[%s1466_s1 + $0x108] sm:$0xf]  ;;  %v838_v62 = vor.u32 %v974_v53, %v835_v54  ;;  %v972_v63 = vld [vmem:[%s1466_s1 + $0x114] sm:$0xf0]  ;;  %v938_v0 = vld [vmem:[%s1466_s1 + $0xc] sm:$0xf]  ;;  %v690_v4 = vor.u32 %v940_v60, %v689_v59 }
  0x2c   :  { %488 = vmatpush.bf16.msrb.mxu0 %v770_v6  ;;  %v691_v1 = vld [vmem:[%s1466_s1 + $0x18] sm:$0xf0]  ;;  %v970_v2 = vld [vmem:[%s1466_s1 + $0x10c] sm:$0xf]  ;;  %v818_v5 = vor.u32 %v972_v63, %v817_v61 }
  0x2d   :  { %502 = vmatpush.bf16.msrb.mxu1 %v898_v7  ;;  %516 = vmatpush.bf16.msrb.mxu2 %v774_v8  ;;  %v819_v3 = vld [vmem:[%s1466_s1 + $0x118] sm:$0xf0]  ;;  %v694_v6 = vor.u32 %v938_v0, %v691_v1  ;;  %v1448_v8 = vld [vmem:[%s1468_s2] sm:$0xf] }
  0x2e   :  { %530 = vmatpush.bf16.msrb.mxu3 %v902_v12  ;;  %v822_v7 = vor.u32 %v970_v2, %v819_v3  ;;  %v571_v10 = vperm.slane %v1448_v8, 0  ;;  %v572_v16 = vperm.slane %v1448_v8, 1  ;;  %v573_v49 = vperm.slane %v1448_v8, 2 }
  0x2f   :  { %v574_v1 = vperm.slane %v1448_v8, 3 }
  0x30   :  { %489 = vmatpush.bf16.msrb.mxu0 %v754_v18 }
  0x31   :  { %503 = vmatpush.bf16.msrb.mxu1 %v882_v19  ;;  %517 = vmatpush.bf16.msrb.mxu2 %v758_v20 }
  0x32   :  { %531 = vmatpush.bf16.msrb.mxu3 %v886_v24 }
  0x34   :  { %490 = vmatpush.bf16.msrb.mxu0 %v738_v30 }
  0x35   :  { %504 = vmatpush.bf16.msrb.mxu1 %v866_v31  ;;  %518 = vmatpush.bf16.msrb.mxu2 %v742_v32 }
  0x36   :  { %532 = vmatpush.bf16.msrb.mxu3 %v870_v36 }
  0x38   :  { %491 = vmatpush.bf16.msrb.mxu0 %v722_v42 }
  0x39   :  { %505 = vmatpush.bf16.msrb.mxu1 %v850_v43  ;;  %519 = vmatpush.bf16.msrb.mxu2 %v726_v44 }
  0x3a   :  { %533 = vmatpush.bf16.msrb.mxu3 %v854_v48 }
  0x3c   :  { %492 = vmatpush.bf16.msrb.mxu0 %v706_v56 }
  0x3d   :  { %506 = vmatpush.bf16.msrb.mxu1 %v834_v57  ;;  %520 = vmatpush.bf16.msrb.mxu2 %v710_v58 }
  0x3e   :  { %534 = vmatpush.bf16.msrb.mxu3 %v838_v62 }
  0x40   :  { %493 = vmatpush.bf16.msrb.mxu0 %v690_v4 }
  0x41   :  { %507 = vmatpush.bf16.msrb.mxu1 %v818_v5  ;;  %521 = vmatpush.bf16.msrb.mxu2 %v694_v6 }
  0x42   :  { %535 = vmatpush.bf16.msrb.mxu3 %v822_v7 }
  0x43   :  { %494 = vmatmul.bf16.vlgmr.msrb.gmra.mxu0 %v1274_v51 }
  0x44   :  { %508 = vmatmul.bf16.vlgmr.msrb.gmra.mxu1 %v1285_v55  ;;  %522 = vmatmul.bf16.vlgmr.msrb.gmra.mxu2 %v1274_v51 }
  0x45   :  { %536 = vmatmul.bf16.vlgmr.msrb.gmra.mxu3 %v1285_v55 }
  0xa0   :  { %v439_v9 = vpop.f32.mrf.mxu0 }
  0xa1   :  { %v453_v11 = vpop.f32.mrf.mxu1 }
  0xa2   :  { %v454_v12 = vadd.f32 %v453_v11, %v439_v9 }
  0xa4   :  { %v579_v13 = vadd.f32 %v571_v10, %v454_v12 }
  0xa6   :  { %v587_v14 = vmul.f32 %v579_v13, %v579_v13 }
  0xa8   :  { %v595_v17 = vmul.f32 %v587_v14, %v579_v13  ;;  %v441_v51 = vpop.f32.mrf.mxu0 }
  0xa9   :  { %v467_v15 = vpop.f32.mrf.mxu2  ;;  %v455_v55 = vpop.f32.mrf.mxu1 }
  0xaa   :  { %v481_v18 = vpop.f32.mrf.mxu3  ;;  %v603_v20 = vmul.f32 0.044715, %v595_v17  ;;  %v456_v21 = vadd.f32 %v455_v55, %v441_v51 }
  0xab   :  { %v482_v19 = vadd.f32 %v481_v18, %v467_v15 }
  0xac   :  { %v611_v23 = vadd.f32 %v603_v20, %v579_v13  ;;  %v583_v24 = vadd.f32 %v571_v10, %v456_v21 }
  0xad   :  { %v580_v22 = vadd.f32 %v572_v16, %v482_v19 }
  0xae   :  { %v619_v26 = vmul.f32 0.7978846, %v611_v23  ;;  %v591_v27 = vmul.f32 %v583_v24, %v583_v24 }
  0xaf   :  { %v588_v25 = vmul.f32 %v580_v22, %v580_v22 }
  0xb0   :  { %v599_v30 = vmul.f32 %v591_v27, %v583_v24  ;;  %1001 = vtanh.f32 %v619_v26 }
  0xb1   :  { %v596_v28 = vmul.f32 %v588_v25, %v580_v22  ;;  %v469_v29 = vpop.f32.mrf.mxu2 }
  0xb2   :  { %v483_v31 = vpop.f32.mrf.mxu3  ;;  %v607_v34 = vmul.f32 0.044715, %v599_v30 }
  0xb3   :  { %v604_v32 = vmul.f32 0.044715, %v596_v28  ;;  %v484_v33 = vadd.f32 %v483_v31, %v469_v29 }
  0xb4   :  { %v615_v37 = vadd.f32 %v607_v34, %v583_v24 }
  0xb5   :  { %v612_v35 = vadd.f32 %v604_v32, %v580_v22  ;;  %v584_v36 = vadd.f32 %v572_v16, %v484_v33 }
  0xb6   :  { %v623_v40 = vmul.f32 0.7978846, %v615_v37  ;;  %v1002_v41 = vpop.eup %1001 }
  0xb7   :  { %v620_v38 = vmul.f32 0.7978846, %v612_v35  ;;  %v592_v39 = vmul.f32 %v584_v36, %v584_v36  ;;  %v635_v44 = vadd.f32 1.0, %v1002_v41 }
  0xb9   :  { %1003 = vtanh.f32 %v620_v38  ;;  %v600_v42 = vmul.f32 %v592_v39, %v584_v36  ;;  %v643_v50 = vmul.f32 0.5, %v635_v44 }
  0xba   :  { %1005 = vtanh.f32 %v623_v40 }
  0xbb   :  { %v608_v43 = vmul.f32 0.044715, %v600_v42  ;;  %v651_v59 = vmul.f32 %v643_v50, %v579_v13 }
  0xbd   :  { %v616_v45 = vadd.f32 %v608_v43, %v584_v36 }
  0xbf   :  { %v1004_v46 = vpop.eup %1003  ;;  %v624_v47 = vmul.f32 0.7978846, %v616_v45 }
  0xc0   :  { %v495_v48 = vpop.f32.mrf.mxu0  ;;  %v636_v52 = vadd.f32 1.0, %v1004_v46  ;;  %v1006_v54 = vpop.eup %1005 }
  0xc1   :  { %v509_v53 = vpop.f32.mrf.mxu1  ;;  %1007 = vtanh.f32 %v624_v47  ;;  %v639_v61 = vadd.f32 1.0, %v1006_v54 }
  0xc2   :  { %v510_v56 = vadd.f32 %v509_v53, %v495_v48  ;;  %v644_v57 = vmul.f32 0.5, %v636_v52 }
  0xc3   :  { %v647_v6 = vmul.f32 0.5, %v639_v61 }
  0xc4   :  { %v581_v58 = vadd.f32 %v573_v49, %v510_v56  ;;  %v652_v60 = vmul.f32 %v644_v57, %v580_v22 }
  0xc5   :  { %v655_v17 = vmul.f32 %v647_v6, %v583_v24 }
  0xc6   :  { %v589_v62 = vmul.f32 %v581_v58, %v581_v58  ;;  %v659_v63 = vpack.c.bf16 %v652_v60, %v651_v59 }
  0xc7   :  { %v523_v0 = vpop.f32.mrf.mxu2  ;;  %v1008_v2 = vpop.eup %1007 }
  0xc8   :  { %v597_v3 = vmul.f32 %v589_v62, %v581_v58  ;;  %v537_v4 = vpop.f32.mrf.mxu3  ;;  %v497_v5 = vpop.f32.mrf.mxu0  ;;  %663 = vst [vmem:[%s1469_s3] sm:$0xff] %v659_v63  ;;  %v640_v7 = vadd.f32 1.0, %v1008_v2 }
  0xc9   :  { %v538_v9 = vadd.f32 %v537_v4, %v523_v0  ;;  %v511_v10 = vpop.f32.mrf.mxu1 }
  0xca   :  { %v605_v11 = vmul.f32 0.044715, %v597_v3  ;;  %v512_v12 = vadd.f32 %v511_v10, %v497_v5  ;;  %v648_v13 = vmul.f32 0.5, %v640_v7 }
  0xcb   :  { %v582_v14 = vadd.f32 %v574_v1, %v538_v9 }
  0xcc   :  { %v613_v15 = vadd.f32 %v605_v11, %v581_v58  ;;  %v585_v16 = vadd.f32 %v573_v49, %v512_v12  ;;  %v656_v8 = vmul.f32 %v648_v13, %v584_v36 }
  0xcd   :  { %v590_v18 = vmul.f32 %v582_v14, %v582_v14 }
  0xce   :  { %v621_v51 = vmul.f32 0.7978846, %v613_v15  ;;  %v593_v19 = vmul.f32 %v585_v16, %v585_v16  ;;  %v661_v55 = vpack.c.bf16 %v656_v8, %v655_v17 }
  0xcf   :  { %v598_v20 = vmul.f32 %v590_v18, %v582_v14  ;;  %v525_v21 = vpop.f32.mrf.mxu2 }
  0xd0   :  { %v601_v22 = vmul.f32 %v593_v19, %v585_v16  ;;  %v539_v23 = vpop.f32.mrf.mxu3  ;;  %665 = vst [vmem:[%s1469_s3 + $0x10] sm:$0xff] %v661_v55  ;;  %1009 = vtanh.f32 %v621_v51 }
  0xd1   :  { %v606_v25 = vmul.f32 0.044715, %v598_v20  ;;  %v540_v26 = vadd.f32 %v539_v23, %v525_v21 }
  0xd2   :  { %v609_v27 = vmul.f32 0.044715, %v601_v22 }
  0xd3   :  { %v614_v28 = vadd.f32 %v606_v25, %v582_v14  ;;  %v586_v29 = vadd.f32 %v574_v1, %v540_v26 }
  0xd4   :  { %v617_v24 = vadd.f32 %v609_v27, %v585_v16 }
  0xd5   :  { %v622_v30 = vmul.f32 0.7978846, %v614_v28  ;;  %v594_v31 = vmul.f32 %v586_v29, %v586_v29 }
  0xd6   :  { %v625_v32 = vmul.f32 0.7978846, %v617_v24  ;;  %v1010_v33 = vpop.eup %1009 }
  0xd7   :  { %1011 = vtanh.f32 %v622_v30  ;;  %v602_v34 = vmul.f32 %v594_v31, %v586_v29  ;;  %v637_v36 = vadd.f32 1.0, %v1010_v33 }
  0xd8   :  { %1013 = vtanh.f32 %v625_v32 }
  0xd9   :  { %v610_v35 = vmul.f32 0.044715, %v602_v34  ;;  %v645_v40 = vmul.f32 0.5, %v637_v36 }
  0xdb   :  { %v618_v37 = vadd.f32 %v610_v35, %v586_v29  ;;  %v653_v44 = vmul.f32 %v645_v40, %v581_v58 }
  0xdd   :  { %v1012_v38 = vpop.eup %1011  ;;  %v626_v39 = vmul.f32 0.7978846, %v618_v37 }
  0xde   :  { %v638_v41 = vadd.f32 1.0, %v1012_v38  ;;  %v1014_v42 = vpop.eup %1013 }
  0xdf   :  { %1015 = vtanh.f32 %v626_v39  ;;  %v641_v46 = vadd.f32 1.0, %v1014_v42 }
  0xe0   :  { %v646_v43 = vmul.f32 0.5, %v638_v41 }
  0xe1   :  { %v649_v49 = vmul.f32 0.5, %v641_v46 }
  0xe2   :  { %v654_v45 = vmul.f32 %v646_v43, %v582_v14 }
  0xe3   :  { %v657_v53 = vmul.f32 %v649_v49, %v585_v16 }
  0xe4   :  { %v660_v47 = vpack.c.bf16 %v654_v45, %v653_v44 }
  0xe5   :  { %v1016_v48 = vpop.eup %1015 }
  0xe6   :  { %664 = vst [vmem:[%s1469_s3 + $0x8] sm:$0xff] %v660_v47  ;;  %v642_v50 = vadd.f32 1.0, %v1016_v48 }
  0xe8   :  { %v650_v52 = vmul.f32 0.5, %v642_v50 }
  0xea   :  { %v658_v54 = vmul.f32 %v650_v52, %v586_v29 }
  0xec   :  { %v662_v56 = vpack.c.bf16 %v658_v54, %v657_v53 }
  0xee   :  { %666 = vst [vmem:[%s1469_s3 + $0x18] sm:$0xff] %v662_v56 }

// kernel: transformer_wce_classifier_forward.10
= control target key start
LH: loop header
LB: loop body
LE: loop exit
PB: predicated region body
PF: predicated region fallthrough
CT: control target
= control target key end

     0   :  { %s1503_s1 = inlined_call_operand.vmem [shape: bf16[512,256], index: 1, kind: input, shape index: {}]   ;;  %s1504_s0 = inlined_call_operand.vmem [shape: bf16[16,512], index: 0, kind: input, shape index: {}]   ;;  %s1505_s2 = inlined_call_operand.vmem [shape: f32[1,256], index: 2, kind: input, shape index: {}]   ;;  %s1506_s3 = inlined_call_operand.vmem [shape: bf16[16,256], index: 3, kind: input, shape index: {}]   ;;  %s1507_s4 = inlined_call_operand.vmem [shape: f32[1,256], index: 4, kind: input, shape index: {}]   ;;  %s1508_s5 = inlined_call_operand.vmem [shape: f32[1,256], index: 5, kind: input, shape index: {}]   ;;  %s1509_s6 = inlined_call_operand.vmem [shape: bf16[16,256], index: 6, kind: output, shape index: {}]  }
   0x1   :  { %v749_v0 = vld [vmem:[%s1503_s1 + $0x70] sm:$0xf]  ;;  %v966_v1 = vld [vmem:[%s1503_s1 + $0x74] sm:$0xf0]  ;;  %v741_v11 = vld [vmem:[%s1503_s1 + $0x60] sm:$0xf] }
   0x2   :  { %v813_v2 = vld [vmem:[%s1503_s1 + $0xf0] sm:$0xf]  ;;  %v750_v3 = vor.u32 %v966_v1, %v749_v0  ;;  %v982_v4 = vld [vmem:[%s1503_s1 + $0xf4] sm:$0xf0]  ;;  %v964_v13 = vld [vmem:[%s1503_s1 + $0x64] sm:$0xf0] }
   0x3   :  { %v877_v5 = vld [vmem:[%s1503_s1 + $0x170] sm:$0xf]  ;;  %v998_v6 = vld [vmem:[%s1503_s1 + $0x174] sm:$0xf0]  ;;  %v814_v7 = vor.u32 %v982_v4, %v813_v2  ;;  %v805_v14 = vld [vmem:[%s1503_s1 + $0xe0] sm:$0xf]  ;;  %v742_v16 = vor.u32 %v964_v13, %v741_v11 }
   0x4   :  { %v878_v8 = vor.u32 %v998_v6, %v877_v5  ;;  %v941_v9 = vld [vmem:[%s1503_s1 + $0x1f0] sm:$0xf]  ;;  %v1014_v10 = vld [vmem:[%s1503_s1 + $0x1f4] sm:$0xf0]  ;;  %443 = vmatpush.bf16.msra.mxu0 %v750_v3  ;;  %v980_v15 = vld [vmem:[%s1503_s1 + $0xe4] sm:$0xf0] }
   0x5   :  { %v942_v12 = vor.u32 %v1014_v10, %v941_v9  ;;  %457 = vmatpush.bf16.msra.mxu1 %v814_v7  ;;  %v806_v17 = vor.u32 %v980_v15, %v805_v14  ;;  %v869_v18 = vld [vmem:[%s1503_s1 + $0x160] sm:$0xf]  ;;  %v996_v19 = vld [vmem:[%s1503_s1 + $0x164] sm:$0xf0]  ;;  %v733_v23 = vld [vmem:[%s1503_s1 + $0x50] sm:$0xf] }
   0x6   :  { %471 = vmatpush.bf16.msra.mxu2 %v878_v8  ;;  %v933_v20 = vld [vmem:[%s1503_s1 + $0x1e0] sm:$0xf]  ;;  %v870_v21 = vor.u32 %v996_v19, %v869_v18  ;;  %v1012_v22 = vld [vmem:[%s1503_s1 + $0x1e4] sm:$0xf0]  ;;  %v962_v24 = vld [vmem:[%s1503_s1 + $0x54] sm:$0xf0] }
   0x7   :  { %485 = vmatpush.bf16.msra.mxu3 %v942_v12  ;;  %v934_v25 = vor.u32 %v1012_v22, %v933_v20  ;;  %v797_v26 = vld [vmem:[%s1503_s1 + $0xd0] sm:$0xf]  ;;  %v978_v27 = vld [vmem:[%s1503_s1 + $0xd4] sm:$0xf0]  ;;  %v734_v29 = vor.u32 %v962_v24, %v733_v23  ;;  %v725_v35 = vld [vmem:[%s1503_s1 + $0x40] sm:$0xf] }
   0x8   :  { %v861_v28 = vld [vmem:[%s1503_s1 + $0x150] sm:$0xf]  ;;  %444 = vmatpush.bf16.msra.mxu0 %v742_v16  ;;  %v994_v30 = vld [vmem:[%s1503_s1 + $0x154] sm:$0xf0]  ;;  %v798_v33 = vor.u32 %v978_v27, %v797_v26  ;;  %v960_v36 = vld [vmem:[%s1503_s1 + $0x44] sm:$0xf0] }
   0x9   :  { %v925_v31 = vld [vmem:[%s1503_s1 + $0x1d0] sm:$0xf]  ;;  %v1010_v32 = vld [vmem:[%s1503_s1 + $0x1d4] sm:$0xf0]  ;;  %458 = vmatpush.bf16.msra.mxu1 %v806_v17  ;;  %v862_v34 = vor.u32 %v994_v30, %v861_v28  ;;  %v789_v37 = vld [vmem:[%s1503_s1 + $0xc0] sm:$0xf]  ;;  %v726_v44 = vor.u32 %v960_v36, %v725_v35 }
   0xa   :  { %472 = vmatpush.bf16.msra.mxu2 %v870_v21  ;;  %v926_v38 = vor.u32 %v1010_v32, %v925_v31  ;;  %v976_v39 = vld [vmem:[%s1503_s1 + $0xc4] sm:$0xf0]  ;;  %v853_v40 = vld [vmem:[%s1503_s1 + $0x140] sm:$0xf]  ;;  %v717_v47 = vld [vmem:[%s1503_s1 + $0x30] sm:$0xf] }
   0xb   :  { %486 = vmatpush.bf16.msra.mxu3 %v934_v25  ;;  %v992_v41 = vld [vmem:[%s1503_s1 + $0x144] sm:$0xf0]  ;;  %v917_v42 = vld [vmem:[%s1503_s1 + $0x1c0] sm:$0xf]  ;;  %v790_v45 = vor.u32 %v976_v39, %v789_v37  ;;  %v958_v48 = vld [vmem:[%s1503_s1 + $0x34] sm:$0xf0] }
   0xc   :  { %v1008_v43 = vld [vmem:[%s1503_s1 + $0x1c4] sm:$0xf0]  ;;  %445 = vmatpush.bf16.msra.mxu0 %v734_v29  ;;  %v854_v46 = vor.u32 %v992_v41, %v853_v40  ;;  %v781_v49 = vld [vmem:[%s1503_s1 + $0xb0] sm:$0xf]  ;;  %v974_v51 = vld [vmem:[%s1503_s1 + $0xb4] sm:$0xf0]  ;;  %v718_v56 = vor.u32 %v958_v48, %v717_v47 }
   0xd   :  { %459 = vmatpush.bf16.msra.mxu1 %v798_v33  ;;  %v918_v50 = vor.u32 %v1008_v43, %v917_v42  ;;  %v845_v52 = vld [vmem:[%s1503_s1 + $0x130] sm:$0xf]  ;;  %v990_v53 = vld [vmem:[%s1503_s1 + $0x134] sm:$0xf0]  ;;  %v782_v57 = vor.u32 %v974_v51, %v781_v49  ;;  %v709_v59 = vld [vmem:[%s1503_s1 + $0x20] sm:$0xf] }
   0xe   :  { %473 = vmatpush.bf16.msra.mxu2 %v862_v34  ;;  %v909_v54 = vld [vmem:[%s1503_s1 + $0x1b0] sm:$0xf]  ;;  %v1006_v55 = vld [vmem:[%s1503_s1 + $0x1b4] sm:$0xf0]  ;;  %v846_v58 = vor.u32 %v990_v53, %v845_v52  ;;  %v956_v60 = vld [vmem:[%s1503_s1 + $0x24] sm:$0xf0] }
   0xf   :  { %487 = vmatpush.bf16.msra.mxu3 %v926_v38  ;;  %v773_v61 = vld [vmem:[%s1503_s1 + $0xa0] sm:$0xf]  ;;  %v910_v62 = vor.u32 %v1006_v55, %v909_v54  ;;  %v972_v63 = vld [vmem:[%s1503_s1 + $0xa4] sm:$0xf0]  ;;  %v710_v4 = vor.u32 %v956_v60, %v709_v59  ;;  %v701_v7 = vld [vmem:[%s1503_s1 + $0x10] sm:$0xf] }
  0x10   :  { %446 = vmatpush.bf16.msra.mxu0 %v726_v44  ;;  %v837_v0 = vld [vmem:[%s1503_s1 + $0x120] sm:$0xf]  ;;  %v988_v1 = vld [vmem:[%s1503_s1 + $0x124] sm:$0xf0]  ;;  %v774_v5 = vor.u32 %v972_v63, %v773_v61  ;;  %v954_v8 = vld [vmem:[%s1503_s1 + $0x14] sm:$0xf0] }
  0x11   :  { %460 = vmatpush.bf16.msra.mxu1 %v790_v45  ;;  %v901_v2 = vld [vmem:[%s1503_s1 + $0x1a0] sm:$0xf]  ;;  %v1004_v3 = vld [vmem:[%s1503_s1 + $0x1a4] sm:$0xf0]  ;;  %v838_v6 = vor.u32 %v988_v1, %v837_v0  ;;  %v765_v9 = vld [vmem:[%s1503_s1 + $0x90] sm:$0xf]  ;;  %v702_v17 = vor.u32 %v954_v8, %v701_v7 }
  0x12   :  { %474 = vmatpush.bf16.msra.mxu2 %v854_v46  ;;  %v902_v10 = vor.u32 %v1004_v3, %v901_v2  ;;  %v970_v11 = vld [vmem:[%s1503_s1 + $0x94] sm:$0xf0]  ;;  %v829_v12 = vld [vmem:[%s1503_s1 + $0x110] sm:$0xf]  ;;  %v693_v16 = vld [vmem:[%s1503_s1] sm:$0xf] }
  0x13   :  { %488 = vmatpush.bf16.msra.mxu3 %v918_v50  ;;  %v986_v13 = vld [vmem:[%s1503_s1 + $0x114] sm:$0xf0]  ;;  %v893_v14 = vld [vmem:[%s1503_s1 + $0x190] sm:$0xf]  ;;  %v952_v18 = vld [vmem:[%s1503_s1 + $0x4] sm:$0xf0]  ;;  %v766_v21 = vor.u32 %v970_v11, %v765_v9 }
  0x14   :  { %447 = vmatpush.bf16.msra.mxu0 %v718_v56  ;;  %v1002_v15 = vld [vmem:[%s1503_s1 + $0x194] sm:$0xf0]  ;;  %v757_v19 = vld [vmem:[%s1503_s1 + $0x80] sm:$0xf]  ;;  %v968_v20 = vld [vmem:[%s1503_s1 + $0x84] sm:$0xf0]  ;;  %v830_v22 = vor.u32 %v986_v13, %v829_v12  ;;  %v694_v33 = vor.u32 %v952_v18, %v693_v16 }
  0x15   :  { %461 = vmatpush.bf16.msra.mxu1 %v782_v57  ;;  %v821_v23 = vld [vmem:[%s1503_s1 + $0x100] sm:$0xf]  ;;  %v984_v24 = vld [vmem:[%s1503_s1 + $0x104] sm:$0xf0]  ;;  %v894_v26 = vor.u32 %v1002_v15, %v893_v14  ;;  %v965_v28 = vld [vmem:[%s1503_s1 + $0x74] sm:$0xf]  ;;  %v758_v37 = vor.u32 %v968_v20, %v757_v19 }
  0x16   :  { %475 = vmatpush.bf16.msra.mxu2 %v846_v58  ;;  %v885_v25 = vld [vmem:[%s1503_s1 + $0x180] sm:$0xf]  ;;  %v1000_v27 = vld [vmem:[%s1503_s1 + $0x184] sm:$0xf0]  ;;  %v751_v29 = vld [vmem:[%s1503_s1 + $0x78] sm:$0xf0]  ;;  %v822_v38 = vor.u32 %v984_v24, %v821_v23 }
  0x17   :  { %489 = vmatpush.bf16.msra.mxu3 %v910_v62  ;;  %v981_v30 = vld [vmem:[%s1503_s1 + $0xf4] sm:$0xf]  ;;  %v815_v31 = vld [vmem:[%s1503_s1 + $0xf8] sm:$0xf0]  ;;  %v963_v39 = vld [vmem:[%s1503_s1 + $0x64] sm:$0xf]  ;;  %v886_v43 = vor.u32 %v1000_v27, %v885_v25  ;;  %v754_v44 = vor.u32 %v965_v28, %v751_v29 }
  0x18   :  { %448 = vmatpush.bf16.msra.mxu0 %v710_v4  ;;  %v997_v32 = vld [vmem:[%s1503_s1 + $0x174] sm:$0xf]  ;;  %v879_v34 = vld [vmem:[%s1503_s1 + $0x178] sm:$0xf0]  ;;  %v743_v40 = vld [vmem:[%s1503_s1 + $0x68] sm:$0xf0]  ;;  %v818_v49 = vor.u32 %v981_v30, %v815_v31 }
  0x19   :  { %462 = vmatpush.bf16.msra.mxu1 %v774_v5  ;;  %v1013_v35 = vld [vmem:[%s1503_s1 + $0x1f4] sm:$0xf]  ;;  %v943_v36 = vld [vmem:[%s1503_s1 + $0x1f8] sm:$0xf0]  ;;  %v685_v41 = vld [vmem:[%s1504_s0 + $0x8] sm:$0xf]  ;;  %v882_v50 = vor.u32 %v997_v32, %v879_v34  ;;  %v746_v63 = vor.u32 %v963_v39, %v743_v40 }
  0x1a   :  { %476 = vmatpush.bf16.msra.mxu2 %v838_v6  ;;  %v950_v42 = vld [vmem:[%s1504_s0 + $0x14] sm:$0xf0]  ;;  %v979_v45 = vld [vmem:[%s1503_s1 + $0xe4] sm:$0xf]  ;;  %v807_v46 = vld [vmem:[%s1503_s1 + $0xe8] sm:$0xf0]  ;;  %v946_v54 = vor.u32 %v1013_v35, %v943_v36 }
  0x1b   :  { %490 = vmatpush.bf16.msra.mxu3 %v902_v10  ;;  %v995_v47 = vld [vmem:[%s1503_s1 + $0x164] sm:$0xf]  ;;  %v871_v48 = vld [vmem:[%s1503_s1 + $0x168] sm:$0xf0]  ;;  %v687_v52 = vld [vmem:[%s1504_s0 + $0x18] sm:$0xf0]  ;;  %v1307_v55 = vor.u32 %v950_v42, %v685_v41  ;;  %v810_v1 = vor.u32 %v979_v45, %v807_v46 }
  0x1c   :  { %449 = vmatpush.bf16.msra.mxu0 %v702_v17  ;;  %v948_v51 = vld [vmem:[%s1504_s0 + $0xc] sm:$0xf]  ;;  %v677_v53 = vld [vmem:[%s1504_s0] sm:$0xf]  ;;  %v949_v56 = vld [vmem:[%s1504_s0 + $0xc] sm:$0xf0]  ;;  %v874_v2 = vor.u32 %v995_v47, %v871_v48 }
  0x1d   :  { %463 = vmatpush.bf16.msra.mxu1 %v766_v21  ;;  %v947_v57 = vld [vmem:[%s1504_s0 + $0x4] sm:$0xf]  ;;  %v679_v58 = vld [vmem:[%s1504_s0 + $0x10] sm:$0xf0]  ;;  %v935_v60 = vld [vmem:[%s1503_s1 + $0x1e8] sm:$0xf0]  ;;  %v1324_v61 = vor.u32 %v948_v51, %v687_v52  ;;  %v1326_v62 = vor.u32 %v949_v56, %v677_v53 }
  0x1e   :  { %477 = vmatpush.bf16.msra.mxu2 %v830_v22  ;;  %v1011_v59 = vld [vmem:[%s1503_s1 + $0x1e4] sm:$0xf]  ;;  %v1328_v0 = vor.u32 %v947_v57, %v679_v58  ;;  %v961_v3 = vld [vmem:[%s1503_s1 + $0x54] sm:$0xf]  ;;  %v735_v4 = vld [vmem:[%s1503_s1 + $0x58] sm:$0xf0] }
  0x1f   :  { %491 = vmatpush.bf16.msra.mxu3 %v894_v26  ;;  %v977_v5 = vld [vmem:[%s1503_s1 + $0xd4] sm:$0xf]  ;;  %v938_v6 = vor.u32 %v1011_v59, %v935_v60  ;;  %v799_v7 = vld [vmem:[%s1503_s1 + $0xd8] sm:$0xf0]  ;;  %v738_v12 = vor.u32 %v961_v3, %v735_v4  ;;  %v959_v15 = vld [vmem:[%s1503_s1 + $0x44] sm:$0xf] }
  0x20   :  { %450 = vmatpush.bf16.msra.mxu0 %v694_v33  ;;  %v993_v8 = vld [vmem:[%s1503_s1 + $0x154] sm:$0xf]  ;;  %v863_v9 = vld [vmem:[%s1503_s1 + $0x158] sm:$0xf0]  ;;  %v802_v13 = vor.u32 %v977_v5, %v799_v7  ;;  %v727_v16 = vld [vmem:[%s1503_s1 + $0x48] sm:$0xf0] }
  0x21   :  { %464 = vmatpush.bf16.msra.mxu1 %v758_v37  ;;  %v1009_v10 = vld [vmem:[%s1503_s1 + $0x1d4] sm:$0xf]  ;;  %v927_v11 = vld [vmem:[%s1503_s1 + $0x1d8] sm:$0xf0]  ;;  %v866_v14 = vor.u32 %v993_v8, %v863_v9  ;;  %v975_v17 = vld [vmem:[%s1503_s1 + $0xc4] sm:$0xf]  ;;  %v730_v24 = vor.u32 %v959_v15, %v727_v16 }
  0x22   :  { %478 = vmatpush.bf16.msra.mxu2 %v822_v38  ;;  %v930_v18 = vor.u32 %v1009_v10, %v927_v11  ;;  %v791_v19 = vld [vmem:[%s1503_s1 + $0xc8] sm:$0xf0]  ;;  %v991_v20 = vld [vmem:[%s1503_s1 + $0x144] sm:$0xf]  ;;  %v957_v27 = vld [vmem:[%s1503_s1 + $0x34] sm:$0xf] }
  0x23   :  { %492 = vmatpush.bf16.msra.mxu3 %v886_v43  ;;  %451 = vmatmul.bf16.vlgmr.msra.gmra.mxu0 %v1326_v62  ;;  %v855_v21 = vld [vmem:[%s1503_s1 + $0x148] sm:$0xf0]  ;;  %v1007_v22 = vld [vmem:[%s1503_s1 + $0x1c4] sm:$0xf]  ;;  %v794_v25 = vor.u32 %v975_v17, %v791_v19  ;;  %v719_v28 = vld [vmem:[%s1503_s1 + $0x38] sm:$0xf0] }
  0x24   :  { %499 = vmatpush.bf16.msrb.mxu0 %v754_v44  ;;  %465 = vmatmul.bf16.vlgmr.msra.gmra.mxu1 %v1328_v0  ;;  %v919_v23 = vld [vmem:[%s1503_s1 + $0x1c8] sm:$0xf0]  ;;  %v858_v26 = vor.u32 %v991_v20, %v855_v21  ;;  %v973_v29 = vld [vmem:[%s1503_s1 + $0xb4] sm:$0xf]  ;;  %v783_v31 = vld [vmem:[%s1503_s1 + $0xb8] sm:$0xf0]  ;;  %v722_v36 = vor.u32 %v957_v27, %v719_v28 }
  0x25   :  { %513 = vmatpush.bf16.msrb.mxu1 %v818_v49  ;;  %479 = vmatmul.bf16.vlgmr.msra.gmra.mxu2 %v1307_v55  ;;  %v922_v30 = vor.u32 %v1007_v22, %v919_v23  ;;  %v989_v32 = vld [vmem:[%s1503_s1 + $0x134] sm:$0xf]  ;;  %v847_v33 = vld [vmem:[%s1503_s1 + $0x138] sm:$0xf0]  ;;  %v786_v37 = vor.u32 %v973_v29, %v783_v31  ;;  %v955_v39 = vld [vmem:[%s1503_s1 + $0x24] sm:$0xf] }
  0x26   :  { %527 = vmatpush.bf16.msrb.mxu2 %v882_v50  ;;  %493 = vmatmul.bf16.vlgmr.msra.gmra.mxu3 %v1324_v61  ;;  %v1005_v34 = vld [vmem:[%s1503_s1 + $0x1b4] sm:$0xf]  ;;  %v911_v35 = vld [vmem:[%s1503_s1 + $0x1b8] sm:$0xf0]  ;;  %v850_v38 = vor.u32 %v989_v32, %v847_v33  ;;  %v711_v40 = vld [vmem:[%s1503_s1 + $0x28] sm:$0xf0] }
  0x27   :  { %541 = vmatpush.bf16.msrb.mxu3 %v946_v54  ;;  %v971_v41 = vld [vmem:[%s1503_s1 + $0xa4] sm:$0xf]  ;;  %v914_v42 = vor.u32 %v1005_v34, %v911_v35  ;;  %v775_v43 = vld [vmem:[%s1503_s1 + $0xa8] sm:$0xf0]  ;;  %v714_v48 = vor.u32 %v955_v39, %v711_v40  ;;  %v953_v51 = vld [vmem:[%s1503_s1 + $0x14] sm:$0xf] }
  0x28   :  { %500 = vmatpush.bf16.msrb.mxu0 %v746_v63  ;;  %v987_v44 = vld [vmem:[%s1503_s1 + $0x124] sm:$0xf]  ;;  %v839_v45 = vld [vmem:[%s1503_s1 + $0x128] sm:$0xf0]  ;;  %v778_v49 = vor.u32 %v971_v41, %v775_v43  ;;  %v703_v52 = vld [vmem:[%s1503_s1 + $0x18] sm:$0xf0] }
  0x29   :  { %514 = vmatpush.bf16.msrb.mxu1 %v810_v1  ;;  %v1003_v46 = vld [vmem:[%s1503_s1 + $0x1a4] sm:$0xf]  ;;  %v903_v47 = vld [vmem:[%s1503_s1 + $0x1a8] sm:$0xf0]  ;;  %v842_v50 = vor.u32 %v987_v44, %v839_v45  ;;  %v969_v53 = vld [vmem:[%s1503_s1 + $0x94] sm:$0xf]  ;;  %v706_v63 = vor.u32 %v953_v51, %v703_v52 }
  0x2a   :  { %528 = vmatpush.bf16.msrb.mxu2 %v874_v2  ;;  %v906_v54 = vor.u32 %v1003_v46, %v903_v47  ;;  %v767_v56 = vld [vmem:[%s1503_s1 + $0x98] sm:$0xf0]  ;;  %v985_v57 = vld [vmem:[%s1503_s1 + $0x114] sm:$0xf]  ;;  %v951_v3 = vld [vmem:[%s1503_s1 + $0x4] sm:$0xf] }
  0x2b   :  { %542 = vmatpush.bf16.msrb.mxu3 %v938_v6  ;;  %v831_v58 = vld [vmem:[%s1503_s1 + $0x118] sm:$0xf0]  ;;  %v1001_v59 = vld [vmem:[%s1503_s1 + $0x194] sm:$0xf]  ;;  %v770_v1 = vor.u32 %v969_v53, %v767_v56  ;;  %v695_v4 = vld [vmem:[%s1503_s1 + $0x8] sm:$0xf0] }
  0x2c   :  { %501 = vmatpush.bf16.msrb.mxu0 %v738_v12  ;;  %v895_v60 = vld [vmem:[%s1503_s1 + $0x198] sm:$0xf0]  ;;  %v834_v2 = vor.u32 %v985_v57, %v831_v58  ;;  %v967_v5 = vld [vmem:[%s1503_s1 + $0x84] sm:$0xf]  ;;  %v759_v7 = vld [vmem:[%s1503_s1 + $0x88] sm:$0xf0]  ;;  %v698_v12 = vor.u32 %v951_v3, %v695_v4 }
  0x2d   :  { %515 = vmatpush.bf16.msrb.mxu1 %v802_v13  ;;  %v898_v6 = vor.u32 %v1001_v59, %v895_v60  ;;  %v983_v8 = vld [vmem:[%s1503_s1 + $0x104] sm:$0xf]  ;;  %v823_v9 = vld [vmem:[%s1503_s1 + $0x108] sm:$0xf0]  ;;  %v762_v13 = vor.u32 %v967_v5, %v759_v7  ;;  %v1022_v60 = vmov 256.0  }
  0x2e   :  { %529 = vmatpush.bf16.msrb.mxu2 %v866_v14  ;;  %v999_v10 = vld [vmem:[%s1503_s1 + $0x184] sm:$0xf]  ;;  %v887_v11 = vld [vmem:[%s1503_s1 + $0x188] sm:$0xf0]  ;;  %v826_v14 = vor.u32 %v983_v8, %v823_v9  ;;  %1016 = vrcp.f32 %v1022_v60 }
  0x2f   :  { %543 = vmatpush.bf16.msrb.mxu3 %v930_v18  ;;  %v890_v15 = vor.u32 %v999_v10, %v887_v11  ;;  %v580_v29 = vld [vmem:[%s1506_s3] sm:$0xff]  ;;  %v581_v47 = vld [vmem:[%s1506_s3 + $0x8] sm:$0xff] }
  0x30   :  { %502 = vmatpush.bf16.msrb.mxu0 %v730_v24  ;;  %v582_v34 = vunpack.c.l.bf16 %v580_v29  ;;  %v584_v53 = vunpack.c.l.bf16 %v581_v47 }
  0x31   :  { %516 = vmatpush.bf16.msrb.mxu1 %v794_v25 }
  0x32   :  { %530 = vmatpush.bf16.msrb.mxu2 %v858_v26 }
  0x33   :  { %544 = vmatpush.bf16.msrb.mxu3 %v922_v30 }
  0x34   :  { %503 = vmatpush.bf16.msrb.mxu0 %v722_v36 }
  0x35   :  { %517 = vmatpush.bf16.msrb.mxu1 %v786_v37 }
  0x36   :  { %531 = vmatpush.bf16.msrb.mxu2 %v850_v38  ;;  %v583_v38 = vunpack.c.h.bf16 %v580_v29  ;;  %v657_v29 = vld [vmem:[%s1508_s5] sm:$0x3] }
  0x37   :  { %545 = vmatpush.bf16.msrb.mxu3 %v914_v42 }
  0x38   :  { %504 = vmatpush.bf16.msrb.mxu0 %v714_v48 }
  0x39   :  { %518 = vmatpush.bf16.msrb.mxu1 %v778_v49 }
  0x3a   :  { %532 = vmatpush.bf16.msrb.mxu2 %v842_v50 }
  0x3b   :  { %546 = vmatpush.bf16.msrb.mxu3 %v906_v54  ;;  %v585_v54 = vunpack.c.h.bf16 %v581_v47 }
  0x3c   :  { %505 = vmatpush.bf16.msrb.mxu0 %v706_v63  ;;  %v1017_v63 = vpop.eup %1016 }
  0x3d   :  { %519 = vmatpush.bf16.msrb.mxu1 %v770_v1  ;;  %v597_v1 = vmul.f32 256.0, %v1017_v63  ;;  %vm601_vm0 = vweird.f32 %v1017_v63 }
  0x3e   :  { %533 = vmatpush.bf16.msrb.mxu2 %v834_v2 }
  0x3f   :  { %547 = vmatpush.bf16.msrb.mxu3 %v898_v6  ;;  %v598_v2 = vsub.f32 1.0, %v597_v1 }
  0x40   :  { %506 = vmatpush.bf16.msrb.mxu0 %v698_v12 }
  0x41   :  { %520 = vmatpush.bf16.msrb.mxu1 %v762_v13  ;;  %v599_v3 = vmul.f32 %v1017_v63, %v598_v2 }
  0x42   :  { %534 = vmatpush.bf16.msrb.mxu2 %v826_v14 }
  0x43   :  { %548 = vmatpush.bf16.msrb.mxu3 %v890_v15  ;;  %507 = vmatmul.bf16.vlgmr.msrb.gmra.mxu0 %v1326_v62  ;;  %v570_v62 = vld [vmem:[%s1505_s2] sm:$0x3]  ;;  %v600_v4 = vadd.f32 %v1017_v63, %v599_v3 }
  0x44   :  { %521 = vmatmul.bf16.vlgmr.msrb.gmra.mxu1 %v1328_v0  ;;  %v572_v28 = vperm.slane %v570_v62, 0  ;;  %v573_v33 = vperm.slane %v570_v62, 1 }
  0x45   :  { %535 = vmatmul.bf16.vlgmr.msrb.gmra.mxu2 %v1307_v55  ;;  %v602_v5 = vsel %vm601_vm0, %v1017_v63, %v600_v4 }
  0x46   :  { %549 = vmatmul.bf16.vlgmr.msrb.gmra.mxu3 %v1324_v61 }
  0xa0   :  { %v452_v16 = vpop.f32.mrf.mxu0 }
  0xa1   :  { %v466_v17 = vpop.f32.mrf.mxu1 }
  0xa2   :  { %v467_v22 = vadd.f32 %v466_v17, %v452_v16 }
  0xa8   :  { %v480_v18 = vpop.f32.mrf.mxu2  ;;  %v454_v20 = vpop.f32.mrf.mxu0 }
  0xa9   :  { %v494_v19 = vpop.f32.mrf.mxu3  ;;  %v468_v21 = vpop.f32.mrf.mxu1  ;;  %v481_v27 = vadd.f32 %v480_v18, %v467_v22 }
  0xaa   :  { %v469_v61 = vadd.f32 %v468_v21, %v454_v20 }
  0xab   :  { %v495_v55 = vadd.f32 %v494_v19, %v481_v27 }
  0xad   :  { %v576_v35 = vadd.f32 %v572_v28, %v495_v55  ;;  %v647_v55 = vld [vmem:[%s1507_s4] sm:$0x3] }
  0xaf   :  { %v586_v44 = vadd.f32 %v582_v34, %v576_v35 }
  0xb0   :  { %v482_v23 = vpop.f32.mrf.mxu2 }
  0xb1   :  { %v496_v24 = vpop.f32.mrf.mxu3  ;;  %v483_v36 = vadd.f32 %v482_v23, %v469_v61 }
  0xb3   :  { %v497_v42 = vadd.f32 %v496_v24, %v483_v36  ;;  %v659_v36 = vperm.slane %v657_v29, 0 }
  0xb5   :  { %v578_v51 = vadd.f32 %v572_v28, %v497_v42 }
  0xb7   :  { %v588_v57 = vadd.f32 %v584_v53, %v578_v51 }
  0xc0   :  { %v508_v25 = vpop.f32.mrf.mxu0 }
  0xc1   :  { %v522_v26 = vpop.f32.mrf.mxu1 }
  0xc2   :  { %v523_v0 = vadd.f32 %v522_v26, %v508_v25 }
  0xc8   :  { %v536_v30 = vpop.f32.mrf.mxu2  ;;  %v510_v39 = vpop.f32.mrf.mxu0 }
  0xc9   :  { %v537_v31 = vadd.f32 %v536_v30, %v523_v0  ;;  %v550_v32 = vpop.f32.mrf.mxu3  ;;  %v524_v40 = vpop.f32.mrf.mxu1 }
  0xca   :  { %v525_v43 = vadd.f32 %v524_v40, %v510_v39 }
  0xcb   :  { %v551_v37 = vadd.f32 %v550_v32, %v537_v31  ;;  %v649_v32 = vperm.slane %v647_v55, 0 }
  0xcd   :  { %v577_v41 = vadd.f32 %v573_v33, %v551_v37  ;;  %v660_v37 = vperm.slane %v657_v29, 1 }
  0xcf   :  { %v587_v45 = vadd.f32 %v583_v38, %v577_v41 }
  0xd0   :  { %v538_v46 = vpop.f32.mrf.mxu2 }
  0xd1   :  { %v539_v48 = vadd.f32 %v538_v46, %v525_v43  ;;  %v590_v49 = vadd.f32 %v587_v45, %v586_v44  ;;  %v552_v50 = vpop.f32.mrf.mxu3 }
  0xd3   :  { %v553_v52 = vadd.f32 %v552_v50, %v539_v48  ;;  %591 = vadd.xlane.f32.xlu0 %v590_v49 }
  0xd5   :  { %v579_v56 = vadd.f32 %v573_v33, %v553_v52  ;;  %v650_v33 = vperm.slane %v647_v55, 1 }
  0xd7   :  { %v589_v58 = vadd.f32 %v585_v54, %v579_v56 }
  0xd9   :  { %v593_v59 = vadd.f32 %v589_v58, %v588_v57 }
  0xdb   :  { %594 = vadd.xlane.f32.xlu0 %v593_v59 }
 0x146   :  { %v592_v6 = vpop.xlane.xlu0 %591 }
 0x147   :  { %v603_v7 = vmul.f32 %v602_v5, %v592_v6 }
 0x149   :  { %v605_v8 = vsub.f32 %v586_v44, %v603_v7  ;;  %v606_v9 = vsub.f32 %v587_v45, %v603_v7 }
 0x14b   :  { %v609_v10 = vmul.f32 %v605_v8, %v605_v8  ;;  %v610_v11 = vmul.f32 %v606_v9, %v606_v9 }
 0x14d   :  { %v613_v12 = vadd.f32 %v610_v11, %v609_v10 }
 0x14e   :  { %v595_v13 = vpop.xlane.xlu0 %594 }
 0x14f   :  { %v604_v14 = vmul.f32 %v602_v5, %v595_v13  ;;  %614 = vadd.xlane.f32.xlu1 %v613_v12 }
 0x151   :  { %v607_v15 = vsub.f32 %v588_v57, %v604_v14  ;;  %v608_v16 = vsub.f32 %v589_v58, %v604_v14 }
 0x153   :  { %v611_v17 = vmul.f32 %v607_v15, %v607_v15  ;;  %v612_v18 = vmul.f32 %v608_v16, %v608_v16 }
 0x155   :  { %v616_v19 = vadd.f32 %v612_v18, %v611_v17 }
 0x157   :  { %617 = vadd.xlane.f32.xlu1 %v616_v19 }
 0x1c2   :  { %v615_v20 = vpop.xlane.xlu1 %614 }
 0x1c3   :  { %v619_v21 = vmul.f32 %v615_v20, %v602_v5 }
 0x1c5   :  { %v621_v22 = vadd.f32 1e-12, %v619_v21 }
 0x1c7   :  { %1018 = vrsqrt.f32 %v621_v22  ;;  %vm629_vm2 = vweird.f32 %v621_v22 }
 0x1ca   :  { %v618_v23 = vpop.xlane.xlu1 %617 }
 0x1cb   :  { %v620_v24 = vmul.f32 %v618_v23, %v602_v5 }
 0x1cd   :  { %v1019_v25 = vpop.eup %1018  ;;  %v622_v26 = vadd.f32 1e-12, %v620_v24 }
 0x1ce   :  { %v624_v27 = vmul.f32 %v1019_v25, %v621_v22  ;;  %vm630_vm1 = vweird.f32 %v1019_v25 }
 0x1cf   :  { %1020 = vrsqrt.f32 %v622_v26  ;;  %vm631_vm3 = vmor %vm629_vm2, %vm630_vm1  ;;  %vm639_vm5 = vweird.f32 %v622_v26 }
 0x1d0   :  { %v625_v62 = vmul.f32 %v1019_v25, %v624_v27 }
 0x1d2   :  { %v626_v0 = vmul.f32 0.5, %v625_v62 }
 0x1d4   :  { %v627_v28 = vsub.f32 1.5, %v626_v0 }
 0x1d5   :  { %v1021_v61 = vpop.eup %1020 }
 0x1d6   :  { %v628_v30 = vmul.f32 %v1019_v25, %v627_v28  ;;  %v634_v31 = vmul.f32 %v1021_v61, %v622_v26  ;;  %vm640_vm4 = vweird.f32 %v1021_v61 }
 0x1d7   :  { %vm641_vm6 = vmor %vm639_vm5, %vm640_vm4 }
 0x1d8   :  { %v632_v34 = vsel %vm631_vm3, %v1019_v25, %v628_v30  ;;  %v635_v35 = vmul.f32 %v1021_v61, %v634_v31 }
 0x1d9   :  { %v643_v38 = vmul.f32 %v632_v34, %v605_v8  ;;  %v644_v39 = vmul.f32 %v632_v34, %v606_v9 }
 0x1da   :  { %v636_v40 = vmul.f32 0.5, %v635_v35 }
 0x1db   :  { %v653_v41 = vmul.f32 %v649_v32, %v643_v38  ;;  %v654_v42 = vmul.f32 %v650_v33, %v644_v39 }
 0x1dc   :  { %v637_v43 = vsub.f32 1.5, %v636_v40 }
 0x1dd   :  { %v663_v44 = vadd.f32 %v659_v36, %v653_v41  ;;  %v664_v45 = vadd.f32 %v660_v37, %v654_v42 }
 0x1de   :  { %v638_v46 = vmul.f32 %v1021_v61, %v637_v43 }
 0x1df   :  { %v667_v47 = vpack.c.bf16 %v664_v45, %v663_v44 }
 0x1e0   :  { %v642_v48 = vsel %vm641_vm6, %v1021_v61, %v638_v46 }
 0x1e1   :  { %669 = vst [vmem:[%s1509_s6] sm:$0xff] %v667_v47  ;;  %v645_v49 = vmul.f32 %v642_v48, %v607_v15  ;;  %v646_v50 = vmul.f32 %v642_v48, %v608_v16 }
 0x1e3   :  { %v655_v51 = vmul.f32 %v649_v32, %v645_v49  ;;  %v656_v52 = vmul.f32 %v650_v33, %v646_v50 }
 0x1e5   :  { %v665_v53 = vadd.f32 %v659_v36, %v655_v51  ;;  %v666_v54 = vadd.f32 %v660_v37, %v656_v52 }
 0x1e7   :  { %v668_v56 = vpack.c.bf16 %v666_v54, %v665_v53 }
 0x1e9   :  { %670 = vst [vmem:[%s1509_s6 + $0x8] sm:$0xff] %v668_v56 }

// kernel: transformer_wce_classifier_forward.11
= control target key start
LH: loop header
LB: loop body
LE: loop exit
PB: predicated region body
PF: predicated region fallthrough
CT: control target
= control target key end

     0   :  { %vm110_vm0 = vcmask 7168   ;;  %v1080_v2 = vmov 0   ;;  %v1081_v4 = vmov 0.0   ;;  %vm35_vm1 = vcmask 1024   ;;  %s1499_s0 = inlined_call_operand.vmem [shape: bf16[2,8,256], index: 0, kind: input, shape index: {}]   ;;  %s1500_s1 = inlined_call_operand.vmem [shape: f32[2,8,1], index: 1, kind: input, shape index: {}]   ;;  %s1501_s2 = inlined_call_operand.vmem [shape: f32[2,128], index: 2, kind: input, shape index: {}]   ;;  %s1502_s3 = inlined_call_operand.vmem [shape: bf16[256,256], index: 3, kind: input, shape index: {}]   ;;  %s1503_s4 = inlined_call_operand.vmem [shape: bf16[128,256], index: 4, kind: input, shape index: {}]   ;;  %s1504_s5 = inlined_call_operand.vmem [shape: f32[1,256], index: 5, kind: input, shape index: {}]   ;;  %s1505_s6 = inlined_call_operand.vmem [shape: bf16[256,128], index: 6, kind: input, shape index: {}]   ;;  %s1506_s7 = inlined_call_operand.vmem [shape: f32[1,128], index: 7, kind: input, shape index: {}]   ;;  %s1507_s8 = inlined_call_operand.hbm [shape: f32[2,128], index: 8, kind: output, shape index: {}]  }
   0x1   :  { %v38_v0 = vld [vmem:[%s1500_s1 + $0x8] sm:$0xff]  ;;  %v37_v1 = vld [vmem:[%s1500_s1] sm:$0xff]  ;;  %1049 = vset.pattern.permute.xlu0 %v1080_v2  ;;  %34 = vst [vmem:[#allocation2] sm:$0xf] %v1081_v4  ;;  %1050 = vset.pattern.permute.xlu1 %v1080_v2  ;;  %v783_v8 = vld [vmem:[%s1503_s4 + $0x70] sm:$0xf] }
   0x2   :  { %v118_v3 = vsel %vm110_vm0, %v38_v0, 0.0  ;;  %v111_v5 = vsel %vm110_vm0, %v37_v1, 0.0  ;;  %53 = vperm.xlu0 %1049, %v38_v0   ;;  %36 = vst.msk [vmem:[#allocation3] sm:$0x3] %vm35_vm1, %v1081_v4  ;;  %v1028_v9 = vld [vmem:[%s1503_s4 + $0x74] sm:$0xf0] }
   0x3   :  { %v119_v6 = vrot.slane %v118_v3, 4  ;;  %v112_v7 = vrot.slane %v111_v5, 4  ;;  %v1027_v10 = vld [vmem:[%s1503_s4 + $0x74] sm:$0xf]  ;;  %v785_v11 = vld [vmem:[%s1503_s4 + $0x78] sm:$0xf0]  ;;  %v784_v14 = vor.u32 %v1028_v9, %v783_v8 }
   0x4   :  { %v788_v15 = vor.u32 %v1027_v10, %v785_v11 }
   0x5   :  { %v120_v12 = vadd.f32 %v119_v6, %v118_v3  ;;  %v113_v13 = vadd.f32 %v112_v7, %v111_v5 }
   0x6   :  { %13 = vsyncpa [#allocation5], 0  ;;  %300 = vmatpush.bf16.msra.mxu0 %v784_v14  ;;  %313 = vmatpush.bf16.msra.mxu1 %v788_v15  ;;  %vm98_vm2 = vcmask 1041409   ;;  %v775_v29 = vld [vmem:[%s1503_s4 + $0x60] sm:$0xf]  ;;  %v41_v14 = vld [vmem:[%s1499_s0 + $0x8] sm:$0xff] }
   0x7   :  { %v121_v16 = vrot.slane %v120_v12, 2  ;;  %v114_v17 = vrot.slane %v113_v13, 2  ;;  %v1026_v30 = vld [vmem:[%s1503_s4 + $0x64] sm:$0xf0]  ;;  %v1025_v31 = vld [vmem:[%s1503_s4 + $0x64] sm:$0xf] }
   0x8   :  { %v776_v32 = vor.u32 %v1026_v30, %v775_v29  ;;  %v777_v33 = vld [vmem:[%s1503_s4 + $0x68] sm:$0xf0]  ;;  %v767_v35 = vld [vmem:[%s1503_s4 + $0x50] sm:$0xf]  ;;  %v1024_v36 = vld [vmem:[%s1503_s4 + $0x54] sm:$0xf0] }
   0x9   :  { %v122_v18 = vadd.f32 %v121_v16, %v120_v12  ;;  %v115_v19 = vadd.f32 %v114_v17, %v113_v13  ;;  %v109_v23 = vld [vmem:[#allocation3] sm:$0x3]  ;;  %v780_v34 = vor.u32 %v1025_v31, %v777_v33  ;;  %v1023_v37 = vld [vmem:[%s1503_s4 + $0x54] sm:$0xf]  ;;  %v768_v38 = vor.u32 %v1024_v36, %v767_v35  ;;  %v769_v39 = vld [vmem:[%s1503_s4 + $0x58] sm:$0xf0] }
   0xa   :  { %48 = vperm.xlu0 %1049, %v37_v1   ;;  %301 = vmatpush.bf16.msra.mxu0 %v776_v32  ;;  %v772_v40 = vor.u32 %v1023_v37, %v769_v39  ;;  %v759_v41 = vld [vmem:[%s1503_s4 + $0x40] sm:$0xf]  ;;  %v1022_v42 = vld [vmem:[%s1503_s4 + $0x44] sm:$0xf0]  ;;  %v1021_v44 = vld [vmem:[%s1503_s4 + $0x44] sm:$0xf] }
   0xb   :  { %v123_v20 = vrot.slane %v122_v18, 1  ;;  %v116_v21 = vrot.slane %v115_v19, 1  ;;  %314 = vmatpush.bf16.msra.mxu1 %v780_v34  ;;  %v760_v43 = vor.u32 %v1022_v42, %v759_v41  ;;  %v761_v45 = vld [vmem:[%s1503_s4 + $0x48] sm:$0xf0]  ;;  %v751_v47 = vld [vmem:[%s1503_s4 + $0x30] sm:$0xf] }
   0xc   :  { %v764_v46 = vor.u32 %v1021_v44, %v761_v45  ;;  %v1020_v48 = vld [vmem:[%s1503_s4 + $0x34] sm:$0xf0]  ;;  %v1019_v49 = vld [vmem:[%s1503_s4 + $0x34] sm:$0xf]  ;;  %v753_v51 = vld [vmem:[%s1503_s4 + $0x38] sm:$0xf0] }
   0xd   :  { %v124_v22 = vadd.f32 %v123_v20, %v122_v18  ;;  %v117_v24 = vadd.f32 %v116_v21, %v115_v19  ;;  %v752_v50 = vor.u32 %v1020_v48, %v751_v47  ;;  %v756_v52 = vor.u32 %v1019_v49, %v753_v51  ;;  %v743_v53 = vld [vmem:[%s1503_s4 + $0x20] sm:$0xf]  ;;  %v1018_v54 = vld [vmem:[%s1503_s4 + $0x24] sm:$0xf0]  ;;  %v1017_v55 = vld [vmem:[%s1503_s4 + $0x24] sm:$0xf] }
   0xe   :  { %302 = vmatpush.bf16.msra.mxu0 %v768_v38  ;;  %v744_v56 = vor.u32 %v1018_v54, %v743_v53  ;;  %v745_v57 = vld [vmem:[%s1503_s4 + $0x28] sm:$0xf0]  ;;  %v735_v59 = vld [vmem:[%s1503_s4 + $0x10] sm:$0xf]  ;;  %v1016_v60 = vld [vmem:[%s1503_s4 + $0x14] sm:$0xf0] }
   0xf   :  { %v127_v25 = vsel %vm98_vm2, %v124_v22, %v117_v24  ;;  %315 = vmatpush.bf16.msra.mxu1 %v772_v40  ;;  %v748_v58 = vor.u32 %v1017_v55, %v745_v57  ;;  %v1015_v61 = vld [vmem:[%s1503_s4 + $0x14] sm:$0xf]  ;;  %v736_v62 = vor.u32 %v1016_v60, %v735_v59  ;;  %v737_v63 = vld [vmem:[%s1503_s4 + $0x18] sm:$0xf0]  ;;  %v727_v1 = vld [vmem:[%s1503_s4] sm:$0xf]  ;;  %v45_v24 = vunpack.c.h.bf16 %v41_v14 }
  0x10   :  { %v129_v26 = vadd.f32 %v127_v25, %v109_v23  ;;  %v740_v0 = vor.u32 %v1015_v61, %v737_v63  ;;  %v1014_v2 = vld [vmem:[%s1503_s4 + $0x4] sm:$0xf0]  ;;  %v1013_v3 = vld [vmem:[%s1503_s4 + $0x4] sm:$0xf]  ;;  %v729_v5 = vld [vmem:[%s1503_s4 + $0x8] sm:$0xf0]  ;;  %v44_v23 = vunpack.c.l.bf16 %v41_v14 }
  0x11   :  { %v728_v4 = vor.u32 %v1014_v2, %v727_v1  ;;  %v732_v6 = vor.u32 %v1013_v3, %v729_v5  ;;  %v847_v7 = vld [vmem:[%s1502_s3 + $0x70] sm:$0xf]  ;;  %v996_v8 = vld [vmem:[%s1502_s3 + $0x74] sm:$0xf0]  ;;  %v995_v12 = vld [vmem:[%s1502_s3 + $0x74] sm:$0xf] }
  0x12   :  { %131 = vst.msk [vmem:[#allocation3] sm:$0x3] %vm35_vm1, %v129_v26  ;;  %303 = vmatpush.bf16.msra.mxu0 %v760_v43  ;;  %v911_v9 = vld [vmem:[%s1502_s3 + $0xf0] sm:$0xf]  ;;  %v848_v10 = vor.u32 %v996_v8, %v847_v7  ;;  %v1012_v11 = vld [vmem:[%s1502_s3 + $0xf4] sm:$0xf0] }
  0x13   :  { %316 = vmatpush.bf16.msra.mxu1 %v764_v46  ;;  %v849_v13 = vld [vmem:[%s1502_s3 + $0x78] sm:$0xf0]  ;;  %v912_v15 = vor.u32 %v1012_v11, %v911_v9  ;;  %v1011_v17 = vld [vmem:[%s1502_s3 + $0xf4] sm:$0xf]  ;;  %v839_v20 = vld [vmem:[%s1502_s3 + $0x60] sm:$0xf] }
  0x14   :  { %v852_v16 = vor.u32 %v995_v12, %v849_v13  ;;  %v913_v18 = vld [vmem:[%s1502_s3 + $0xf8] sm:$0xf0]  ;;  %486 = vmatpush.bf16.msra.mxu2 %v848_v10  ;;  %v994_v21 = vld [vmem:[%s1502_s3 + $0x64] sm:$0xf0]  ;;  %v903_v22 = vld [vmem:[%s1502_s3 + $0xe0] sm:$0xf] }
  0x15   :  { %v916_v19 = vor.u32 %v1011_v17, %v913_v18  ;;  %499 = vmatpush.bf16.msra.mxu3 %v912_v15  ;;  %v840_v25 = vor.u32 %v994_v21, %v839_v20  ;;  %v1010_v26 = vld [vmem:[%s1502_s3 + $0xe4] sm:$0xf0]  ;;  %v1009_v31 = vld [vmem:[%s1502_s3 + $0xe4] sm:$0xf]  ;;  %v905_v32 = vld [vmem:[%s1502_s3 + $0xe8] sm:$0xf0] }
  0x16   :  { %304 = vmatpush.bf16.msra.mxu0 %v752_v50  ;;  %v904_v29 = vor.u32 %v1010_v26, %v903_v22  ;;  %v40_v33 = vld [vmem:[%s1499_s0] sm:$0xff]  ;;  %v908_v34 = vor.u32 %v1009_v31, %v905_v32  ;;  %v831_v36 = vld [vmem:[%s1502_s3 + $0x50] sm:$0xf]  ;;  %v992_v37 = vld [vmem:[%s1502_s3 + $0x54] sm:$0xf0]  ;;  %vm90_vm3 = vcmask 1041408  }
  0x17   :  { %317 = vmatpush.bf16.msra.mxu1 %v756_v52  ;;  %v895_v38 = vld [vmem:[%s1502_s3 + $0xd0] sm:$0xf]  ;;  %v832_v41 = vor.u32 %v992_v37, %v831_v36  ;;  %v1008_v42 = vld [vmem:[%s1502_s3 + $0xd4] sm:$0xf0]  ;;  %v991_v43 = vld [vmem:[%s1502_s3 + $0x54] sm:$0xf]  ;;  %v42_v52 = vunpack.c.l.bf16 %v40_v33 }
  0x18   :  { %487 = vmatpush.bf16.msra.mxu2 %v840_v25  ;;  %v833_v44 = vld [vmem:[%s1502_s3 + $0x58] sm:$0xf0]  ;;  %v896_v45 = vor.u32 %v1008_v42, %v895_v38  ;;  %v1007_v47 = vld [vmem:[%s1502_s3 + $0xd4] sm:$0xf]  ;;  %v823_v53 = vld [vmem:[%s1502_s3 + $0x40] sm:$0xf] }
  0x19   :  { %v135_v27 = vld [vmem:[#allocation3] sm:$0x3]  ;;  %500 = vmatpush.bf16.msra.mxu3 %v904_v29  ;;  %v836_v46 = vor.u32 %v991_v43, %v833_v44  ;;  %v897_v48 = vld [vmem:[%s1502_s3 + $0xd8] sm:$0xf0]  ;;  %v990_v54 = vld [vmem:[%s1502_s3 + $0x44] sm:$0xf0] }
  0x1a   :  { %v136_v28 = vmax.f32 %v135_v27, 1.0  ;;  %305 = vmatpush.bf16.msra.mxu0 %v744_v56  ;;  %v993_v27 = vld [vmem:[%s1502_s3 + $0x64] sm:$0xf]  ;;  %v900_v51 = vor.u32 %v1007_v47, %v897_v48  ;;  %v887_v55 = vld [vmem:[%s1502_s3 + $0xc0] sm:$0xf]  ;;  %v824_v59 = vor.u32 %v990_v54, %v823_v53  ;;  %vm100_vm4 = vcmask 1043459  }
  0x1b   :  { %318 = vmatpush.bf16.msra.mxu1 %v748_v58  ;;  %v43_v58 = vunpack.c.h.bf16 %v40_v33  ;;  %v1006_v60 = vld [vmem:[%s1502_s3 + $0xc4] sm:$0xf0]  ;;  %v989_v61 = vld [vmem:[%s1502_s3 + $0x44] sm:$0xf]  ;;  %v889_v2 = vld [vmem:[%s1502_s3 + $0xc8] sm:$0xf0] }
  0x1c   :  { %140 = vperm.xlu1 %1050, %v136_v28   ;;  %v841_v28 = vld [vmem:[%s1502_s3 + $0x68] sm:$0xf0]  ;;  %488 = vmatpush.bf16.msra.mxu2 %v832_v41  ;;  %v888_v63 = vor.u32 %v1006_v60, %v887_v55  ;;  %v1005_v1 = vld [vmem:[%s1502_s3 + $0xc4] sm:$0xf]  ;;  %v170_v3 = vld [vmem:[%s1501_s2] sm:$0x3] }
  0x1d   :  { %v844_v30 = vor.u32 %v993_v27, %v841_v28  ;;  %501 = vmatpush.bf16.msra.mxu3 %v896_v45  ;;  %v171_v7 = vpack.c.bf16 %v170_v3, %v170_v3  ;;  %v815_v9 = vld [vmem:[%s1502_s3 + $0x30] sm:$0xf]  ;;  %v988_v10 = vld [vmem:[%s1502_s3 + $0x34] sm:$0xf0]  ;;  %v987_v17 = vld [vmem:[%s1502_s3 + $0x34] sm:$0xf] }
  0x1e   :  { %306 = vmatpush.bf16.msra.mxu0 %v736_v62  ;;  %v825_v62 = vld [vmem:[%s1502_s3 + $0x48] sm:$0xf0]  ;;  %v879_v11 = vld [vmem:[%s1502_s3 + $0xb0] sm:$0xf]  ;;  %v817_v18 = vld [vmem:[%s1502_s3 + $0x38] sm:$0xf0] }
  0x1f   :  { %319 = vmatpush.bf16.msra.mxu1 %v740_v0  ;;  %v828_v0 = vor.u32 %v989_v61, %v825_v62  ;;  %v820_v21 = vor.u32 %v987_v17, %v817_v18  ;;  %v1003_v22 = vld [vmem:[%s1502_s3 + $0xb4] sm:$0xf]  ;;  %v807_v28 = vld [vmem:[%s1502_s3 + $0x20] sm:$0xf]  ;;  %v986_v29 = vld [vmem:[%s1502_s3 + $0x24] sm:$0xf0] }
  0x20   :  { %489 = vmatpush.bf16.msra.mxu2 %v824_v59  ;;  %v809_v36 = vld [vmem:[%s1502_s3 + $0x28] sm:$0xf0]  ;;  %v808_v38 = vor.u32 %v986_v29, %v807_v28  ;;  %v1001_v41 = vld [vmem:[%s1502_s3 + $0xa4] sm:$0xf]  ;;  %v799_v47 = vld [vmem:[%s1502_s3 + $0x10] sm:$0xf] }
  0x21   :  { %502 = vmatpush.bf16.msra.mxu3 %v888_v63  ;;  %v873_v42 = vld [vmem:[%s1502_s3 + $0xa8] sm:$0xf0]  ;;  %v984_v48 = vld [vmem:[%s1502_s3 + $0x14] sm:$0xf0]  ;;  %v983_v54 = vld [vmem:[%s1502_s3 + $0x14] sm:$0xf] }
  0x22   :  { %307 = vmatpush.bf16.msra.mxu0 %v728_v4  ;;  %v800_v53 = vor.u32 %v984_v48, %v799_v47  ;;  %v801_v55 = vld [vmem:[%s1502_s3 + $0x18] sm:$0xf0]  ;;  %v791_v62 = vld [vmem:[%s1502_s3] sm:$0xf]  ;;  %v982_v3 = vld [vmem:[%s1502_s3 + $0x4] sm:$0xf0] }
  0x23   :  { %320 = vmatpush.bf16.msra.mxu1 %v732_v6  ;;  %v892_v6 = vor.u32 %v1005_v1, %v889_v2  ;;  %v804_v60 = vor.u32 %v983_v54, %v801_v55  ;;  %v865_v61 = vld [vmem:[%s1502_s3 + $0x98] sm:$0xf0]  ;;  %vm102_vm5 = vcmask 1045509   ;;  %vm104_vm6 = vcmask 1047559   ;;  %v1042_v48 = vld [vmem:[%s1505_s6 + $0x68] sm:$0xff]  ;;  %s1083_s15 = smov [#allocation4]  }
  0x24   :  { %v1036_v47 = vld [vmem:[%s1505_s6 + $0x38] sm:$0xff]  ;;  %s714_s16 = sshll.u32 %s1083_s15, 4  ;;  %s716_s19 = sshll.u32 %s1507_s8, 4  ;;  %s715_s16 = int_to_ptr.vmem [resolvable:$true] %s714_s16  ;;  %s717_s19 = int_to_ptr.hbm [resolvable:$true] %s716_s19 }
  0x25   :  { %308 = vmatmul.bf16.vlgmr.msra.gmra.mxu0 %v171_v7 }
  0x26   :  { %512 = vmatpush.bf16.msrb.mxu0 %v852_v16  ;;  %v1004_v16 = vld [vmem:[%s1502_s3 + $0xb4] sm:$0xf0]  ;;  %321 = vmatmul.bf16.vlgmr.msra.gmra.mxu1 %v171_v7  ;;  %v981_v7 = vld [vmem:[%s1502_s3 + $0x4] sm:$0xf] }
  0x27   :  { %525 = vmatpush.bf16.msrb.mxu1 %v916_v19  ;;  %v816_v19 = vor.u32 %v988_v10, %v815_v9  ;;  %v880_v20 = vor.u32 %v1004_v16, %v879_v11 }
  0x29   :  { %490 = vmatpush.bf16.msra.mxu2 %v816_v19  ;;  %503 = vmatpush.bf16.msra.mxu3 %v880_v20 }
  0x2a   :  { %513 = vmatpush.bf16.msrb.mxu0 %v844_v30  ;;  %v871_v30 = vld [vmem:[%s1502_s3 + $0xa0] sm:$0xf] }
  0x2b   :  { %526 = vmatpush.bf16.msrb.mxu1 %v908_v34  ;;  %v1002_v34 = vld [vmem:[%s1502_s3 + $0xa4] sm:$0xf0] }
  0x2d   :  { %491 = vmatpush.bf16.msra.mxu2 %v808_v38 }
  0x2e   :  { %514 = vmatpush.bf16.msrb.mxu0 %v836_v46  ;;  %v876_v46 = vor.u32 %v1001_v41, %v873_v42 }
  0x2f   :  { %527 = vmatpush.bf16.msrb.mxu1 %v900_v51 }
  0x31   :  { %492 = vmatpush.bf16.msra.mxu2 %v800_v53  ;;  %v1033_v53 = vld [vmem:[%s1505_s6 + $0x20] sm:$0xff] }
  0x32   :  { %515 = vmatpush.bf16.msrb.mxu0 %v828_v0 }
  0x33   :  { %528 = vmatpush.bf16.msrb.mxu1 %v892_v6  ;;  %v998_v6 = vld [vmem:[%s1502_s3 + $0x84] sm:$0xf0] }
  0x36   :  { %516 = vmatpush.bf16.msrb.mxu0 %v820_v21 }
  0x74   :  { %v54_v35 = vpop.permute.xlu0 %53 }
  0x75   :  { %v58_v39 = vmul.f32 %v54_v35, %v44_v23  ;;  %v59_v40 = vmul.f32 %v54_v35, %v45_v24  ;;  %v881_v23 = vld [vmem:[%s1502_s3 + $0xb8] sm:$0xf0]  ;;  %v985_v35 = vld [vmem:[%s1502_s3 + $0x24] sm:$0xf] }
  0x76   :  { %v884_v27 = vor.u32 %v1003_v22, %v881_v23 }
  0x77   :  { %v72_v49 = vrot.slane %v58_v39, 4  ;;  %v78_v50 = vrot.slane %v59_v40, 4 }
  0x78   :  { %529 = vmatpush.bf16.msrb.mxu1 %v884_v27 }
  0x79   :  { %v73_v56 = vadd.f32 %v72_v49, %v58_v39  ;;  %v79_v57 = vadd.f32 %v78_v50, %v59_v40  ;;  %v872_v39 = vor.u32 %v1002_v34, %v871_v30  ;;  %v812_v40 = vor.u32 %v985_v35, %v809_v36  ;;  %v863_v49 = vld [vmem:[%s1502_s3 + $0x90] sm:$0xf]  ;;  %v1000_v50 = vld [vmem:[%s1502_s3 + $0x94] sm:$0xf0] }
  0x7a   :  { %v864_v59 = vor.u32 %v1000_v50, %v863_v49  ;;  %v1035_v49 = vld [vmem:[%s1505_s6 + $0x30] sm:$0xff]  ;;  %v1041_v50 = vld [vmem:[%s1505_s6 + $0x60] sm:$0xff] }
  0x7b   :  { %v74_v4 = vrot.slane %v73_v56, 2  ;;  %v80_v5 = vrot.slane %v79_v57, 2  ;;  %504 = vmatpush.bf16.msra.mxu3 %v872_v39  ;;  %517 = vmatpush.bf16.msrb.mxu0 %v812_v40 }
  0x7c   :  { %v49_v8 = vpop.permute.xlu0 %48  ;;  %530 = vmatpush.bf16.msrb.mxu1 %v876_v46  ;;  %v1043_v46 = vld [vmem:[%s1505_s6 + $0x70] sm:$0xff] }
  0x7d   :  { %v1348_v12 = vadd.f32 %v74_v4, %v73_v56  ;;  %v81_v13 = vadd.f32 %v80_v5, %v79_v57  ;;  %v56_v14 = vmul.f32 %v49_v8, %v42_v52  ;;  %v57_v15 = vmul.f32 %v49_v8, %v43_v58  ;;  %v999_v56 = vld [vmem:[%s1502_s3 + $0x94] sm:$0xf]  ;;  %v855_v4 = vld [vmem:[%s1502_s3 + $0x80] sm:$0xf]  ;;  %v793_v8 = vld [vmem:[%s1502_s3 + $0x8] sm:$0xf0] }
  0x7e   :  { %v1082_v57 = vmov 269488144   ;;  %v868_v2 = vor.u32 %v999_v56, %v865_v61  ;;  %v792_v5 = vor.u32 %v982_v3, %v791_v62  ;;  %v856_v11 = vor.u32 %v998_v6, %v855_v4  ;;  %v1031_v61 = vld [vmem:[%s1505_s6 + $0x10] sm:$0xff]  ;;  %v1037_v62 = vld [vmem:[%s1505_s6 + $0x40] sm:$0xff] }
  0x7f   :  { %v82_v24 = vrot.slane %v81_v13, 1  ;;  %v60_v25 = vrot.slane %v56_v14, 4  ;;  %v66_v26 = vrot.slane %v57_v15, 4  ;;  %v76_v37 = vrot.slane %v1348_v12, 1  ;;  %505 = vmatpush.bf16.msra.mxu3 %v864_v59  ;;  %518 = vmatpush.bf16.msrb.mxu0 %v804_v60  ;;  %v1032_v59 = vld [vmem:[%s1505_s6 + $0x18] sm:$0xff]  ;;  %v1038_v60 = vld [vmem:[%s1505_s6 + $0x48] sm:$0xff] }
  0x80   :  { %v143_v58 = vunpack.c.l.s4 %v1082_v57  ;;  %531 = vmatpush.bf16.msrb.mxu1 %v868_v2  ;;  %493 = vmatpush.bf16.msra.mxu2 %v792_v5 }
  0x81   :  { %v83_v31 = vadd.f32 %v82_v24, %v81_v13  ;;  %v61_v32 = vadd.f32 %v60_v25, %v56_v14  ;;  %v67_v33 = vadd.f32 %v66_v26, %v57_v15  ;;  %v77_v63 = vadd.f32 %v76_v37, %v1348_v12  ;;  %v997_v13 = vld [vmem:[%s1502_s3 + $0x84] sm:$0xf]  ;;  %v857_v14 = vld [vmem:[%s1502_s3 + $0x88] sm:$0xf0]  ;;  %v1044_v24 = vld [vmem:[%s1505_s6 + $0x78] sm:$0xff] }
  0x82   :  { %v796_v12 = vor.u32 %v981_v7, %v793_v8  ;;  %v144_v15 = vunpack.c.0.s8 %v143_v58  ;;  %v860_v16 = vor.u32 %v997_v13, %v857_v14  ;;  %v39_v25 = vld [vmem:[#allocation2] sm:$0xf]  ;;  %v1039_v58 = vld [vmem:[%s1505_s6 + $0x50] sm:$0xff] }
  0x83   :  { %v89_v43 = vrot.slane %v83_v31, 6  ;;  %v62_v44 = vrot.slane %v61_v32, 2  ;;  %v68_v45 = vrot.slane %v67_v33, 2  ;;  %506 = vmatpush.bf16.msra.mxu3 %v856_v11 }
  0x84   :  { %519 = vmatpush.bf16.msrb.mxu0 %v796_v12  ;;  %532 = vmatpush.bf16.msrb.mxu1 %v860_v16 }
  0x85   :  { %v63_v51 = vadd.f32 %v62_v44, %v61_v32  ;;  %v69_v52 = vadd.f32 %v68_v45, %v67_v33  ;;  %v92_v9 = vsel %vm90_vm3, %v77_v63, %v89_v43  ;;  %682 = vmatpush.bf16.msrb.mxu2 %v1036_v47  ;;  %v1030_v63 = vld [vmem:[%s1505_s6 + $0x8] sm:$0xff] }
  0x86   :  { %v97_v19 = vrot.slane %v92_v9, 7 }
  0x87   :  { %v64_v0 = vrot.slane %v63_v51, 1  ;;  %v70_v1 = vrot.slane %v69_v52, 1  ;;  %695 = vmatpush.bf16.msrb.mxu3 %v1044_v24 }
  0x89   :  { %v71_v10 = vadd.f32 %v70_v1, %v69_v52  ;;  %v65_v17 = vadd.f32 %v64_v0, %v63_v51  ;;  %683 = vmatpush.bf16.msrb.mxu2 %v1035_v49  ;;  %v1034_v51 = vld [vmem:[%s1505_s6 + $0x28] sm:$0xff]  ;;  %v1040_v52 = vld [vmem:[%s1505_s6 + $0x58] sm:$0xff]  ;;  %v1029_v0 = vld [vmem:[%s1505_s6] sm:$0xff] }
  0x8a   :  { %v538_v1 = vld [vmem:[%s1504_s5] sm:$0x3] }
  0x8b   :  { %v88_v18 = vrot.slane %v71_v10, 6  ;;  %696 = vmatpush.bf16.msrb.mxu3 %v1043_v46  ;;  %v541_v5 = vperm.slane %v538_v1, 1  ;;  %v540_v11 = vperm.slane %v538_v1, 0 }
  0x8d   :  { %v91_v20 = vsel %vm90_vm3, %v65_v17, %v88_v18  ;;  %684 = vmatpush.bf16.msrb.mxu2 %v1034_v51 }
  0x8e   :  { %v141_v21 = vpop.permute.xlu1 %140  ;;  %v99_v22 = vsel %vm98_vm2, %v97_v19, %v91_v20 }
  0x8f   :  { %v145_v23 = vperm.slane %v141_v21, %v144_v15  ;;  %v101_v26 = vsel %vm100_vm4, %v97_v19, %v99_v22  ;;  %697 = vmatpush.bf16.msrb.mxu3 %v1042_v48 }
  0x90   :  { %v103_v27 = vsel %vm102_vm5, %v97_v19, %v101_v26 }
  0x91   :  { %1052 = vrcp.f32 %v145_v23  ;;  %v105_v28 = vsel %vm104_vm6, %v97_v19, %v103_v27  ;;  %v158_v33 = vand.u32 2147483648, %v145_v23  ;;  %v156_v35 = vand.u32 2147483647, %v145_v23  ;;  %685 = vmatpush.bf16.msrb.mxu2 %v1033_v53 }
  0x92   :  { %v107_v29 = vadd.f32 %v105_v28, %v39_v25  ;;  %vm152_vm8 = vweird.f32 %v145_v23 }
  0x93   :  { %v159_v37 = vor.u32 1.1754944e-38, %v158_v33  ;;  %vm157_vm10 = vcmp.eq.f32.partialorder %v156_v35, 8.507059e+37  ;;  %698 = vmatpush.bf16.msrb.mxu3 %v1041_v50 }
  0x94   :  { %108 = vst [vmem:[#allocation2] sm:$0xf] %v107_v29 }
  0x95   :  { %686 = vmatpush.bf16.msrb.mxu2 %v1032_v59 }
  0x97   :  { %v1053_v30 = vpop.eup %1052  ;;  %699 = vmatpush.bf16.msrb.mxu3 %v1040_v52 }
  0x98   :  { %v148_v31 = vmul.f32 %v1053_v30, %v145_v23  ;;  %vm153_vm7 = vweird.f32 %v1053_v30  ;;  %v1051_v23 = vld [vmem:[%s1506_s7] ss:$0 sm:$0xff] }
  0x99   :  { %vm154_vm9 = vmor %vm152_vm8, %vm153_vm7  ;;  %687 = vmatpush.bf16.msrb.mxu2 %v1031_v61 }
  0x9a   :  { %v149_v32 = vsub.f32 1.0, %v148_v31 }
  0x9b   :  { %v137_v39 = vld [vmem:[#allocation2] sm:$0xf]  ;;  %700 = vmatpush.bf16.msrb.mxu3 %v1039_v58 }
  0x9c   :  { %v150_v34 = vmul.f32 %v1053_v30, %v149_v32 }
  0x9d   :  { %688 = vmatpush.bf16.msrb.mxu2 %v1030_v63 }
  0x9e   :  { %v151_v36 = vadd.f32 %v1053_v30, %v150_v34 }
  0x9f   :  { %701 = vmatpush.bf16.msrb.mxu3 %v1038_v60 }
  0xa0   :  { %v155_v38 = vsel %vm154_vm9, %v1053_v30, %v151_v36 }
  0xa1   :  { %v160_v40 = vsel %vm157_vm10, %v159_v37, %v155_v38  ;;  %689 = vmatpush.bf16.msrb.mxu2 %v1029_v0 }
  0xa2   :  { %v161_v41 = vmul.f32 %v160_v40, %v137_v39  ;;  %v309_v54 = vpop.f32.mrf.mxu0 }
  0xa3   :  { %v322_v55 = vpop.f32.mrf.mxu1  ;;  %702 = vmatpush.bf16.msrb.mxu3 %v1037_v62 }
  0xa4   :  { %163 = vst [vmem:[#allocation1] ss:$4 sm:$0xff] %v161_v41 }
  0xaa   :  { %v311_v56 = vpop.f32.mrf.mxu0 }
  0xab   :  { %v164_v42 = vld.sshfl [vmem:[#allocation1] sm:$0xff pattern:$0x73625140]  ;;  %v165_v43 = vld.sshfl [vmem:[#allocation1 + $0x8] sm:$0xff pattern:$0x73625140]  ;;  %v324_v57 = vpop.f32.mrf.mxu1 }
  0xac   :  { %v168_v44 = vpack.c.bf16 %v164_v42, %v164_v42  ;;  %v169_v45 = vpack.c.bf16 %v165_v43, %v165_v43 }
  0xae   :  { %494 = vmatmul.bf16.vlgmr.msra.gmra.mxu2 %v168_v44  ;;  %507 = vmatmul.bf16.vlgmr.msra.gmra.mxu3 %v169_v45 }
  0xaf   :  { %520 = vmatmul.bf16.vlgmr.msrb.gmra.mxu0 %v168_v44  ;;  %533 = vmatmul.bf16.vlgmr.msrb.gmra.mxu1 %v169_v45 }
 0x12c   :  { %v521_v2 = vpop.f32.mrf.mxu0  ;;  %v534_v3 = vpop.f32.mrf.mxu1 }
 0x12d   :  { %v522_v4 = vadd.f32 %v521_v2, %v322_v55 }
 0x12f   :  { %v535_v6 = vadd.f32 %v534_v3, %v522_v4 }
 0x131   :  { %v545_v7 = vadd.f32 %v541_v5, %v535_v6  ;;  %v495_v8 = vpop.f32.mrf.mxu2  ;;  %v508_v9 = vpop.f32.mrf.mxu3 }
 0x132   :  { %v496_v10 = vadd.f32 %v495_v8, %v309_v54 }
 0x133   :  { %v547_v12 = vmax.f32 %v545_v7, 0.0 }
 0x134   :  { %v509_v13 = vadd.f32 %v508_v9, %v496_v10  ;;  %v523_v14 = vpop.f32.mrf.mxu0  ;;  %v536_v15 = vpop.f32.mrf.mxu1 }
 0x135   :  { %v549_v16 = vpack.c.bf16 %v547_v12, %v547_v12 }
 0x136   :  { %v544_v17 = vadd.f32 %v540_v11, %v509_v13 }
 0x137   :  { %703 = vmatmul.bf16.vlgmr.msrb.gmra.mxu3 %v549_v16 }
 0x138   :  { %v546_v18 = vmax.f32 %v544_v17, 0.0 }
 0x139   :  { %v497_v19 = vpop.f32.mrf.mxu2  ;;  %v510_v20 = vpop.f32.mrf.mxu3 }
 0x13a   :  { %v548_v21 = vpack.c.bf16 %v546_v18, %v546_v18 }
 0x13c   :  { %690 = vmatmul.bf16.vlgmr.msrb.gmra.mxu2 %v548_v21 }
 0x1ba   :  { %v704_v22 = vpop.f32.mrf.mxu3 }
 0x1bf   :  { %v691_v24 = vpop.f32.mrf.mxu2 }
 0x1c0   :  { %v692_v25 = vadd.f32 %v1051_v23, %v691_v24 }
 0x1c2   :  { %v705_v26 = vadd.f32 %v704_v22, %v692_v25  ;;  %v706_v27 = vpop.f32.mrf.mxu3 }
 0x1c4   :  { %708 = vst [vmem:[#allocation4] sm:$0x3] %v705_v26 }
 0x1c5   :  { %719 = dma.vmem_to_hbm [thread:$0]  %s715_s16, 32, %s717_s19, [#allocation5]  }
 0x1c7   :  { %v693_v28 = vpop.f32.mrf.mxu2 }
 0x1c8   :  { %1078 = dma.done.wait [#allocation5], 32  }
 0x1c9   :  { %1079 = vsyncadd [#allocation5], 4294967264 }
 0x1ca   :  { %724 = vsyncpa [#allocation5], 1 }

</bundles_post_ra>
